<compile_context>
chip_gen: v7x
topology: tpu7x:2x2x1
jax: 0.10.0
libtpu: 0.0.40
codegen_flags: <defaults>
</compile_context>

<pallas_src>
import functools
import math

import jax
import jax.numpy as jnp
from jax.experimental import pallas as pl
from jax.experimental.pallas import tpu as pltpu

# ----------------------------- problem sizes --------------------------------
B = 8            # batch (graphs / compounds)
GRAPH_FEAT = 32  # pooled per-graph node-feature dim (GNN substitute input)
FP = 64          # fingerprint_num
GENE = 32        # gene_feature_num
CELL = 48        # cell_profile_feature_num
TGT = 4          # target_num
GCN_OUT = 64     # gcn_out_dim
DNN_OUT = 64     # dnn_out_dim
EMB = 128        # emb_size
GENE_EMB = 128   # gene_dnn_emb
CELL_EMB = 128   # cell_dnn_emb
DEG_EMB = 128    # de_gene_dnn_emb
DEC_EMB = 128    # de_cell_dnn_emb
COMP_EMB = 2048  # dnn_compound hidden (hard-coded 2048 in the module)
N_EXPERT = 4     # MoE(emb, emb, 4, 4)
NUM_MODAL = 3    # compound + gene + cell
TEMP = 0.07      # bunsupLoss temperature
N_LOSS = 8       # slots in the fused loss output vector

WEIGHT_DTYPE = jnp.bfloat16   # MXU operand dtype for weight matrices


# ------------------------------ kernel helpers -------------------------------
def _mm(x, w):
    # MXU matmul: cast the activation to the (bf16) weight dtype, accumulate f32.
    return jnp.dot(x.astype(w.dtype), w, preferred_element_type=jnp.float32)


def _sigmoid(x):
    # EUP reciprocal keeps the divide off the VALU slots.
    return pl.reciprocal(1.0 + jnp.exp(-x), approx=True)


# ------------------------------ fused forward kernel -------------------------
def _miner_fwd_kernel(
        graph_ref, fp_ref, ge_ref, mo_ref, gel_ref, mol_ref, y_ref,
        gnn_w, gnn_b,
        cw1, cb1, cw2, cb2,
        fc1_w, fc1_b, fc1w_, fc1b_,
        gnw1, gnb1, gnw2, gnb2,
        fc2_w, fc2_b,
        clw1, clb1, clw2, clb2,
        fc3_w, fc3_b,
        dec1_w, dec1_b, dgw2, dgb2, dcw2, dcb2,
        moe_we, moe_be, moe_gw, moe_gb,
        out_w, out_b,
        preds_ref, losses_ref,
        *, alpha, beta, sigma, gamma, weight):
    f32 = jnp.float32

    # ----------------------------- compound branch ---------------------------
    x1 = _mm(graph_ref[...], gnn_w[...]) + gnn_b[...]                    # (B, GCN_OUT)
    h0 = jnp.maximum(_mm(fp_ref[...], cw1[...]) + cb1[...], 0.0)         # (B, 2048)
    x1_ = _mm(h0, cw2[...]) + cb2[...]                                   # (B, DNN_OUT)

    pc1 = _mm(x1, fc1_w[...]) + fc1_b[...]                               # (B, 2*EMB)
    x1_pri, x1_com = pc1[:, :EMB], pc1[:, EMB:]
    pc1_ = _mm(x1_, fc1w_[...]) + fc1b_[...]                             # (B, 2*EMB)
    x1_pri_, x1_com_ = pc1_[:, :EMB], pc1_[:, EMB:]

    # ------------------------ decoders + feature imputation ------------------
    # gene|cell decoder hidden layers share input x1_com -> one fused matmul.
    hdec = jnp.maximum(_mm(x1_com, dec1_w[...]) + dec1_b[...], 0.0)      # (B, DEG+DEC)
    hg = hdec[:, :DEG_EMB]
    hc = hdec[:, DEG_EMB:]
    de_gene = _mm(hg, dgw2[...]) + dgb2[...]                             # (B, GENE)
    de_mo = _mm(hc, dcw2[...]) + dcb2[...]                               # (B, CELL)

    ge_mask = gel_ref[...]                                               # (B, 1) 0/1
    mo_mask = mol_ref[...]
    ge_feat = jnp.where(ge_mask > 0.5, ge_ref[...], de_gene)             # imputed
    mo_feat = jnp.where(mo_mask > 0.5, mo_ref[...], de_mo)

    # ------------------------------ gene / cell ------------------------------
    h2 = jnp.maximum(_mm(ge_feat, gnw1[...]) + gnb1[...], 0.0)
    x2 = _mm(h2, gnw2[...]) + gnb2[...]
    pc2 = _mm(x2, fc2_w[...]) + fc2_b[...]
    x2_pri, x2_com = pc2[:, :EMB], pc2[:, EMB:]

    h3 = jnp.maximum(_mm(mo_feat, clw1[...]) + clb1[...], 0.0)
    x3 = _mm(h3, clw2[...]) + clb2[...]
    pc3 = _mm(x3, fc3_w[...]) + fc3_b[...]
    x3_pri, x3_com = pc3[:, :EMB], pc3[:, EMB:]

    x_pri = [x1_pri, x2_pri, x3_pri]
    x_com = [x1_com, x2_com, x3_com]
    x_pri_ = [x1_pri_, x2_pri, x3_pri]
    x_com_ = [x1_com_, x2_com, x3_com]

    # ------------------------------ loss_corr --------------------------------
    def _corr_group(pris, coms):
        acc = jnp.zeros((B, 1), f32)
        for p, c in zip(pris, coms):
            pcen = p - jnp.mean(p, axis=1, keepdims=True)
            ccen = c - jnp.mean(c, axis=1, keepdims=True)
            num = jnp.sum(pcen * ccen, axis=1, keepdims=True)
            den = (jnp.sum(pcen * pcen, axis=1, keepdims=True) *
                   jnp.sum(ccen * ccen, axis=1, keepdims=True))
            acc = acc + num * jax.lax.rsqrt(den) / NUM_MODAL
        return jnp.mean(jnp.exp(acc), keepdims=True)                     # (1, 1)

    if alpha != 0:
        loss_corr = _corr_group(x_pri, x_com) + _corr_group(x_pri_, x_com_)
    else:
        loss_corr = jnp.zeros((1, 1), f32)

    # ------------------------------ loss_cont --------------------------------
    if beta != 0:
        rr = jax.lax.broadcasted_iota(jnp.int32, (B, B), 0)
        cc = jax.lax.broadcasted_iota(jnp.int32, (B, B), 1)
        eye = (rr == cc).astype(f32)
        posmask = 1.0 - eye

        def _pair_loss(pa, pb, ca, cb):
            # bunsupLoss(ca, cb, sigmoid(pa @ pb.T), weight), mean-reduced.
            # Expanded so only ONE sim and ONE score matmul are needed
            # (s_ba == s_ab.T, sim_t == sim.T are dropped):
            #   mean = -(1/N^2) * sum_j sim[j,j]*(N - colsum_j(scores)/10)
            #          + (1/N)   * sum_j log(den[j])
            sim = jnp.dot(ca, cb.T, preferred_element_type=f32) * (1.0 / TEMP)
            scores = _sigmoid(jnp.dot(pa, pb.T, preferred_element_type=f32))
            d_row = jnp.sum(sim * eye, axis=0, keepdims=True)            # (1, B) = sim[j,j]
            colsum = jnp.sum(scores, axis=0, keepdims=True)              # (1, B)
            den = jnp.sum(jnp.exp(sim * (1.0 - scores * weight)) * posmask,
                          axis=1, keepdims=True)                         # (B, 1)
            t1 = jnp.sum(d_row * (B - colsum * 0.1), keepdims=True)      # (1, 1)
            t2 = jnp.sum(jnp.log(den), keepdims=True)                    # (1, 1)
            return t2 / B - t1 / (B * B)

        def _cont_group(pris, coms):
            comn = [c * jax.lax.rsqrt(jnp.sum(c * c, axis=-1, keepdims=True))
                    for c in coms]
            pairs = [(0, 1), (0, 2), (1, 0), (2, 0)]
            tot = jnp.zeros((1, 1), f32)
            for i, j in pairs:
                tot = tot + _pair_loss(pris[i], pris[j], comn[i], comn[j])
            return tot / len(pairs)

        loss_cont = _cont_group(x_pri, x_com) + _cont_group(x_pri_, x_com_)
    else:
        loss_cont = jnp.zeros((1, 1), f32)

    # ------------------------------ loss_recon -------------------------------
    if sigma != 0:
        nge = jnp.sum(ge_mask, keepdims=True)                            # (1, 1)
        nmo = jnp.sum(mo_mask, keepdims=True)
        loss_ge = jnp.mean((ge_feat - de_gene) ** 2, keepdims=True) / nge
        loss_mo = jnp.mean((mo_feat - de_mo) ** 2, keepdims=True) / nmo
        loss_recon = loss_ge + loss_mo
    else:
        loss_recon = jnp.zeros((1, 1), f32)

    # --------------------------------- MoE ------------------------------------
    # Gate logit m = x_m . g_m (+ gb_m): four lane reductions (XLU), no matmul.
    g0 = jnp.sum(x1_com * moe_gw[0:1, :], axis=1, keepdims=True) + moe_gb[0:1, :]
    g1 = jnp.sum(x2_com * moe_gw[1:2, :], axis=1, keepdims=True) + moe_gb[1:2, :]
    g2 = jnp.sum(x3_com * moe_gw[2:3, :], axis=1, keepdims=True) + moe_gb[2:3, :]
    g3 = jnp.sum(x1_com_ * moe_gw[3:4, :], axis=1, keepdims=True) + moe_gb[3:4, :]
    gmax = jnp.maximum(jnp.maximum(g0, g1), jnp.maximum(g2, g3))
    e0 = jnp.exp(g0 - gmax)
    e1 = jnp.exp(g1 - gmax)
    e2 = jnp.exp(g2 - gmax)
    e3 = jnp.exp(g3 - gmax)
    inv = pl.reciprocal(e0 + e1 + e2 + e3, approx=True)
    w0, w1, w2, w3 = e0 * inv, e1 * inv, e2 * inv, e3 * inv               # (B, 1) each

    # Gate weights folded into the activations: one dense (4E, E) matmul on
    # row-stacked expert weights replaces the 75%-zero (4E, 4E) block-diagonal
    # matmul (saves ~384 KB of weight DMA).  Mathematically identical:
    #   x_mix = sum_m w_m * (x_m @ We_m + b_m)
    x_scaled = jnp.concatenate(
        [w0 * x1_com, w1 * x2_com, w2 * x3_com, w3 * x1_com_], axis=1)    # (B, 4E)
    bias_mix = (w0 * moe_be[0:1, :] + w1 * moe_be[1:2, :]
                + w2 * moe_be[2:3, :] + w3 * moe_be[3:4, :])              # (B, E)
    x_mix = _mm(x_scaled, moe_we[...]) + bias_mix                         # (B, E)

    if gamma != 0:
        l0 = jnp.sum(w0, keepdims=True)                                   # (1, 1)
        l1 = jnp.sum(w1, keepdims=True)
        l2 = jnp.sum(w2, keepdims=True)
        l3 = jnp.sum(w3, keepdims=True)
        mu = (l0 + l1 + l2 + l3) * (1.0 / N_EXPERT)
        var = ((l0 - mu) ** 2 + (l1 - mu) ** 2
               + (l2 - mu) ** 2 + (l3 - mu) ** 2) / (N_EXPERT - 1)        # ddof=1
        balance_loss = jnp.sqrt(var)
    else:
        balance_loss = jnp.zeros((1, 1), f32)

    # ------------------------------ head + BCE --------------------------------
    logits = _mm(x_mix, out_w[...]) + out_b[...]                          # (B, TGT)
    y = y_ref[...]
    # masks = labels == labels -> all True; mean over every element.
    bce = (jnp.maximum(logits, 0.0) - logits * y +
           jnp.log(1.0 + jnp.exp(-jnp.abs(logits))))
    loss_cls = jnp.mean(bce, keepdims=True)                               # (1, 1)
    preds_ref[...] = _sigmoid(logits)

    total = (alpha * loss_corr + beta * loss_cont + sigma * loss_recon
             + gamma * balance_loss + loss_cls)

    # one lane-vector of all loss terms instead of many (1,1) outputs
    lane = jax.lax.broadcasted_iota(jnp.int32, (1, N_LOSS), 1)
    vals = (total, loss_corr, loss_cont, loss_recon, balance_loss, loss_cls)
    out = jnp.zeros((1, N_LOSS), f32)
    for k, v in enumerate(vals):
        out = out + jnp.where(lane == k, v, 0.0)
    losses_ref[...] = out


# ------------------------------ wrapper ---------------------------------------
def _full_spec(shape):
    zeros = (0,) * len(shape)
    return pl.BlockSpec(shape, lambda i: zeros)


def miner_forward(params, batch, alpha, beta, sigma, gamma, weight):
    ge_mask = (batch["ge_label"] == 1).astype(jnp.float32).reshape(B, 1)
    mo_mask = (batch["mo_label"] == 1).astype(jnp.float32).reshape(B, 1)

    inputs = [
        batch["graph_feat"], batch["fingerprint"], batch["ge"], batch["mo"],
        ge_mask, mo_mask, batch["y"],
        params["gnn_w"], params["gnn_b"],
        params["comp_w1"], params["comp_b1"], params["comp_w2"], params["comp_b2"],
        params["fc1_w"], params["fc1_b"], params["fc1_w_"], params["fc1_b_"],
        params["gene_w1"], params["gene_b1"], params["gene_w2"], params["gene_b2"],
        params["fc2_w"], params["fc2_b"],
        params["cell_w1"], params["cell_b1"], params["cell_w2"], params["cell_b2"],
        params["fc3_w"], params["fc3_b"],
        params["dec1_w"], params["dec1_b"],
        params["deg_w2"], params["deg_b2"], params["dec_w2"], params["dec_b2"],
        params["moe_we"], params["moe_be"], params["moe_gw"], params["moe_gb"],
        params["out_w"], params["out_b"],
    ]

    kernel = functools.partial(_miner_fwd_kernel, alpha=alpha, beta=beta,
                               sigma=sigma, gamma=gamma, weight=weight)

    preds, losses = pl.pallas_call(
        kernel,
        out_shape=(jax.ShapeDtypeStruct((B, TGT), jnp.float32),
                   jax.ShapeDtypeStruct((1, N_LOSS), jnp.float32)),
        grid=(1,),
        in_specs=[_full_spec(a.shape) for a in inputs],
        out_specs=(pl.BlockSpec((B, TGT), lambda i: (0, 0)),
                   pl.BlockSpec((1, N_LOSS), lambda i: (0, 0))),
        compiler_params=pltpu.CompilerParams(
            dimension_semantics=("arbitrary",)),
    )(*inputs)

    loss = losses[0, 0]
    return (preds, loss, losses[0, 1], losses[0, 2], losses[0, 3],
            losses[0, 4], losses[0, 5])


# ------------------------------ parameters ------------------------------------
def _init_linear(key, fan_in, fan_out, w_dtype=WEIGHT_DTYPE):
    kw, kb = jax.random.split(key)
    w = (jax.random.normal(kw, (fan_in, fan_out), jnp.float32)
         / math.sqrt(fan_in)).astype(w_dtype)
    b = 0.01 * jax.random.normal(kb, (1, fan_out), jnp.float32)
    return w, b


def build_params(key):
    keys = jax.random.split(key, 18)
    p = {}
    p["gnn_w"], p["gnn_b"] = _init_linear(keys[0], GRAPH_FEAT, GCN_OUT)
    # DNN(fingerprint_num, dnn_out_dim, 2, 2048): Linear+ReLU, Linear
    p["comp_w1"], p["comp_b1"] = _init_linear(keys[1], FP, COMP_EMB)
    p["comp_w2"], p["comp_b2"] = _init_linear(keys[2], COMP_EMB, DNN_OUT)
    # fused pil|cil projections: output lanes = [pri(0:EMB) | com(EMB:2EMB)]
    p["fc1_w"], p["fc1_b"] = _init_linear(keys[3], GCN_OUT, 2 * EMB)
    p["fc1_w_"], p["fc1_b_"] = _init_linear(keys[4], DNN_OUT, 2 * EMB)
    p["gene_w1"], p["gene_b1"] = _init_linear(keys[5], GENE, GENE_EMB)
    p["gene_w2"], p["gene_b2"] = _init_linear(keys[6], GENE_EMB, DNN_OUT)
    p["fc2_w"], p["fc2_b"] = _init_linear(keys[7], DNN_OUT, 2 * EMB)
    p["cell_w1"], p["cell_b1"] = _init_linear(keys[8], CELL, CELL_EMB)
    p["cell_w2"], p["cell_b2"] = _init_linear(keys[9], CELL_EMB, DNN_OUT)
    p["fc3_w"], p["fc3_b"] = _init_linear(keys[10], DNN_OUT, 2 * EMB)
    # decoders: hidden layers lane-concatenated (same input x1_com, zero padding)
    dgw1, dgb1 = _init_linear(keys[11], EMB, DEG_EMB)
    dgw2, dgb2 = _init_linear(keys[12], DEG_EMB, GENE)
    dcw1, dcb1 = _init_linear(keys[13], EMB, DEC_EMB)
    dcw2, dcb2 = _init_linear(keys[14], DEC_EMB, CELL)
    p["dec1_w"] = jnp.concatenate([dgw1, dcw1], axis=1)          # (EMB, DEG+DEC) bf16
    p["dec1_b"] = jnp.concatenate([dgb1, dcb1], axis=1)          # (1, DEG+DEC) f32
    p["deg_w2"], p["deg_b2"] = dgw2, dgb2
    p["dec_w2"], p["dec_b2"] = dcw2, dcb2

    # MoE: experts ROW-stacked (dense), gate weights as (N_EXPERT, EMB).
    km = jax.random.split(keys[15], 4)
    we = jax.random.normal(km[0], (N_EXPERT, EMB, EMB), jnp.float32) / math.sqrt(EMB)
    p["moe_we"] = we.reshape(N_EXPERT * EMB, EMB).astype(WEIGHT_DTYPE)
    p["moe_be"] = 0.01 * jax.random.normal(km[1], (N_EXPERT, EMB), jnp.float32)
    p["moe_gw"] = jax.random.normal(km[2], (N_EXPERT, EMB), jnp.float32) / math.sqrt(EMB)
    p["moe_gb"] = 0.01 * jax.random.normal(km[3], (N_EXPERT, 1), jnp.float32)

    p["out_w"], p["out_b"] = _init_linear(keys[16], EMB, TGT)
    return p


# --------------------------------- main ---------------------------------------
if __name__ == "__main__":
    key = jax.random.PRNGKey(0)
    kp, kd = jax.random.split(key)
    params = build_params(kp)

    dk = jax.random.split(kd, 5)
    batch = {
        "graph_feat": jax.random.normal(dk[0], (B, GRAPH_FEAT), jnp.float32),
        "fingerprint": jax.random.normal(dk[1], (B, FP), jnp.float32),
        "ge": jax.random.normal(dk[2], (B, GENE), jnp.float32),
        "mo": jax.random.normal(dk[3], (B, CELL), jnp.float32),
        "y": jax.random.bernoulli(dk[4], 0.5, (B, TGT)).astype(jnp.float32),
        "ge_label": jnp.array([1, 0, 1, 1, 0, 1, 1, 0], jnp.int32),
        "mo_label": jnp.array([1, 1, 0, 1, 0, 1, 0, 1], jnp.int32),
    }

    outs = miner_forward(params, batch,
                         alpha=0.2, beta=0.3, sigma=0.5, gamma=0.1, weight=0.05)
    outs = jax.block_until_ready(outs)
    preds = outs[0]
    assert preds.shape == (B, TGT)
    assert all(jnp.isfinite(jnp.asarray(o)).all() for o in outs)
    print("KERNEL_OK")
</pallas_src>

<mosaic_0001>
module attributes {stable_mosaic.version = 11 : i64} {
  func.func @_miner_fwd_kernel(%arg0: i32, %arg1: memref<8x32xf32, #tpu.memory_space<vmem>>, %arg2: memref<8x64xf32, #tpu.memory_space<vmem>>, %arg3: memref<8x32xf32, #tpu.memory_space<vmem>>, %arg4: memref<8x48xf32, #tpu.memory_space<vmem>>, %arg5: memref<8x1xf32, #tpu.memory_space<vmem>>, %arg6: memref<8x1xf32, #tpu.memory_space<vmem>>, %arg7: memref<8x4xf32, #tpu.memory_space<vmem>>, %arg8: memref<32x64xbf16, #tpu.memory_space<vmem>>, %arg9: memref<1x64xf32, #tpu.memory_space<vmem>>, %arg10: memref<64x2048xbf16, #tpu.memory_space<vmem>>, %arg11: memref<1x2048xf32, #tpu.memory_space<vmem>>, %arg12: memref<2048x64xbf16, #tpu.memory_space<vmem>>, %arg13: memref<1x64xf32, #tpu.memory_space<vmem>>, %arg14: memref<64x256xbf16, #tpu.memory_space<vmem>>, %arg15: memref<1x256xf32, #tpu.memory_space<vmem>>, %arg16: memref<64x256xbf16, #tpu.memory_space<vmem>>, %arg17: memref<1x256xf32, #tpu.memory_space<vmem>>, %arg18: memref<32x128xbf16, #tpu.memory_space<vmem>>, %arg19: memref<1x128xf32, #tpu.memory_space<vmem>>, %arg20: memref<128x64xbf16, #tpu.memory_space<vmem>>, %arg21: memref<1x64xf32, #tpu.memory_space<vmem>>, %arg22: memref<64x256xbf16, #tpu.memory_space<vmem>>, %arg23: memref<1x256xf32, #tpu.memory_space<vmem>>, %arg24: memref<48x128xbf16, #tpu.memory_space<vmem>>, %arg25: memref<1x128xf32, #tpu.memory_space<vmem>>, %arg26: memref<128x64xbf16, #tpu.memory_space<vmem>>, %arg27: memref<1x64xf32, #tpu.memory_space<vmem>>, %arg28: memref<64x256xbf16, #tpu.memory_space<vmem>>, %arg29: memref<1x256xf32, #tpu.memory_space<vmem>>, %arg30: memref<128x256xbf16, #tpu.memory_space<vmem>>, %arg31: memref<1x256xf32, #tpu.memory_space<vmem>>, %arg32: memref<128x32xbf16, #tpu.memory_space<vmem>>, %arg33: memref<1x32xf32, #tpu.memory_space<vmem>>, %arg34: memref<128x48xbf16, #tpu.memory_space<vmem>>, %arg35: memref<1x48xf32, #tpu.memory_space<vmem>>, %arg36: memref<512x128xbf16, #tpu.memory_space<vmem>>, %arg37: memref<4x128xf32, #tpu.memory_space<vmem>>, %arg38: memref<4x128xf32, #tpu.memory_space<vmem>>, %arg39: memref<4x1xf32, #tpu.memory_space<vmem>>, %arg40: memref<128x4xbf16, #tpu.memory_space<vmem>>, %arg41: memref<1x4xf32, #tpu.memory_space<vmem>>, %arg42: memref<8x4xf32, #tpu.memory_space<vmem>>, %arg43: memref<1x8xf32, #tpu.memory_space<vmem>>) attributes {dimension_semantics = [#tpu.dimension_semantics<arbitrary>], iteration_bounds = array<i64: 1>, scalar_prefetch = 0 : i64, scratch_operands = 0 : i64, tpu.core_type = #tpu.core_type<tc>, window_params = [{pipeline_mode = #tpu.pipeline_mode<synchronous>, transform_indices = @transform_0, window_bounds = array<i64: 8, 32>}, {pipeline_mode = #tpu.pipeline_mode<synchronous>, transform_indices = @transform_1, window_bounds = array<i64: 8, 64>}, {pipeline_mode = #tpu.pipeline_mode<synchronous>, transform_indices = @transform_2, window_bounds = array<i64: 8, 32>}, {pipeline_mode = #tpu.pipeline_mode<synchronous>, transform_indices = @transform_3, window_bounds = array<i64: 8, 48>}, {pipeline_mode = #tpu.pipeline_mode<synchronous>, transform_indices = @transform_4, window_bounds = array<i64: 8, 1>}, {pipeline_mode = #tpu.pipeline_mode<synchronous>, transform_indices = @transform_5, window_bounds = array<i64: 8, 1>}, {pipeline_mode = #tpu.pipeline_mode<synchronous>, transform_indices = @transform_6, window_bounds = array<i64: 8, 4>}, {pipeline_mode = #tpu.pipeline_mode<synchronous>, transform_indices = @transform_7, window_bounds = array<i64: 32, 64>}, {pipeline_mode = #tpu.pipeline_mode<synchronous>, transform_indices = @transform_8, window_bounds = array<i64: 1, 64>}, {pipeline_mode = #tpu.pipeline_mode<synchronous>, transform_indices = @transform_9, window_bounds = array<i64: 64, 2048>}, {pipeline_mode = #tpu.pipeline_mode<synchronous>, transform_indices = @transform_10, window_bounds = array<i64: 1, 2048>}, {pipeline_mode = #tpu.pipeline_mode<synchronous>, transform_indices = @transform_11, window_bounds = array<i64: 2048, 64>}, {pipeline_mode = #tpu.pipeline_mode<synchronous>, transform_indices = @transform_12, window_bounds = array<i64: 1, 64>}, {pipeline_mode = #tpu.pipeline_mode<synchronous>, transform_indices = @transform_13, window_bounds = array<i64: 64, 256>}, {pipeline_mode = #tpu.pipeline_mode<synchronous>, transform_indices = @transform_14, window_bounds = array<i64: 1, 256>}, {pipeline_mode = #tpu.pipeline_mode<synchronous>, transform_indices = @transform_15, window_bounds = array<i64: 64, 256>}, {pipeline_mode = #tpu.pipeline_mode<synchronous>, transform_indices = @transform_16, window_bounds = array<i64: 1, 256>}, {pipeline_mode = #tpu.pipeline_mode<synchronous>, transform_indices = @transform_17, window_bounds = array<i64: 32, 128>}, {pipeline_mode = #tpu.pipeline_mode<synchronous>, transform_indices = @transform_18, window_bounds = array<i64: 1, 128>}, {pipeline_mode = #tpu.pipeline_mode<synchronous>, transform_indices = @transform_19, window_bounds = array<i64: 128, 64>}, {pipeline_mode = #tpu.pipeline_mode<synchronous>, transform_indices = @transform_20, window_bounds = array<i64: 1, 64>}, {pipeline_mode = #tpu.pipeline_mode<synchronous>, transform_indices = @transform_21, window_bounds = array<i64: 64, 256>}, {pipeline_mode = #tpu.pipeline_mode<synchronous>, transform_indices = @transform_22, window_bounds = array<i64: 1, 256>}, {pipeline_mode = #tpu.pipeline_mode<synchronous>, transform_indices = @transform_23, window_bounds = array<i64: 48, 128>}, {pipeline_mode = #tpu.pipeline_mode<synchronous>, transform_indices = @transform_24, window_bounds = array<i64: 1, 128>}, {pipeline_mode = #tpu.pipeline_mode<synchronous>, transform_indices = @transform_25, window_bounds = array<i64: 128, 64>}, {pipeline_mode = #tpu.pipeline_mode<synchronous>, transform_indices = @transform_26, window_bounds = array<i64: 1, 64>}, {pipeline_mode = #tpu.pipeline_mode<synchronous>, transform_indices = @transform_27, window_bounds = array<i64: 64, 256>}, {pipeline_mode = #tpu.pipeline_mode<synchronous>, transform_indices = @transform_28, window_bounds = array<i64: 1, 256>}, {pipeline_mode = #tpu.pipeline_mode<synchronous>, transform_indices = @transform_29, window_bounds = array<i64: 128, 256>}, {pipeline_mode = #tpu.pipeline_mode<synchronous>, transform_indices = @transform_30, window_bounds = array<i64: 1, 256>}, {pipeline_mode = #tpu.pipeline_mode<synchronous>, transform_indices = @transform_31, window_bounds = array<i64: 128, 32>}, {pipeline_mode = #tpu.pipeline_mode<synchronous>, transform_indices = @transform_32, window_bounds = array<i64: 1, 32>}, {pipeline_mode = #tpu.pipeline_mode<synchronous>, transform_indices = @transform_33, window_bounds = array<i64: 128, 48>}, {pipeline_mode = #tpu.pipeline_mode<synchronous>, transform_indices = @transform_34, window_bounds = array<i64: 1, 48>}, {pipeline_mode = #tpu.pipeline_mode<synchronous>, transform_indices = @transform_35, window_bounds = array<i64: 512, 128>}, {pipeline_mode = #tpu.pipeline_mode<synchronous>, transform_indices = @transform_36, window_bounds = array<i64: 4, 128>}, {pipeline_mode = #tpu.pipeline_mode<synchronous>, transform_indices = @transform_37, window_bounds = array<i64: 4, 128>}, {pipeline_mode = #tpu.pipeline_mode<synchronous>, transform_indices = @transform_38, window_bounds = array<i64: 4, 1>}, {pipeline_mode = #tpu.pipeline_mode<synchronous>, transform_indices = @transform_39, window_bounds = array<i64: 128, 4>}, {pipeline_mode = #tpu.pipeline_mode<synchronous>, transform_indices = @transform_40, window_bounds = array<i64: 1, 4>}, {pipeline_mode = #tpu.pipeline_mode<synchronous>, transform_indices = @transform_41, window_bounds = array<i64: 8, 4>}, {pipeline_mode = #tpu.pipeline_mode<synchronous>, transform_indices = @transform_42, window_bounds = array<i64: 1, 8>}]} {
    %c0 = arith.constant 0 : index
    %c0_0 = arith.constant 0 : index
    %0 = vector.load %arg1[%c0, %c0_0] : memref<8x32xf32, #tpu.memory_space<vmem>>, vector<8x32xf32>
    %c0_1 = arith.constant 0 : index
    %c0_2 = arith.constant 0 : index
    %1 = vector.load %arg8[%c0_1, %c0_2] : memref<32x64xbf16, #tpu.memory_space<vmem>>, vector<32x64xbf16>
    %2 = arith.truncf %0 : vector<8x32xf32> to vector<8x32xbf16>
    %cst = arith.constant dense<0.000000e+00> : vector<8x64xf32>
    %3 = tpu.matmul %2, %1, %cst {dimension_numbers = #tpu.dot_dimension_numbers<[1], [0], [0], [1], [0, 0, 1, 1], [], []>} : vector<8x32xbf16>, vector<32x64xbf16>, vector<8x64xf32> -> vector<8x64xf32>
    %c0_3 = arith.constant 0 : index
    %c0_4 = arith.constant 0 : index
    %4 = vector.load %arg9[%c0_3, %c0_4] : memref<1x64xf32, #tpu.memory_space<vmem>>, vector<1x64xf32>
    %5 = vector.broadcast %4 : vector<1x64xf32> to vector<8x64xf32>
    %6 = arith.addf %3, %5 : vector<8x64xf32>
    %c0_5 = arith.constant 0 : index
    %c0_6 = arith.constant 0 : index
    %7 = vector.load %arg2[%c0_5, %c0_6] : memref<8x64xf32, #tpu.memory_space<vmem>>, vector<8x64xf32>
    %c0_7 = arith.constant 0 : index
    %c0_8 = arith.constant 0 : index
    %8 = vector.load %arg10[%c0_7, %c0_8] : memref<64x2048xbf16, #tpu.memory_space<vmem>>, vector<64x2048xbf16>
    %9 = arith.truncf %7 : vector<8x64xf32> to vector<8x64xbf16>
    %cst_9 = arith.constant dense<0.000000e+00> : vector<8x2048xf32>
    %10 = tpu.matmul %9, %8, %cst_9 {dimension_numbers = #tpu.dot_dimension_numbers<[1], [0], [0], [1], [0, 0, 1, 1], [], []>} : vector<8x64xbf16>, vector<64x2048xbf16>, vector<8x2048xf32> -> vector<8x2048xf32>
    %c0_10 = arith.constant 0 : index
    %c0_11 = arith.constant 0 : index
    %11 = vector.load %arg11[%c0_10, %c0_11] : memref<1x2048xf32, #tpu.memory_space<vmem>>, vector<1x2048xf32>
    %12 = vector.broadcast %11 : vector<1x2048xf32> to vector<8x2048xf32>
    %13 = arith.addf %10, %12 : vector<8x2048xf32>
    %cst_12 = arith.constant 0.000000e+00 : f32
    %14 = vector.broadcast %cst_12 : f32 to vector<8x2048xf32>
    %15 = arith.maximumf %13, %14 : vector<8x2048xf32>
    %c0_13 = arith.constant 0 : index
    %c0_14 = arith.constant 0 : index
    %16 = vector.load %arg12[%c0_13, %c0_14] : memref<2048x64xbf16, #tpu.memory_space<vmem>>, vector<2048x64xbf16>
    %17 = arith.truncf %15 : vector<8x2048xf32> to vector<8x2048xbf16>
    %cst_15 = arith.constant dense<0.000000e+00> : vector<8x64xf32>
    %18 = tpu.matmul %17, %16, %cst_15 {dimension_numbers = #tpu.dot_dimension_numbers<[1], [0], [0], [1], [0, 0, 1, 1], [], []>} : vector<8x2048xbf16>, vector<2048x64xbf16>, vector<8x64xf32> -> vector<8x64xf32>
    %c0_16 = arith.constant 0 : index
    %c0_17 = arith.constant 0 : index
    %19 = vector.load %arg13[%c0_16, %c0_17] : memref<1x64xf32, #tpu.memory_space<vmem>>, vector<1x64xf32>
    %20 = vector.broadcast %19 : vector<1x64xf32> to vector<8x64xf32>
    %21 = arith.addf %18, %20 : vector<8x64xf32>
    %c0_18 = arith.constant 0 : index
    %c0_19 = arith.constant 0 : index
    %22 = vector.load %arg14[%c0_18, %c0_19] : memref<64x256xbf16, #tpu.memory_space<vmem>>, vector<64x256xbf16>
    %23 = arith.truncf %6 : vector<8x64xf32> to vector<8x64xbf16>
    %cst_20 = arith.constant dense<0.000000e+00> : vector<8x256xf32>
    %24 = tpu.matmul %23, %22, %cst_20 {dimension_numbers = #tpu.dot_dimension_numbers<[1], [0], [0], [1], [0, 0, 1, 1], [], []>} : vector<8x64xbf16>, vector<64x256xbf16>, vector<8x256xf32> -> vector<8x256xf32>
    %c0_21 = arith.constant 0 : index
    %c0_22 = arith.constant 0 : index
    %25 = vector.load %arg15[%c0_21, %c0_22] : memref<1x256xf32, #tpu.memory_space<vmem>>, vector<1x256xf32>
    %26 = vector.broadcast %25 : vector<1x256xf32> to vector<8x256xf32>
    %27 = arith.addf %24, %26 : vector<8x256xf32>
    %28 = vector.extract_strided_slice %27 {offsets = [0, 0], sizes = [8, 128], strides = [1, 1]} : vector<8x256xf32> to vector<8x128xf32>
    %29 = vector.extract_strided_slice %27 {offsets = [0, 128], sizes = [8, 128], strides = [1, 1]} : vector<8x256xf32> to vector<8x128xf32>
    %c0_23 = arith.constant 0 : index
    %c0_24 = arith.constant 0 : index
    %30 = vector.load %arg16[%c0_23, %c0_24] : memref<64x256xbf16, #tpu.memory_space<vmem>>, vector<64x256xbf16>
    %31 = arith.truncf %21 : vector<8x64xf32> to vector<8x64xbf16>
    %cst_25 = arith.constant dense<0.000000e+00> : vector<8x256xf32>
    %32 = tpu.matmul %31, %30, %cst_25 {dimension_numbers = #tpu.dot_dimension_numbers<[1], [0], [0], [1], [0, 0, 1, 1], [], []>} : vector<8x64xbf16>, vector<64x256xbf16>, vector<8x256xf32> -> vector<8x256xf32>
    %c0_26 = arith.constant 0 : index
    %c0_27 = arith.constant 0 : index
    %33 = vector.load %arg17[%c0_26, %c0_27] : memref<1x256xf32, #tpu.memory_space<vmem>>, vector<1x256xf32>
    %34 = vector.broadcast %33 : vector<1x256xf32> to vector<8x256xf32>
    %35 = arith.addf %32, %34 : vector<8x256xf32>
    %36 = vector.extract_strided_slice %35 {offsets = [0, 0], sizes = [8, 128], strides = [1, 1]} : vector<8x256xf32> to vector<8x128xf32>
    %37 = vector.extract_strided_slice %35 {offsets = [0, 128], sizes = [8, 128], strides = [1, 1]} : vector<8x256xf32> to vector<8x128xf32>
    %c0_28 = arith.constant 0 : index
    %c0_29 = arith.constant 0 : index
    %38 = vector.load %arg30[%c0_28, %c0_29] : memref<128x256xbf16, #tpu.memory_space<vmem>>, vector<128x256xbf16>
    %39 = arith.truncf %29 : vector<8x128xf32> to vector<8x128xbf16>
    %cst_30 = arith.constant dense<0.000000e+00> : vector<8x256xf32>
    %40 = tpu.matmul %39, %38, %cst_30 {dimension_numbers = #tpu.dot_dimension_numbers<[1], [0], [0], [1], [0, 0, 1, 1], [], []>} : vector<8x128xbf16>, vector<128x256xbf16>, vector<8x256xf32> -> vector<8x256xf32>
    %c0_31 = arith.constant 0 : index
    %c0_32 = arith.constant 0 : index
    %41 = vector.load %arg31[%c0_31, %c0_32] : memref<1x256xf32, #tpu.memory_space<vmem>>, vector<1x256xf32>
    %42 = vector.broadcast %41 : vector<1x256xf32> to vector<8x256xf32>
    %43 = arith.addf %40, %42 : vector<8x256xf32>
    %cst_33 = arith.constant 0.000000e+00 : f32
    %44 = vector.broadcast %cst_33 : f32 to vector<8x256xf32>
    %45 = arith.maximumf %43, %44 : vector<8x256xf32>
    %46 = vector.extract_strided_slice %45 {offsets = [0, 0], sizes = [8, 128], strides = [1, 1]} : vector<8x256xf32> to vector<8x128xf32>
    %47 = vector.extract_strided_slice %45 {offsets = [0, 128], sizes = [8, 128], strides = [1, 1]} : vector<8x256xf32> to vector<8x128xf32>
    %c0_34 = arith.constant 0 : index
    %c0_35 = arith.constant 0 : index
    %48 = vector.load %arg32[%c0_34, %c0_35] : memref<128x32xbf16, #tpu.memory_space<vmem>>, vector<128x32xbf16>
    %49 = arith.truncf %46 : vector<8x128xf32> to vector<8x128xbf16>
    %cst_36 = arith.constant dense<0.000000e+00> : vector<8x32xf32>
    %50 = tpu.matmul %49, %48, %cst_36 {dimension_numbers = #tpu.dot_dimension_numbers<[1], [0], [0], [1], [0, 0, 1, 1], [], []>} : vector<8x128xbf16>, vector<128x32xbf16>, vector<8x32xf32> -> vector<8x32xf32>
    %c0_37 = arith.constant 0 : index
    %c0_38 = arith.constant 0 : index
    %51 = vector.load %arg33[%c0_37, %c0_38] : memref<1x32xf32, #tpu.memory_space<vmem>>, vector<1x32xf32>
    %52 = vector.broadcast %51 : vector<1x32xf32> to vector<8x32xf32>
    %53 = arith.addf %50, %52 : vector<8x32xf32>
    %c0_39 = arith.constant 0 : index
    %c0_40 = arith.constant 0 : index
    %54 = vector.load %arg34[%c0_39, %c0_40] : memref<128x48xbf16, #tpu.memory_space<vmem>>, vector<128x48xbf16>
    %55 = arith.truncf %47 : vector<8x128xf32> to vector<8x128xbf16>
    %cst_41 = arith.constant dense<0.000000e+00> : vector<8x48xf32>
    %56 = tpu.matmul %55, %54, %cst_41 {dimension_numbers = #tpu.dot_dimension_numbers<[1], [0], [0], [1], [0, 0, 1, 1], [], []>} : vector<8x128xbf16>, vector<128x48xbf16>, vector<8x48xf32> -> vector<8x48xf32>
    %c0_42 = arith.constant 0 : index
    %c0_43 = arith.constant 0 : index
    %57 = vector.load %arg35[%c0_42, %c0_43] : memref<1x48xf32, #tpu.memory_space<vmem>>, vector<1x48xf32>
    %58 = vector.broadcast %57 : vector<1x48xf32> to vector<8x48xf32>
    %59 = arith.addf %56, %58 : vector<8x48xf32>
    %c0_44 = arith.constant 0 : index
    %c0_45 = arith.constant 0 : index
    %60 = vector.load %arg5[%c0_44, %c0_45] : memref<8x1xf32, #tpu.memory_space<vmem>>, vector<8x1xf32>
    %c0_46 = arith.constant 0 : index
    %c0_47 = arith.constant 0 : index
    %61 = vector.load %arg6[%c0_46, %c0_47] : memref<8x1xf32, #tpu.memory_space<vmem>>, vector<8x1xf32>
    %cst_48 = arith.constant 5.000000e-01 : f32
    %62 = vector.broadcast %cst_48 : f32 to vector<8x1xf32>
    %63 = arith.cmpf ogt, %60, %62 : vector<8x1xf32>
    %c0_49 = arith.constant 0 : index
    %c0_50 = arith.constant 0 : index
    %64 = vector.load %arg3[%c0_49, %c0_50] : memref<8x32xf32, #tpu.memory_space<vmem>>, vector<8x32xf32>
    %65 = vector.shape_cast %63 : vector<8x1xi1> to vector<8x1xi1>
    %66 = vector.broadcast %65 : vector<8x1xi1> to vector<8x32xi1>
    %67 = arith.select %66, %64, %53 : vector<8x32xi1>, vector<8x32xf32>
    %cst_51 = arith.constant 5.000000e-01 : f32
    %68 = vector.broadcast %cst_51 : f32 to vector<8x1xf32>
    %69 = arith.cmpf ogt, %61, %68 : vector<8x1xf32>
    %c0_52 = arith.constant 0 : index
    %c0_53 = arith.constant 0 : index
    %70 = vector.load %arg4[%c0_52, %c0_53] : memref<8x48xf32, #tpu.memory_space<vmem>>, vector<8x48xf32>
    %71 = vector.shape_cast %69 : vector<8x1xi1> to vector<8x1xi1>
    %72 = vector.broadcast %71 : vector<8x1xi1> to vector<8x48xi1>
    %73 = arith.select %72, %70, %59 : vector<8x48xi1>, vector<8x48xf32>
    %c0_54 = arith.constant 0 : index
    %c0_55 = arith.constant 0 : index
    %74 = vector.load %arg18[%c0_54, %c0_55] : memref<32x128xbf16, #tpu.memory_space<vmem>>, vector<32x128xbf16>
    %75 = arith.truncf %67 : vector<8x32xf32> to vector<8x32xbf16>
    %cst_56 = arith.constant dense<0.000000e+00> : vector<8x128xf32>
    %76 = tpu.matmul %75, %74, %cst_56 {dimension_numbers = #tpu.dot_dimension_numbers<[1], [0], [0], [1], [0, 0, 1, 1], [], []>} : vector<8x32xbf16>, vector<32x128xbf16>, vector<8x128xf32> -> vector<8x128xf32>
    %c0_57 = arith.constant 0 : index
    %c0_58 = arith.constant 0 : index
    %77 = vector.load %arg19[%c0_57, %c0_58] : memref<1x128xf32, #tpu.memory_space<vmem>>, vector<1x128xf32>
    %78 = vector.broadcast %77 : vector<1x128xf32> to vector<8x128xf32>
    %79 = arith.addf %76, %78 : vector<8x128xf32>
    %cst_59 = arith.constant 0.000000e+00 : f32
    %80 = vector.broadcast %cst_59 : f32 to vector<8x128xf32>
    %81 = arith.maximumf %79, %80 : vector<8x128xf32>
    %c0_60 = arith.constant 0 : index
    %c0_61 = arith.constant 0 : index
    %82 = vector.load %arg20[%c0_60, %c0_61] : memref<128x64xbf16, #tpu.memory_space<vmem>>, vector<128x64xbf16>
    %83 = arith.truncf %81 : vector<8x128xf32> to vector<8x128xbf16>
    %cst_62 = arith.constant dense<0.000000e+00> : vector<8x64xf32>
    %84 = tpu.matmul %83, %82, %cst_62 {dimension_numbers = #tpu.dot_dimension_numbers<[1], [0], [0], [1], [0, 0, 1, 1], [], []>} : vector<8x128xbf16>, vector<128x64xbf16>, vector<8x64xf32> -> vector<8x64xf32>
    %c0_63 = arith.constant 0 : index
    %c0_64 = arith.constant 0 : index
    %85 = vector.load %arg21[%c0_63, %c0_64] : memref<1x64xf32, #tpu.memory_space<vmem>>, vector<1x64xf32>
    %86 = vector.broadcast %85 : vector<1x64xf32> to vector<8x64xf32>
    %87 = arith.addf %84, %86 : vector<8x64xf32>
    %c0_65 = arith.constant 0 : index
    %c0_66 = arith.constant 0 : index
    %88 = vector.load %arg22[%c0_65, %c0_66] : memref<64x256xbf16, #tpu.memory_space<vmem>>, vector<64x256xbf16>
    %89 = arith.truncf %87 : vector<8x64xf32> to vector<8x64xbf16>
    %cst_67 = arith.constant dense<0.000000e+00> : vector<8x256xf32>
    %90 = tpu.matmul %89, %88, %cst_67 {dimension_numbers = #tpu.dot_dimension_numbers<[1], [0], [0], [1], [0, 0, 1, 1], [], []>} : vector<8x64xbf16>, vector<64x256xbf16>, vector<8x256xf32> -> vector<8x256xf32>
    %c0_68 = arith.constant 0 : index
    %c0_69 = arith.constant 0 : index
    %91 = vector.load %arg23[%c0_68, %c0_69] : memref<1x256xf32, #tpu.memory_space<vmem>>, vector<1x256xf32>
    %92 = vector.broadcast %91 : vector<1x256xf32> to vector<8x256xf32>
    %93 = arith.addf %90, %92 : vector<8x256xf32>
    %94 = vector.extract_strided_slice %93 {offsets = [0, 0], sizes = [8, 128], strides = [1, 1]} : vector<8x256xf32> to vector<8x128xf32>
    %95 = vector.extract_strided_slice %93 {offsets = [0, 128], sizes = [8, 128], strides = [1, 1]} : vector<8x256xf32> to vector<8x128xf32>
    %c0_70 = arith.constant 0 : index
    %c0_71 = arith.constant 0 : index
    %96 = vector.load %arg24[%c0_70, %c0_71] : memref<48x128xbf16, #tpu.memory_space<vmem>>, vector<48x128xbf16>
    %97 = arith.truncf %73 : vector<8x48xf32> to vector<8x48xbf16>
    %cst_72 = arith.constant dense<0.000000e+00> : vector<8x128xf32>
    %98 = tpu.matmul %97, %96, %cst_72 {dimension_numbers = #tpu.dot_dimension_numbers<[1], [0], [0], [1], [0, 0, 1, 1], [], []>} : vector<8x48xbf16>, vector<48x128xbf16>, vector<8x128xf32> -> vector<8x128xf32>
    %c0_73 = arith.constant 0 : index
    %c0_74 = arith.constant 0 : index
    %99 = vector.load %arg25[%c0_73, %c0_74] : memref<1x128xf32, #tpu.memory_space<vmem>>, vector<1x128xf32>
    %100 = vector.broadcast %99 : vector<1x128xf32> to vector<8x128xf32>
    %101 = arith.addf %98, %100 : vector<8x128xf32>
    %cst_75 = arith.constant 0.000000e+00 : f32
    %102 = vector.broadcast %cst_75 : f32 to vector<8x128xf32>
    %103 = arith.maximumf %101, %102 : vector<8x128xf32>
    %c0_76 = arith.constant 0 : index
    %c0_77 = arith.constant 0 : index
    %104 = vector.load %arg26[%c0_76, %c0_77] : memref<128x64xbf16, #tpu.memory_space<vmem>>, vector<128x64xbf16>
    %105 = arith.truncf %103 : vector<8x128xf32> to vector<8x128xbf16>
    %cst_78 = arith.constant dense<0.000000e+00> : vector<8x64xf32>
    %106 = tpu.matmul %105, %104, %cst_78 {dimension_numbers = #tpu.dot_dimension_numbers<[1], [0], [0], [1], [0, 0, 1, 1], [], []>} : vector<8x128xbf16>, vector<128x64xbf16>, vector<8x64xf32> -> vector<8x64xf32>
    %c0_79 = arith.constant 0 : index
    %c0_80 = arith.constant 0 : index
    %107 = vector.load %arg27[%c0_79, %c0_80] : memref<1x64xf32, #tpu.memory_space<vmem>>, vector<1x64xf32>
    %108 = vector.broadcast %107 : vector<1x64xf32> to vector<8x64xf32>
    %109 = arith.addf %106, %108 : vector<8x64xf32>
    %c0_81 = arith.constant 0 : index
    %c0_82 = arith.constant 0 : index
    %110 = vector.load %arg28[%c0_81, %c0_82] : memref<64x256xbf16, #tpu.memory_space<vmem>>, vector<64x256xbf16>
    %111 = arith.truncf %109 : vector<8x64xf32> to vector<8x64xbf16>
    %cst_83 = arith.constant dense<0.000000e+00> : vector<8x256xf32>
    %112 = tpu.matmul %111, %110, %cst_83 {dimension_numbers = #tpu.dot_dimension_numbers<[1], [0], [0], [1], [0, 0, 1, 1], [], []>} : vector<8x64xbf16>, vector<64x256xbf16>, vector<8x256xf32> -> vector<8x256xf32>
    %c0_84 = arith.constant 0 : index
    %c0_85 = arith.constant 0 : index
    %113 = vector.load %arg29[%c0_84, %c0_85] : memref<1x256xf32, #tpu.memory_space<vmem>>, vector<1x256xf32>
    %114 = vector.broadcast %113 : vector<1x256xf32> to vector<8x256xf32>
    %115 = arith.addf %112, %114 : vector<8x256xf32>
    %116 = vector.extract_strided_slice %115 {offsets = [0, 0], sizes = [8, 128], strides = [1, 1]} : vector<8x256xf32> to vector<8x128xf32>
    %117 = vector.extract_strided_slice %115 {offsets = [0, 128], sizes = [8, 128], strides = [1, 1]} : vector<8x256xf32> to vector<8x128xf32>
    %cst_86 = arith.constant 0.000000e+00 : f32
    %118 = vector.broadcast %cst_86 : f32 to vector<8x1xf32>
    %cst_87 = arith.constant dense<0.000000e+00> : vector<8xf32>
    %119 = vector.multi_reduction <add>, %28, %cst_87 [1] : vector<8x128xf32> to vector<8xf32>
    %120 = vector.shape_cast %119 : vector<8xf32> to vector<8x1xf32>
    %cst_88 = arith.constant 1.280000e+02 : f32
    %121 = vector.broadcast %cst_88 : f32 to vector<8x1xf32>
    %122 = arith.divf %120, %121 : vector<8x1xf32>
    %123 = vector.broadcast %122 : vector<8x1xf32> to vector<8x128xf32>
    %124 = arith.subf %28, %123 : vector<8x128xf32>
    %cst_89 = arith.constant dense<0.000000e+00> : vector<8xf32>
    %125 = vector.multi_reduction <add>, %29, %cst_89 [1] : vector<8x128xf32> to vector<8xf32>
    %126 = vector.shape_cast %125 : vector<8xf32> to vector<8x1xf32>
    %cst_90 = arith.constant 1.280000e+02 : f32
    %127 = vector.broadcast %cst_90 : f32 to vector<8x1xf32>
    %128 = arith.divf %126, %127 : vector<8x1xf32>
    %129 = vector.broadcast %128 : vector<8x1xf32> to vector<8x128xf32>
    %130 = arith.subf %29, %129 : vector<8x128xf32>
    %131 = arith.mulf %124, %130 : vector<8x128xf32>
    %cst_91 = arith.constant dense<0.000000e+00> : vector<8xf32>
    %132 = vector.multi_reduction <add>, %131, %cst_91 [1] : vector<8x128xf32> to vector<8xf32>
    %133 = vector.shape_cast %132 : vector<8xf32> to vector<8x1xf32>
    %134 = arith.mulf %124, %124 : vector<8x128xf32>
    %cst_92 = arith.constant dense<0.000000e+00> : vector<8xf32>
    %135 = vector.multi_reduction <add>, %134, %cst_92 [1] : vector<8x128xf32> to vector<8xf32>
    %136 = vector.shape_cast %135 : vector<8xf32> to vector<8x1xf32>
    %137 = arith.mulf %130, %130 : vector<8x128xf32>
    %cst_93 = arith.constant dense<0.000000e+00> : vector<8xf32>
    %138 = vector.multi_reduction <add>, %137, %cst_93 [1] : vector<8x128xf32> to vector<8xf32>
    %139 = vector.shape_cast %138 : vector<8xf32> to vector<8x1xf32>
    %140 = arith.mulf %136, %139 : vector<8x1xf32>
    %141 = math.rsqrt %140 : vector<8x1xf32>
    %142 = arith.mulf %133, %141 : vector<8x1xf32>
    %cst_94 = arith.constant 3.000000e+00 : f32
    %143 = vector.broadcast %cst_94 : f32 to vector<8x1xf32>
    %144 = arith.divf %142, %143 : vector<8x1xf32>
    %145 = arith.addf %118, %144 : vector<8x1xf32>
    %cst_95 = arith.constant dense<0.000000e+00> : vector<8xf32>
    %146 = vector.multi_reduction <add>, %94, %cst_95 [1] : vector<8x128xf32> to vector<8xf32>
    %147 = vector.shape_cast %146 : vector<8xf32> to vector<8x1xf32>
    %cst_96 = arith.constant 1.280000e+02 : f32
    %148 = vector.broadcast %cst_96 : f32 to vector<8x1xf32>
    %149 = arith.divf %147, %148 : vector<8x1xf32>
    %150 = vector.broadcast %149 : vector<8x1xf32> to vector<8x128xf32>
    %151 = arith.subf %94, %150 : vector<8x128xf32>
    %cst_97 = arith.constant dense<0.000000e+00> : vector<8xf32>
    %152 = vector.multi_reduction <add>, %95, %cst_97 [1] : vector<8x128xf32> to vector<8xf32>
    %153 = vector.shape_cast %152 : vector<8xf32> to vector<8x1xf32>
    %cst_98 = arith.constant 1.280000e+02 : f32
    %154 = vector.broadcast %cst_98 : f32 to vector<8x1xf32>
    %155 = arith.divf %153, %154 : vector<8x1xf32>
    %156 = vector.broadcast %155 : vector<8x1xf32> to vector<8x128xf32>
    %157 = arith.subf %95, %156 : vector<8x128xf32>
    %158 = arith.mulf %151, %157 : vector<8x128xf32>
    %cst_99 = arith.constant dense<0.000000e+00> : vector<8xf32>
    %159 = vector.multi_reduction <add>, %158, %cst_99 [1] : vector<8x128xf32> to vector<8xf32>
    %160 = vector.shape_cast %159 : vector<8xf32> to vector<8x1xf32>
    %161 = arith.mulf %151, %151 : vector<8x128xf32>
    %cst_100 = arith.constant dense<0.000000e+00> : vector<8xf32>
    %162 = vector.multi_reduction <add>, %161, %cst_100 [1] : vector<8x128xf32> to vector<8xf32>
    %163 = vector.shape_cast %162 : vector<8xf32> to vector<8x1xf32>
    %164 = arith.mulf %157, %157 : vector<8x128xf32>
    %cst_101 = arith.constant dense<0.000000e+00> : vector<8xf32>
    %165 = vector.multi_reduction <add>, %164, %cst_101 [1] : vector<8x128xf32> to vector<8xf32>
    %166 = vector.shape_cast %165 : vector<8xf32> to vector<8x1xf32>
    %167 = arith.mulf %163, %166 : vector<8x1xf32>
    %168 = math.rsqrt %167 : vector<8x1xf32>
    %169 = arith.mulf %160, %168 : vector<8x1xf32>
    %cst_102 = arith.constant 3.000000e+00 : f32
    %170 = vector.broadcast %cst_102 : f32 to vector<8x1xf32>
    %171 = arith.divf %169, %170 : vector<8x1xf32>
    %172 = arith.addf %145, %171 : vector<8x1xf32>
    %cst_103 = arith.constant dense<0.000000e+00> : vector<8xf32>
    %173 = vector.multi_reduction <add>, %116, %cst_103 [1] : vector<8x128xf32> to vector<8xf32>
    %174 = vector.shape_cast %173 : vector<8xf32> to vector<8x1xf32>
    %cst_104 = arith.constant 1.280000e+02 : f32
    %175 = vector.broadcast %cst_104 : f32 to vector<8x1xf32>
    %176 = arith.divf %174, %175 : vector<8x1xf32>
    %177 = vector.broadcast %176 : vector<8x1xf32> to vector<8x128xf32>
    %178 = arith.subf %116, %177 : vector<8x128xf32>
    %cst_105 = arith.constant dense<0.000000e+00> : vector<8xf32>
    %179 = vector.multi_reduction <add>, %117, %cst_105 [1] : vector<8x128xf32> to vector<8xf32>
    %180 = vector.shape_cast %179 : vector<8xf32> to vector<8x1xf32>
    %cst_106 = arith.constant 1.280000e+02 : f32
    %181 = vector.broadcast %cst_106 : f32 to vector<8x1xf32>
    %182 = arith.divf %180, %181 : vector<8x1xf32>
    %183 = vector.broadcast %182 : vector<8x1xf32> to vector<8x128xf32>
    %184 = arith.subf %117, %183 : vector<8x128xf32>
    %185 = arith.mulf %178, %184 : vector<8x128xf32>
    %cst_107 = arith.constant dense<0.000000e+00> : vector<8xf32>
    %186 = vector.multi_reduction <add>, %185, %cst_107 [1] : vector<8x128xf32> to vector<8xf32>
    %187 = vector.shape_cast %186 : vector<8xf32> to vector<8x1xf32>
    %188 = arith.mulf %178, %178 : vector<8x128xf32>
    %cst_108 = arith.constant dense<0.000000e+00> : vector<8xf32>
    %189 = vector.multi_reduction <add>, %188, %cst_108 [1] : vector<8x128xf32> to vector<8xf32>
    %190 = vector.shape_cast %189 : vector<8xf32> to vector<8x1xf32>
    %191 = arith.mulf %184, %184 : vector<8x128xf32>
    %cst_109 = arith.constant dense<0.000000e+00> : vector<8xf32>
    %192 = vector.multi_reduction <add>, %191, %cst_109 [1] : vector<8x128xf32> to vector<8xf32>
    %193 = vector.shape_cast %192 : vector<8xf32> to vector<8x1xf32>
    %194 = arith.mulf %190, %193 : vector<8x1xf32>
    %195 = math.rsqrt %194 : vector<8x1xf32>
    %196 = arith.mulf %187, %195 : vector<8x1xf32>
    %cst_110 = arith.constant 3.000000e+00 : f32
    %197 = vector.broadcast %cst_110 : f32 to vector<8x1xf32>
    %198 = arith.divf %196, %197 : vector<8x1xf32>
    %199 = arith.addf %172, %198 : vector<8x1xf32>
    %200 = math.exp %199 : vector<8x1xf32>
    %201 = vector.shape_cast %200 : vector<8x1xf32> to vector<1x8x1xf32>
    %cst_111 = arith.constant dense<0.000000e+00> : vector<1xf32>
    %202 = vector.multi_reduction <add>, %201, %cst_111 [1, 2] : vector<1x8x1xf32> to vector<1xf32>
    %203 = vector.shape_cast %202 : vector<1xf32> to vector<1x1x1xf32>
    %204 = vector.extract %203[0, 0, 0] : f32 from vector<1x1x1xf32>
    %205 = vector.broadcast %204 : f32 to vector<1x1xf32>
    %cst_112 = arith.constant 8.000000e+00 : f32
    %206 = vector.broadcast %cst_112 : f32 to vector<1x1xf32>
    %207 = arith.divf %205, %206 : vector<1x1xf32>
    %cst_113 = arith.constant 0.000000e+00 : f32
    %208 = vector.broadcast %cst_113 : f32 to vector<8x1xf32>
    %cst_114 = arith.constant dense<0.000000e+00> : vector<8xf32>
    %209 = vector.multi_reduction <add>, %36, %cst_114 [1] : vector<8x128xf32> to vector<8xf32>
    %210 = vector.shape_cast %209 : vector<8xf32> to vector<8x1xf32>
    %cst_115 = arith.constant 1.280000e+02 : f32
    %211 = vector.broadcast %cst_115 : f32 to vector<8x1xf32>
    %212 = arith.divf %210, %211 : vector<8x1xf32>
    %213 = vector.broadcast %212 : vector<8x1xf32> to vector<8x128xf32>
    %214 = arith.subf %36, %213 : vector<8x128xf32>
    %cst_116 = arith.constant dense<0.000000e+00> : vector<8xf32>
    %215 = vector.multi_reduction <add>, %37, %cst_116 [1] : vector<8x128xf32> to vector<8xf32>
    %216 = vector.shape_cast %215 : vector<8xf32> to vector<8x1xf32>
    %cst_117 = arith.constant 1.280000e+02 : f32
    %217 = vector.broadcast %cst_117 : f32 to vector<8x1xf32>
    %218 = arith.divf %216, %217 : vector<8x1xf32>
    %219 = vector.broadcast %218 : vector<8x1xf32> to vector<8x128xf32>
    %220 = arith.subf %37, %219 : vector<8x128xf32>
    %221 = arith.mulf %214, %220 : vector<8x128xf32>
    %cst_118 = arith.constant dense<0.000000e+00> : vector<8xf32>
    %222 = vector.multi_reduction <add>, %221, %cst_118 [1] : vector<8x128xf32> to vector<8xf32>
    %223 = vector.shape_cast %222 : vector<8xf32> to vector<8x1xf32>
    %224 = arith.mulf %214, %214 : vector<8x128xf32>
    %cst_119 = arith.constant dense<0.000000e+00> : vector<8xf32>
    %225 = vector.multi_reduction <add>, %224, %cst_119 [1] : vector<8x128xf32> to vector<8xf32>
    %226 = vector.shape_cast %225 : vector<8xf32> to vector<8x1xf32>
    %227 = arith.mulf %220, %220 : vector<8x128xf32>
    %cst_120 = arith.constant dense<0.000000e+00> : vector<8xf32>
    %228 = vector.multi_reduction <add>, %227, %cst_120 [1] : vector<8x128xf32> to vector<8xf32>
    %229 = vector.shape_cast %228 : vector<8xf32> to vector<8x1xf32>
    %230 = arith.mulf %226, %229 : vector<8x1xf32>
    %231 = math.rsqrt %230 : vector<8x1xf32>
    %232 = arith.mulf %223, %231 : vector<8x1xf32>
    %cst_121 = arith.constant 3.000000e+00 : f32
    %233 = vector.broadcast %cst_121 : f32 to vector<8x1xf32>
    %234 = arith.divf %232, %233 : vector<8x1xf32>
    %235 = arith.addf %208, %234 : vector<8x1xf32>
    %cst_122 = arith.constant dense<0.000000e+00> : vector<8xf32>
    %236 = vector.multi_reduction <add>, %94, %cst_122 [1] : vector<8x128xf32> to vector<8xf32>
    %237 = vector.shape_cast %236 : vector<8xf32> to vector<8x1xf32>
    %cst_123 = arith.constant 1.280000e+02 : f32
    %238 = vector.broadcast %cst_123 : f32 to vector<8x1xf32>
    %239 = arith.divf %237, %238 : vector<8x1xf32>
    %240 = vector.broadcast %239 : vector<8x1xf32> to vector<8x128xf32>
    %241 = arith.subf %94, %240 : vector<8x128xf32>
    %cst_124 = arith.constant dense<0.000000e+00> : vector<8xf32>
    %242 = vector.multi_reduction <add>, %95, %cst_124 [1] : vector<8x128xf32> to vector<8xf32>
    %243 = vector.shape_cast %242 : vector<8xf32> to vector<8x1xf32>
    %cst_125 = arith.constant 1.280000e+02 : f32
    %244 = vector.broadcast %cst_125 : f32 to vector<8x1xf32>
    %245 = arith.divf %243, %244 : vector<8x1xf32>
    %246 = vector.broadcast %245 : vector<8x1xf32> to vector<8x128xf32>
    %247 = arith.subf %95, %246 : vector<8x128xf32>
    %248 = arith.mulf %241, %247 : vector<8x128xf32>
    %cst_126 = arith.constant dense<0.000000e+00> : vector<8xf32>
    %249 = vector.multi_reduction <add>, %248, %cst_126 [1] : vector<8x128xf32> to vector<8xf32>
    %250 = vector.shape_cast %249 : vector<8xf32> to vector<8x1xf32>
    %251 = arith.mulf %241, %241 : vector<8x128xf32>
    %cst_127 = arith.constant dense<0.000000e+00> : vector<8xf32>
    %252 = vector.multi_reduction <add>, %251, %cst_127 [1] : vector<8x128xf32> to vector<8xf32>
    %253 = vector.shape_cast %252 : vector<8xf32> to vector<8x1xf32>
    %254 = arith.mulf %247, %247 : vector<8x128xf32>
    %cst_128 = arith.constant dense<0.000000e+00> : vector<8xf32>
    %255 = vector.multi_reduction <add>, %254, %cst_128 [1] : vector<8x128xf32> to vector<8xf32>
    %256 = vector.shape_cast %255 : vector<8xf32> to vector<8x1xf32>
    %257 = arith.mulf %253, %256 : vector<8x1xf32>
    %258 = math.rsqrt %257 : vector<8x1xf32>
    %259 = arith.mulf %250, %258 : vector<8x1xf32>
    %cst_129 = arith.constant 3.000000e+00 : f32
    %260 = vector.broadcast %cst_129 : f32 to vector<8x1xf32>
    %261 = arith.divf %259, %260 : vector<8x1xf32>
    %262 = arith.addf %235, %261 : vector<8x1xf32>
    %cst_130 = arith.constant dense<0.000000e+00> : vector<8xf32>
    %263 = vector.multi_reduction <add>, %116, %cst_130 [1] : vector<8x128xf32> to vector<8xf32>
    %264 = vector.shape_cast %263 : vector<8xf32> to vector<8x1xf32>
    %cst_131 = arith.constant 1.280000e+02 : f32
    %265 = vector.broadcast %cst_131 : f32 to vector<8x1xf32>
    %266 = arith.divf %264, %265 : vector<8x1xf32>
    %267 = vector.broadcast %266 : vector<8x1xf32> to vector<8x128xf32>
    %268 = arith.subf %116, %267 : vector<8x128xf32>
    %cst_132 = arith.constant dense<0.000000e+00> : vector<8xf32>
    %269 = vector.multi_reduction <add>, %117, %cst_132 [1] : vector<8x128xf32> to vector<8xf32>
    %270 = vector.shape_cast %269 : vector<8xf32> to vector<8x1xf32>
    %cst_133 = arith.constant 1.280000e+02 : f32
    %271 = vector.broadcast %cst_133 : f32 to vector<8x1xf32>
    %272 = arith.divf %270, %271 : vector<8x1xf32>
    %273 = vector.broadcast %272 : vector<8x1xf32> to vector<8x128xf32>
    %274 = arith.subf %117, %273 : vector<8x128xf32>
    %275 = arith.mulf %268, %274 : vector<8x128xf32>
    %cst_134 = arith.constant dense<0.000000e+00> : vector<8xf32>
    %276 = vector.multi_reduction <add>, %275, %cst_134 [1] : vector<8x128xf32> to vector<8xf32>
    %277 = vector.shape_cast %276 : vector<8xf32> to vector<8x1xf32>
    %278 = arith.mulf %268, %268 : vector<8x128xf32>
    %cst_135 = arith.constant dense<0.000000e+00> : vector<8xf32>
    %279 = vector.multi_reduction <add>, %278, %cst_135 [1] : vector<8x128xf32> to vector<8xf32>
    %280 = vector.shape_cast %279 : vector<8xf32> to vector<8x1xf32>
    %281 = arith.mulf %274, %274 : vector<8x128xf32>
    %cst_136 = arith.constant dense<0.000000e+00> : vector<8xf32>
    %282 = vector.multi_reduction <add>, %281, %cst_136 [1] : vector<8x128xf32> to vector<8xf32>
    %283 = vector.shape_cast %282 : vector<8xf32> to vector<8x1xf32>
    %284 = arith.mulf %280, %283 : vector<8x1xf32>
    %285 = math.rsqrt %284 : vector<8x1xf32>
    %286 = arith.mulf %277, %285 : vector<8x1xf32>
    %cst_137 = arith.constant 3.000000e+00 : f32
    %287 = vector.broadcast %cst_137 : f32 to vector<8x1xf32>
    %288 = arith.divf %286, %287 : vector<8x1xf32>
    %289 = arith.addf %262, %288 : vector<8x1xf32>
    %290 = math.exp %289 : vector<8x1xf32>
    %291 = vector.shape_cast %290 : vector<8x1xf32> to vector<1x8x1xf32>
    %cst_138 = arith.constant dense<0.000000e+00> : vector<1xf32>
    %292 = vector.multi_reduction <add>, %291, %cst_138 [1, 2] : vector<1x8x1xf32> to vector<1xf32>
    %293 = vector.shape_cast %292 : vector<1xf32> to vector<1x1x1xf32>
    %294 = vector.extract %293[0, 0, 0] : f32 from vector<1x1x1xf32>
    %295 = vector.broadcast %294 : f32 to vector<1x1xf32>
    %cst_139 = arith.constant 8.000000e+00 : f32
    %296 = vector.broadcast %cst_139 : f32 to vector<1x1xf32>
    %297 = arith.divf %295, %296 : vector<1x1xf32>
    %298 = arith.addf %207, %297 : vector<1x1xf32>
    %299 = tpu.iota {dimensions = array<i32: 0>} : vector<8x8xi32>
    %300 = tpu.iota {dimensions = array<i32: 1>} : vector<8x8xi32>
    %301 = arith.cmpi eq, %299, %300 : vector<8x8xi32>
    %302 = arith.extui %301 : vector<8x8xi1> to vector<8x8xi32>
    %303 = arith.sitofp %302 : vector<8x8xi32> to vector<8x8xf32>
    %cst_140 = arith.constant 1.000000e+00 : f32
    %304 = vector.broadcast %cst_140 : f32 to vector<8x8xf32>
    %305 = arith.subf %304, %303 : vector<8x8xf32>
    %306 = arith.mulf %29, %29 : vector<8x128xf32>
    %cst_141 = arith.constant dense<0.000000e+00> : vector<8xf32>
    %307 = vector.multi_reduction <add>, %306, %cst_141 [1] : vector<8x128xf32> to vector<8xf32>
    %308 = vector.shape_cast %307 : vector<8xf32> to vector<8x1xf32>
    %309 = math.rsqrt %308 : vector<8x1xf32>
    %310 = vector.broadcast %309 : vector<8x1xf32> to vector<8x128xf32>
    %311 = arith.mulf %29, %310 : vector<8x128xf32>
    %312 = arith.mulf %95, %95 : vector<8x128xf32>
    %cst_142 = arith.constant dense<0.000000e+00> : vector<8xf32>
    %313 = vector.multi_reduction <add>, %312, %cst_142 [1] : vector<8x128xf32> to vector<8xf32>
    %314 = vector.shape_cast %313 : vector<8xf32> to vector<8x1xf32>
    %315 = math.rsqrt %314 : vector<8x1xf32>
    %316 = vector.broadcast %315 : vector<8x1xf32> to vector<8x128xf32>
    %317 = arith.mulf %95, %316 : vector<8x128xf32>
    %318 = arith.mulf %117, %117 : vector<8x128xf32>
    %cst_143 = arith.constant dense<0.000000e+00> : vector<8xf32>
    %319 = vector.multi_reduction <add>, %318, %cst_143 [1] : vector<8x128xf32> to vector<8xf32>
    %320 = vector.shape_cast %319 : vector<8xf32> to vector<8x1xf32>
    %321 = math.rsqrt %320 : vector<8x1xf32>
    %322 = vector.broadcast %321 : vector<8x1xf32> to vector<8x128xf32>
    %323 = arith.mulf %117, %322 : vector<8x128xf32>
    %cst_144 = arith.constant 0.000000e+00 : f32
    %324 = vector.broadcast %cst_144 : f32 to vector<1x1xf32>
    %325 = tpu.transpose %317, [1, 0] : vector<8x128xf32> -> vector<128x8xf32>
    %cst_145 = arith.constant dense<0.000000e+00> : vector<8x8xf32>
    %326 = tpu.matmul %311, %325, %cst_145 {dimension_numbers = #tpu.dot_dimension_numbers<[1], [0], [0], [1], [0, 0, 1, 1], [], []>} : vector<8x128xf32>, vector<128x8xf32>, vector<8x8xf32> -> vector<8x8xf32>
    %cst_146 = arith.constant 14.2857141 : f32
    %327 = vector.broadcast %cst_146 : f32 to vector<8x8xf32>
    %328 = arith.mulf %326, %327 : vector<8x8xf32>
    %329 = tpu.transpose %94, [1, 0] : vector<8x128xf32> -> vector<128x8xf32>
    %cst_147 = arith.constant dense<0.000000e+00> : vector<8x8xf32>
    %330 = tpu.matmul %28, %329, %cst_147 {dimension_numbers = #tpu.dot_dimension_numbers<[1], [0], [0], [1], [0, 0, 1, 1], [], []>} : vector<8x128xf32>, vector<128x8xf32>, vector<8x8xf32> -> vector<8x8xf32>
    %cst_148 = arith.constant 0.000000e+00 : f32
    %331 = vector.broadcast %cst_148 : f32 to vector<8x8xf32>
    %332 = arith.subf %331, %330 : vector<8x8xf32>
    %333 = math.exp %332 : vector<8x8xf32>
    %cst_149 = arith.constant 1.000000e+00 : f32
    %334 = vector.broadcast %cst_149 : f32 to vector<8x8xf32>
    %335 = arith.addf %334, %333 : vector<8x8xf32>
    %336 = tpu.reciprocal %335 {approx = true} : vector<8x8xf32> -> vector<8x8xf32>
    %337 = arith.mulf %328, %303 : vector<8x8xf32>
    %cst_150 = arith.constant dense<0.000000e+00> : vector<8xf32>
    %338 = vector.multi_reduction <add>, %337, %cst_150 [0] : vector<8x8xf32> to vector<8xf32>
    %339 = vector.shape_cast %338 : vector<8xf32> to vector<1x8xf32>
    %cst_151 = arith.constant dense<0.000000e+00> : vector<8xf32>
    %340 = vector.multi_reduction <add>, %336, %cst_151 [0] : vector<8x8xf32> to vector<8xf32>
    %341 = vector.shape_cast %340 : vector<8xf32> to vector<1x8xf32>
    %cst_152 = arith.constant 5.000000e-02 : f32
    %342 = vector.broadcast %cst_152 : f32 to vector<8x8xf32>
    %343 = arith.mulf %336, %342 : vector<8x8xf32>
    %cst_153 = arith.constant 1.000000e+00 : f32
    %344 = vector.broadcast %cst_153 : f32 to vector<8x8xf32>
    %345 = arith.subf %344, %343 : vector<8x8xf32>
    %346 = arith.mulf %328, %345 : vector<8x8xf32>
    %347 = math.exp %346 : vector<8x8xf32>
    %348 = arith.mulf %347, %305 : vector<8x8xf32>
    %cst_154 = arith.constant dense<0.000000e+00> : vector<8xf32>
    %349 = vector.multi_reduction <add>, %348, %cst_154 [1] : vector<8x8xf32> to vector<8xf32>
    %350 = vector.shape_cast %349 : vector<8xf32> to vector<8x1xf32>
    %cst_155 = arith.constant 1.000000e-01 : f32
    %351 = vector.broadcast %cst_155 : f32 to vector<1x8xf32>
    %352 = arith.mulf %341, %351 : vector<1x8xf32>
    %cst_156 = arith.constant 8.000000e+00 : f32
    %353 = vector.broadcast %cst_156 : f32 to vector<1x8xf32>
    %354 = arith.subf %353, %352 : vector<1x8xf32>
    %355 = arith.mulf %339, %354 : vector<1x8xf32>
    %356 = vector.shape_cast %355 : vector<1x8xf32> to vector<1x1x8xf32>
    %cst_157 = arith.constant dense<0.000000e+00> : vector<1xf32>
    %357 = vector.multi_reduction <add>, %356, %cst_157 [1, 2] : vector<1x1x8xf32> to vector<1xf32>
    %358 = vector.shape_cast %357 : vector<1xf32> to vector<1x1x1xf32>
    %359 = vector.extract %358[0, 0, 0] : f32 from vector<1x1x1xf32>
    %360 = vector.broadcast %359 : f32 to vector<1x1xf32>
    %361 = math.log %350 : vector<8x1xf32>
    %362 = vector.shape_cast %361 : vector<8x1xf32> to vector<1x8x1xf32>
    %cst_158 = arith.constant dense<0.000000e+00> : vector<1xf32>
    %363 = vector.multi_reduction <add>, %362, %cst_158 [1, 2] : vector<1x8x1xf32> to vector<1xf32>
    %364 = vector.shape_cast %363 : vector<1xf32> to vector<1x1x1xf32>
    %365 = vector.extract %364[0, 0, 0] : f32 from vector<1x1x1xf32>
    %366 = vector.broadcast %365 : f32 to vector<1x1xf32>
    %cst_159 = arith.constant 8.000000e+00 : f32
    %367 = vector.broadcast %cst_159 : f32 to vector<1x1xf32>
    %368 = arith.divf %366, %367 : vector<1x1xf32>
    %cst_160 = arith.constant 6.400000e+01 : f32
    %369 = vector.broadcast %cst_160 : f32 to vector<1x1xf32>
    %370 = arith.divf %360, %369 : vector<1x1xf32>
    %371 = arith.subf %368, %370 : vector<1x1xf32>
    %372 = arith.addf %324, %371 : vector<1x1xf32>
    %373 = tpu.transpose %323, [1, 0] : vector<8x128xf32> -> vector<128x8xf32>
    %cst_161 = arith.constant dense<0.000000e+00> : vector<8x8xf32>
    %374 = tpu.matmul %311, %373, %cst_161 {dimension_numbers = #tpu.dot_dimension_numbers<[1], [0], [0], [1], [0, 0, 1, 1], [], []>} : vector<8x128xf32>, vector<128x8xf32>, vector<8x8xf32> -> vector<8x8xf32>
    %cst_162 = arith.constant 14.2857141 : f32
    %375 = vector.broadcast %cst_162 : f32 to vector<8x8xf32>
    %376 = arith.mulf %374, %375 : vector<8x8xf32>
    %377 = tpu.transpose %116, [1, 0] : vector<8x128xf32> -> vector<128x8xf32>
    %cst_163 = arith.constant dense<0.000000e+00> : vector<8x8xf32>
    %378 = tpu.matmul %28, %377, %cst_163 {dimension_numbers = #tpu.dot_dimension_numbers<[1], [0], [0], [1], [0, 0, 1, 1], [], []>} : vector<8x128xf32>, vector<128x8xf32>, vector<8x8xf32> -> vector<8x8xf32>
    %cst_164 = arith.constant 0.000000e+00 : f32
    %379 = vector.broadcast %cst_164 : f32 to vector<8x8xf32>
    %380 = arith.subf %379, %378 : vector<8x8xf32>
    %381 = math.exp %380 : vector<8x8xf32>
    %cst_165 = arith.constant 1.000000e+00 : f32
    %382 = vector.broadcast %cst_165 : f32 to vector<8x8xf32>
    %383 = arith.addf %382, %381 : vector<8x8xf32>
    %384 = tpu.reciprocal %383 {approx = true} : vector<8x8xf32> -> vector<8x8xf32>
    %385 = arith.mulf %376, %303 : vector<8x8xf32>
    %cst_166 = arith.constant dense<0.000000e+00> : vector<8xf32>
    %386 = vector.multi_reduction <add>, %385, %cst_166 [0] : vector<8x8xf32> to vector<8xf32>
    %387 = vector.shape_cast %386 : vector<8xf32> to vector<1x8xf32>
    %cst_167 = arith.constant dense<0.000000e+00> : vector<8xf32>
    %388 = vector.multi_reduction <add>, %384, %cst_167 [0] : vector<8x8xf32> to vector<8xf32>
    %389 = vector.shape_cast %388 : vector<8xf32> to vector<1x8xf32>
    %cst_168 = arith.constant 5.000000e-02 : f32
    %390 = vector.broadcast %cst_168 : f32 to vector<8x8xf32>
    %391 = arith.mulf %384, %390 : vector<8x8xf32>
    %cst_169 = arith.constant 1.000000e+00 : f32
    %392 = vector.broadcast %cst_169 : f32 to vector<8x8xf32>
    %393 = arith.subf %392, %391 : vector<8x8xf32>
    %394 = arith.mulf %376, %393 : vector<8x8xf32>
    %395 = math.exp %394 : vector<8x8xf32>
    %396 = arith.mulf %395, %305 : vector<8x8xf32>
    %cst_170 = arith.constant dense<0.000000e+00> : vector<8xf32>
    %397 = vector.multi_reduction <add>, %396, %cst_170 [1] : vector<8x8xf32> to vector<8xf32>
    %398 = vector.shape_cast %397 : vector<8xf32> to vector<8x1xf32>
    %cst_171 = arith.constant 1.000000e-01 : f32
    %399 = vector.broadcast %cst_171 : f32 to vector<1x8xf32>
    %400 = arith.mulf %389, %399 : vector<1x8xf32>
    %cst_172 = arith.constant 8.000000e+00 : f32
    %401 = vector.broadcast %cst_172 : f32 to vector<1x8xf32>
    %402 = arith.subf %401, %400 : vector<1x8xf32>
    %403 = arith.mulf %387, %402 : vector<1x8xf32>
    %404 = vector.shape_cast %403 : vector<1x8xf32> to vector<1x1x8xf32>
    %cst_173 = arith.constant dense<0.000000e+00> : vector<1xf32>
    %405 = vector.multi_reduction <add>, %404, %cst_173 [1, 2] : vector<1x1x8xf32> to vector<1xf32>
    %406 = vector.shape_cast %405 : vector<1xf32> to vector<1x1x1xf32>
    %407 = vector.extract %406[0, 0, 0] : f32 from vector<1x1x1xf32>
    %408 = vector.broadcast %407 : f32 to vector<1x1xf32>
    %409 = math.log %398 : vector<8x1xf32>
    %410 = vector.shape_cast %409 : vector<8x1xf32> to vector<1x8x1xf32>
    %cst_174 = arith.constant dense<0.000000e+00> : vector<1xf32>
    %411 = vector.multi_reduction <add>, %410, %cst_174 [1, 2] : vector<1x8x1xf32> to vector<1xf32>
    %412 = vector.shape_cast %411 : vector<1xf32> to vector<1x1x1xf32>
    %413 = vector.extract %412[0, 0, 0] : f32 from vector<1x1x1xf32>
    %414 = vector.broadcast %413 : f32 to vector<1x1xf32>
    %cst_175 = arith.constant 8.000000e+00 : f32
    %415 = vector.broadcast %cst_175 : f32 to vector<1x1xf32>
    %416 = arith.divf %414, %415 : vector<1x1xf32>
    %cst_176 = arith.constant 6.400000e+01 : f32
    %417 = vector.broadcast %cst_176 : f32 to vector<1x1xf32>
    %418 = arith.divf %408, %417 : vector<1x1xf32>
    %419 = arith.subf %416, %418 : vector<1x1xf32>
    %420 = arith.addf %372, %419 : vector<1x1xf32>
    %421 = tpu.transpose %311, [1, 0] : vector<8x128xf32> -> vector<128x8xf32>
    %cst_177 = arith.constant dense<0.000000e+00> : vector<8x8xf32>
    %422 = tpu.matmul %317, %421, %cst_177 {dimension_numbers = #tpu.dot_dimension_numbers<[1], [0], [0], [1], [0, 0, 1, 1], [], []>} : vector<8x128xf32>, vector<128x8xf32>, vector<8x8xf32> -> vector<8x8xf32>
    %cst_178 = arith.constant 14.2857141 : f32
    %423 = vector.broadcast %cst_178 : f32 to vector<8x8xf32>
    %424 = arith.mulf %422, %423 : vector<8x8xf32>
    %425 = tpu.transpose %28, [1, 0] : vector<8x128xf32> -> vector<128x8xf32>
    %cst_179 = arith.constant dense<0.000000e+00> : vector<8x8xf32>
    %426 = tpu.matmul %94, %425, %cst_179 {dimension_numbers = #tpu.dot_dimension_numbers<[1], [0], [0], [1], [0, 0, 1, 1], [], []>} : vector<8x128xf32>, vector<128x8xf32>, vector<8x8xf32> -> vector<8x8xf32>
    %cst_180 = arith.constant 0.000000e+00 : f32
    %427 = vector.broadcast %cst_180 : f32 to vector<8x8xf32>
    %428 = arith.subf %427, %426 : vector<8x8xf32>
    %429 = math.exp %428 : vector<8x8xf32>
    %cst_181 = arith.constant 1.000000e+00 : f32
    %430 = vector.broadcast %cst_181 : f32 to vector<8x8xf32>
    %431 = arith.addf %430, %429 : vector<8x8xf32>
    %432 = tpu.reciprocal %431 {approx = true} : vector<8x8xf32> -> vector<8x8xf32>
    %433 = arith.mulf %424, %303 : vector<8x8xf32>
    %cst_182 = arith.constant dense<0.000000e+00> : vector<8xf32>
    %434 = vector.multi_reduction <add>, %433, %cst_182 [0] : vector<8x8xf32> to vector<8xf32>
    %435 = vector.shape_cast %434 : vector<8xf32> to vector<1x8xf32>
    %cst_183 = arith.constant dense<0.000000e+00> : vector<8xf32>
    %436 = vector.multi_reduction <add>, %432, %cst_183 [0] : vector<8x8xf32> to vector<8xf32>
    %437 = vector.shape_cast %436 : vector<8xf32> to vector<1x8xf32>
    %cst_184 = arith.constant 5.000000e-02 : f32
    %438 = vector.broadcast %cst_184 : f32 to vector<8x8xf32>
    %439 = arith.mulf %432, %438 : vector<8x8xf32>
    %cst_185 = arith.constant 1.000000e+00 : f32
    %440 = vector.broadcast %cst_185 : f32 to vector<8x8xf32>
    %441 = arith.subf %440, %439 : vector<8x8xf32>
    %442 = arith.mulf %424, %441 : vector<8x8xf32>
    %443 = math.exp %442 : vector<8x8xf32>
    %444 = arith.mulf %443, %305 : vector<8x8xf32>
    %cst_186 = arith.constant dense<0.000000e+00> : vector<8xf32>
    %445 = vector.multi_reduction <add>, %444, %cst_186 [1] : vector<8x8xf32> to vector<8xf32>
    %446 = vector.shape_cast %445 : vector<8xf32> to vector<8x1xf32>
    %cst_187 = arith.constant 1.000000e-01 : f32
    %447 = vector.broadcast %cst_187 : f32 to vector<1x8xf32>
    %448 = arith.mulf %437, %447 : vector<1x8xf32>
    %cst_188 = arith.constant 8.000000e+00 : f32
    %449 = vector.broadcast %cst_188 : f32 to vector<1x8xf32>
    %450 = arith.subf %449, %448 : vector<1x8xf32>
    %451 = arith.mulf %435, %450 : vector<1x8xf32>
    %452 = vector.shape_cast %451 : vector<1x8xf32> to vector<1x1x8xf32>
    %cst_189 = arith.constant dense<0.000000e+00> : vector<1xf32>
    %453 = vector.multi_reduction <add>, %452, %cst_189 [1, 2] : vector<1x1x8xf32> to vector<1xf32>
    %454 = vector.shape_cast %453 : vector<1xf32> to vector<1x1x1xf32>
    %455 = vector.extract %454[0, 0, 0] : f32 from vector<1x1x1xf32>
    %456 = vector.broadcast %455 : f32 to vector<1x1xf32>
    %457 = math.log %446 : vector<8x1xf32>
    %458 = vector.shape_cast %457 : vector<8x1xf32> to vector<1x8x1xf32>
    %cst_190 = arith.constant dense<0.000000e+00> : vector<1xf32>
    %459 = vector.multi_reduction <add>, %458, %cst_190 [1, 2] : vector<1x8x1xf32> to vector<1xf32>
    %460 = vector.shape_cast %459 : vector<1xf32> to vector<1x1x1xf32>
    %461 = vector.extract %460[0, 0, 0] : f32 from vector<1x1x1xf32>
    %462 = vector.broadcast %461 : f32 to vector<1x1xf32>
    %cst_191 = arith.constant 8.000000e+00 : f32
    %463 = vector.broadcast %cst_191 : f32 to vector<1x1xf32>
    %464 = arith.divf %462, %463 : vector<1x1xf32>
    %cst_192 = arith.constant 6.400000e+01 : f32
    %465 = vector.broadcast %cst_192 : f32 to vector<1x1xf32>
    %466 = arith.divf %456, %465 : vector<1x1xf32>
    %467 = arith.subf %464, %466 : vector<1x1xf32>
    %468 = arith.addf %420, %467 : vector<1x1xf32>
    %469 = tpu.transpose %311, [1, 0] : vector<8x128xf32> -> vector<128x8xf32>
    %cst_193 = arith.constant dense<0.000000e+00> : vector<8x8xf32>
    %470 = tpu.matmul %323, %469, %cst_193 {dimension_numbers = #tpu.dot_dimension_numbers<[1], [0], [0], [1], [0, 0, 1, 1], [], []>} : vector<8x128xf32>, vector<128x8xf32>, vector<8x8xf32> -> vector<8x8xf32>
    %cst_194 = arith.constant 14.2857141 : f32
    %471 = vector.broadcast %cst_194 : f32 to vector<8x8xf32>
    %472 = arith.mulf %470, %471 : vector<8x8xf32>
    %473 = tpu.transpose %28, [1, 0] : vector<8x128xf32> -> vector<128x8xf32>
    %cst_195 = arith.constant dense<0.000000e+00> : vector<8x8xf32>
    %474 = tpu.matmul %116, %473, %cst_195 {dimension_numbers = #tpu.dot_dimension_numbers<[1], [0], [0], [1], [0, 0, 1, 1], [], []>} : vector<8x128xf32>, vector<128x8xf32>, vector<8x8xf32> -> vector<8x8xf32>
    %cst_196 = arith.constant 0.000000e+00 : f32
    %475 = vector.broadcast %cst_196 : f32 to vector<8x8xf32>
    %476 = arith.subf %475, %474 : vector<8x8xf32>
    %477 = math.exp %476 : vector<8x8xf32>
    %cst_197 = arith.constant 1.000000e+00 : f32
    %478 = vector.broadcast %cst_197 : f32 to vector<8x8xf32>
    %479 = arith.addf %478, %477 : vector<8x8xf32>
    %480 = tpu.reciprocal %479 {approx = true} : vector<8x8xf32> -> vector<8x8xf32>
    %481 = arith.mulf %472, %303 : vector<8x8xf32>
    %cst_198 = arith.constant dense<0.000000e+00> : vector<8xf32>
    %482 = vector.multi_reduction <add>, %481, %cst_198 [0] : vector<8x8xf32> to vector<8xf32>
    %483 = vector.shape_cast %482 : vector<8xf32> to vector<1x8xf32>
    %cst_199 = arith.constant dense<0.000000e+00> : vector<8xf32>
    %484 = vector.multi_reduction <add>, %480, %cst_199 [0] : vector<8x8xf32> to vector<8xf32>
    %485 = vector.shape_cast %484 : vector<8xf32> to vector<1x8xf32>
    %cst_200 = arith.constant 5.000000e-02 : f32
    %486 = vector.broadcast %cst_200 : f32 to vector<8x8xf32>
    %487 = arith.mulf %480, %486 : vector<8x8xf32>
    %cst_201 = arith.constant 1.000000e+00 : f32
    %488 = vector.broadcast %cst_201 : f32 to vector<8x8xf32>
    %489 = arith.subf %488, %487 : vector<8x8xf32>
    %490 = arith.mulf %472, %489 : vector<8x8xf32>
    %491 = math.exp %490 : vector<8x8xf32>
    %492 = arith.mulf %491, %305 : vector<8x8xf32>
    %cst_202 = arith.constant dense<0.000000e+00> : vector<8xf32>
    %493 = vector.multi_reduction <add>, %492, %cst_202 [1] : vector<8x8xf32> to vector<8xf32>
    %494 = vector.shape_cast %493 : vector<8xf32> to vector<8x1xf32>
    %cst_203 = arith.constant 1.000000e-01 : f32
    %495 = vector.broadcast %cst_203 : f32 to vector<1x8xf32>
    %496 = arith.mulf %485, %495 : vector<1x8xf32>
    %cst_204 = arith.constant 8.000000e+00 : f32
    %497 = vector.broadcast %cst_204 : f32 to vector<1x8xf32>
    %498 = arith.subf %497, %496 : vector<1x8xf32>
    %499 = arith.mulf %483, %498 : vector<1x8xf32>
    %500 = vector.shape_cast %499 : vector<1x8xf32> to vector<1x1x8xf32>
    %cst_205 = arith.constant dense<0.000000e+00> : vector<1xf32>
    %501 = vector.multi_reduction <add>, %500, %cst_205 [1, 2] : vector<1x1x8xf32> to vector<1xf32>
    %502 = vector.shape_cast %501 : vector<1xf32> to vector<1x1x1xf32>
    %503 = vector.extract %502[0, 0, 0] : f32 from vector<1x1x1xf32>
    %504 = vector.broadcast %503 : f32 to vector<1x1xf32>
    %505 = math.log %494 : vector<8x1xf32>
    %506 = vector.shape_cast %505 : vector<8x1xf32> to vector<1x8x1xf32>
    %cst_206 = arith.constant dense<0.000000e+00> : vector<1xf32>
    %507 = vector.multi_reduction <add>, %506, %cst_206 [1, 2] : vector<1x8x1xf32> to vector<1xf32>
    %508 = vector.shape_cast %507 : vector<1xf32> to vector<1x1x1xf32>
    %509 = vector.extract %508[0, 0, 0] : f32 from vector<1x1x1xf32>
    %510 = vector.broadcast %509 : f32 to vector<1x1xf32>
    %cst_207 = arith.constant 8.000000e+00 : f32
    %511 = vector.broadcast %cst_207 : f32 to vector<1x1xf32>
    %512 = arith.divf %510, %511 : vector<1x1xf32>
    %cst_208 = arith.constant 6.400000e+01 : f32
    %513 = vector.broadcast %cst_208 : f32 to vector<1x1xf32>
    %514 = arith.divf %504, %513 : vector<1x1xf32>
    %515 = arith.subf %512, %514 : vector<1x1xf32>
    %516 = arith.addf %468, %515 : vector<1x1xf32>
    %cst_209 = arith.constant 4.000000e+00 : f32
    %517 = vector.broadcast %cst_209 : f32 to vector<1x1xf32>
    %518 = arith.divf %516, %517 : vector<1x1xf32>
    %519 = arith.mulf %37, %37 : vector<8x128xf32>
    %cst_210 = arith.constant dense<0.000000e+00> : vector<8xf32>
    %520 = vector.multi_reduction <add>, %519, %cst_210 [1] : vector<8x128xf32> to vector<8xf32>
    %521 = vector.shape_cast %520 : vector<8xf32> to vector<8x1xf32>
    %522 = math.rsqrt %521 : vector<8x1xf32>
    %523 = vector.broadcast %522 : vector<8x1xf32> to vector<8x128xf32>
    %524 = arith.mulf %37, %523 : vector<8x128xf32>
    %525 = arith.mulf %95, %95 : vector<8x128xf32>
    %cst_211 = arith.constant dense<0.000000e+00> : vector<8xf32>
    %526 = vector.multi_reduction <add>, %525, %cst_211 [1] : vector<8x128xf32> to vector<8xf32>
    %527 = vector.shape_cast %526 : vector<8xf32> to vector<8x1xf32>
    %528 = math.rsqrt %527 : vector<8x1xf32>
    %529 = vector.broadcast %528 : vector<8x1xf32> to vector<8x128xf32>
    %530 = arith.mulf %95, %529 : vector<8x128xf32>
    %531 = arith.mulf %117, %117 : vector<8x128xf32>
    %cst_212 = arith.constant dense<0.000000e+00> : vector<8xf32>
    %532 = vector.multi_reduction <add>, %531, %cst_212 [1] : vector<8x128xf32> to vector<8xf32>
    %533 = vector.shape_cast %532 : vector<8xf32> to vector<8x1xf32>
    %534 = math.rsqrt %533 : vector<8x1xf32>
    %535 = vector.broadcast %534 : vector<8x1xf32> to vector<8x128xf32>
    %536 = arith.mulf %117, %535 : vector<8x128xf32>
    %cst_213 = arith.constant 0.000000e+00 : f32
    %537 = vector.broadcast %cst_213 : f32 to vector<1x1xf32>
    %538 = tpu.transpose %530, [1, 0] : vector<8x128xf32> -> vector<128x8xf32>
    %cst_214 = arith.constant dense<0.000000e+00> : vector<8x8xf32>
    %539 = tpu.matmul %524, %538, %cst_214 {dimension_numbers = #tpu.dot_dimension_numbers<[1], [0], [0], [1], [0, 0, 1, 1], [], []>} : vector<8x128xf32>, vector<128x8xf32>, vector<8x8xf32> -> vector<8x8xf32>
    %cst_215 = arith.constant 14.2857141 : f32
    %540 = vector.broadcast %cst_215 : f32 to vector<8x8xf32>
    %541 = arith.mulf %539, %540 : vector<8x8xf32>
    %542 = tpu.transpose %94, [1, 0] : vector<8x128xf32> -> vector<128x8xf32>
    %cst_216 = arith.constant dense<0.000000e+00> : vector<8x8xf32>
    %543 = tpu.matmul %36, %542, %cst_216 {dimension_numbers = #tpu.dot_dimension_numbers<[1], [0], [0], [1], [0, 0, 1, 1], [], []>} : vector<8x128xf32>, vector<128x8xf32>, vector<8x8xf32> -> vector<8x8xf32>
    %cst_217 = arith.constant 0.000000e+00 : f32
    %544 = vector.broadcast %cst_217 : f32 to vector<8x8xf32>
    %545 = arith.subf %544, %543 : vector<8x8xf32>
    %546 = math.exp %545 : vector<8x8xf32>
    %cst_218 = arith.constant 1.000000e+00 : f32
    %547 = vector.broadcast %cst_218 : f32 to vector<8x8xf32>
    %548 = arith.addf %547, %546 : vector<8x8xf32>
    %549 = tpu.reciprocal %548 {approx = true} : vector<8x8xf32> -> vector<8x8xf32>
    %550 = arith.mulf %541, %303 : vector<8x8xf32>
    %cst_219 = arith.constant dense<0.000000e+00> : vector<8xf32>
    %551 = vector.multi_reduction <add>, %550, %cst_219 [0] : vector<8x8xf32> to vector<8xf32>
    %552 = vector.shape_cast %551 : vector<8xf32> to vector<1x8xf32>
    %cst_220 = arith.constant dense<0.000000e+00> : vector<8xf32>
    %553 = vector.multi_reduction <add>, %549, %cst_220 [0] : vector<8x8xf32> to vector<8xf32>
    %554 = vector.shape_cast %553 : vector<8xf32> to vector<1x8xf32>
    %cst_221 = arith.constant 5.000000e-02 : f32
    %555 = vector.broadcast %cst_221 : f32 to vector<8x8xf32>
    %556 = arith.mulf %549, %555 : vector<8x8xf32>
    %cst_222 = arith.constant 1.000000e+00 : f32
    %557 = vector.broadcast %cst_222 : f32 to vector<8x8xf32>
    %558 = arith.subf %557, %556 : vector<8x8xf32>
    %559 = arith.mulf %541, %558 : vector<8x8xf32>
    %560 = math.exp %559 : vector<8x8xf32>
    %561 = arith.mulf %560, %305 : vector<8x8xf32>
    %cst_223 = arith.constant dense<0.000000e+00> : vector<8xf32>
    %562 = vector.multi_reduction <add>, %561, %cst_223 [1] : vector<8x8xf32> to vector<8xf32>
    %563 = vector.shape_cast %562 : vector<8xf32> to vector<8x1xf32>
    %cst_224 = arith.constant 1.000000e-01 : f32
    %564 = vector.broadcast %cst_224 : f32 to vector<1x8xf32>
    %565 = arith.mulf %554, %564 : vector<1x8xf32>
    %cst_225 = arith.constant 8.000000e+00 : f32
    %566 = vector.broadcast %cst_225 : f32 to vector<1x8xf32>
    %567 = arith.subf %566, %565 : vector<1x8xf32>
    %568 = arith.mulf %552, %567 : vector<1x8xf32>
    %569 = vector.shape_cast %568 : vector<1x8xf32> to vector<1x1x8xf32>
    %cst_226 = arith.constant dense<0.000000e+00> : vector<1xf32>
    %570 = vector.multi_reduction <add>, %569, %cst_226 [1, 2] : vector<1x1x8xf32> to vector<1xf32>
    %571 = vector.shape_cast %570 : vector<1xf32> to vector<1x1x1xf32>
    %572 = vector.extract %571[0, 0, 0] : f32 from vector<1x1x1xf32>
    %573 = vector.broadcast %572 : f32 to vector<1x1xf32>
    %574 = math.log %563 : vector<8x1xf32>
    %575 = vector.shape_cast %574 : vector<8x1xf32> to vector<1x8x1xf32>
    %cst_227 = arith.constant dense<0.000000e+00> : vector<1xf32>
    %576 = vector.multi_reduction <add>, %575, %cst_227 [1, 2] : vector<1x8x1xf32> to vector<1xf32>
    %577 = vector.shape_cast %576 : vector<1xf32> to vector<1x1x1xf32>
    %578 = vector.extract %577[0, 0, 0] : f32 from vector<1x1x1xf32>
    %579 = vector.broadcast %578 : f32 to vector<1x1xf32>
    %cst_228 = arith.constant 8.000000e+00 : f32
    %580 = vector.broadcast %cst_228 : f32 to vector<1x1xf32>
    %581 = arith.divf %579, %580 : vector<1x1xf32>
    %cst_229 = arith.constant 6.400000e+01 : f32
    %582 = vector.broadcast %cst_229 : f32 to vector<1x1xf32>
    %583 = arith.divf %573, %582 : vector<1x1xf32>
    %584 = arith.subf %581, %583 : vector<1x1xf32>
    %585 = arith.addf %537, %584 : vector<1x1xf32>
    %586 = tpu.transpose %536, [1, 0] : vector<8x128xf32> -> vector<128x8xf32>
    %cst_230 = arith.constant dense<0.000000e+00> : vector<8x8xf32>
    %587 = tpu.matmul %524, %586, %cst_230 {dimension_numbers = #tpu.dot_dimension_numbers<[1], [0], [0], [1], [0, 0, 1, 1], [], []>} : vector<8x128xf32>, vector<128x8xf32>, vector<8x8xf32> -> vector<8x8xf32>
    %cst_231 = arith.constant 14.2857141 : f32
    %588 = vector.broadcast %cst_231 : f32 to vector<8x8xf32>
    %589 = arith.mulf %587, %588 : vector<8x8xf32>
    %590 = tpu.transpose %116, [1, 0] : vector<8x128xf32> -> vector<128x8xf32>
    %cst_232 = arith.constant dense<0.000000e+00> : vector<8x8xf32>
    %591 = tpu.matmul %36, %590, %cst_232 {dimension_numbers = #tpu.dot_dimension_numbers<[1], [0], [0], [1], [0, 0, 1, 1], [], []>} : vector<8x128xf32>, vector<128x8xf32>, vector<8x8xf32> -> vector<8x8xf32>
    %cst_233 = arith.constant 0.000000e+00 : f32
    %592 = vector.broadcast %cst_233 : f32 to vector<8x8xf32>
    %593 = arith.subf %592, %591 : vector<8x8xf32>
    %594 = math.exp %593 : vector<8x8xf32>
    %cst_234 = arith.constant 1.000000e+00 : f32
    %595 = vector.broadcast %cst_234 : f32 to vector<8x8xf32>
    %596 = arith.addf %595, %594 : vector<8x8xf32>
    %597 = tpu.reciprocal %596 {approx = true} : vector<8x8xf32> -> vector<8x8xf32>
    %598 = arith.mulf %589, %303 : vector<8x8xf32>
    %cst_235 = arith.constant dense<0.000000e+00> : vector<8xf32>
    %599 = vector.multi_reduction <add>, %598, %cst_235 [0] : vector<8x8xf32> to vector<8xf32>
    %600 = vector.shape_cast %599 : vector<8xf32> to vector<1x8xf32>
    %cst_236 = arith.constant dense<0.000000e+00> : vector<8xf32>
    %601 = vector.multi_reduction <add>, %597, %cst_236 [0] : vector<8x8xf32> to vector<8xf32>
    %602 = vector.shape_cast %601 : vector<8xf32> to vector<1x8xf32>
    %cst_237 = arith.constant 5.000000e-02 : f32
    %603 = vector.broadcast %cst_237 : f32 to vector<8x8xf32>
    %604 = arith.mulf %597, %603 : vector<8x8xf32>
    %cst_238 = arith.constant 1.000000e+00 : f32
    %605 = vector.broadcast %cst_238 : f32 to vector<8x8xf32>
    %606 = arith.subf %605, %604 : vector<8x8xf32>
    %607 = arith.mulf %589, %606 : vector<8x8xf32>
    %608 = math.exp %607 : vector<8x8xf32>
    %609 = arith.mulf %608, %305 : vector<8x8xf32>
    %cst_239 = arith.constant dense<0.000000e+00> : vector<8xf32>
    %610 = vector.multi_reduction <add>, %609, %cst_239 [1] : vector<8x8xf32> to vector<8xf32>
    %611 = vector.shape_cast %610 : vector<8xf32> to vector<8x1xf32>
    %cst_240 = arith.constant 1.000000e-01 : f32
    %612 = vector.broadcast %cst_240 : f32 to vector<1x8xf32>
    %613 = arith.mulf %602, %612 : vector<1x8xf32>
    %cst_241 = arith.constant 8.000000e+00 : f32
    %614 = vector.broadcast %cst_241 : f32 to vector<1x8xf32>
    %615 = arith.subf %614, %613 : vector<1x8xf32>
    %616 = arith.mulf %600, %615 : vector<1x8xf32>
    %617 = vector.shape_cast %616 : vector<1x8xf32> to vector<1x1x8xf32>
    %cst_242 = arith.constant dense<0.000000e+00> : vector<1xf32>
    %618 = vector.multi_reduction <add>, %617, %cst_242 [1, 2] : vector<1x1x8xf32> to vector<1xf32>
    %619 = vector.shape_cast %618 : vector<1xf32> to vector<1x1x1xf32>
    %620 = vector.extract %619[0, 0, 0] : f32 from vector<1x1x1xf32>
    %621 = vector.broadcast %620 : f32 to vector<1x1xf32>
    %622 = math.log %611 : vector<8x1xf32>
    %623 = vector.shape_cast %622 : vector<8x1xf32> to vector<1x8x1xf32>
    %cst_243 = arith.constant dense<0.000000e+00> : vector<1xf32>
    %624 = vector.multi_reduction <add>, %623, %cst_243 [1, 2] : vector<1x8x1xf32> to vector<1xf32>
    %625 = vector.shape_cast %624 : vector<1xf32> to vector<1x1x1xf32>
    %626 = vector.extract %625[0, 0, 0] : f32 from vector<1x1x1xf32>
    %627 = vector.broadcast %626 : f32 to vector<1x1xf32>
    %cst_244 = arith.constant 8.000000e+00 : f32
    %628 = vector.broadcast %cst_244 : f32 to vector<1x1xf32>
    %629 = arith.divf %627, %628 : vector<1x1xf32>
    %cst_245 = arith.constant 6.400000e+01 : f32
    %630 = vector.broadcast %cst_245 : f32 to vector<1x1xf32>
    %631 = arith.divf %621, %630 : vector<1x1xf32>
    %632 = arith.subf %629, %631 : vector<1x1xf32>
    %633 = arith.addf %585, %632 : vector<1x1xf32>
    %634 = tpu.transpose %524, [1, 0] : vector<8x128xf32> -> vector<128x8xf32>
    %cst_246 = arith.constant dense<0.000000e+00> : vector<8x8xf32>
    %635 = tpu.matmul %530, %634, %cst_246 {dimension_numbers = #tpu.dot_dimension_numbers<[1], [0], [0], [1], [0, 0, 1, 1], [], []>} : vector<8x128xf32>, vector<128x8xf32>, vector<8x8xf32> -> vector<8x8xf32>
    %cst_247 = arith.constant 14.2857141 : f32
    %636 = vector.broadcast %cst_247 : f32 to vector<8x8xf32>
    %637 = arith.mulf %635, %636 : vector<8x8xf32>
    %638 = tpu.transpose %36, [1, 0] : vector<8x128xf32> -> vector<128x8xf32>
    %cst_248 = arith.constant dense<0.000000e+00> : vector<8x8xf32>
    %639 = tpu.matmul %94, %638, %cst_248 {dimension_numbers = #tpu.dot_dimension_numbers<[1], [0], [0], [1], [0, 0, 1, 1], [], []>} : vector<8x128xf32>, vector<128x8xf32>, vector<8x8xf32> -> vector<8x8xf32>
    %cst_249 = arith.constant 0.000000e+00 : f32
    %640 = vector.broadcast %cst_249 : f32 to vector<8x8xf32>
    %641 = arith.subf %640, %639 : vector<8x8xf32>
    %642 = math.exp %641 : vector<8x8xf32>
    %cst_250 = arith.constant 1.000000e+00 : f32
    %643 = vector.broadcast %cst_250 : f32 to vector<8x8xf32>
    %644 = arith.addf %643, %642 : vector<8x8xf32>
    %645 = tpu.reciprocal %644 {approx = true} : vector<8x8xf32> -> vector<8x8xf32>
    %646 = arith.mulf %637, %303 : vector<8x8xf32>
    %cst_251 = arith.constant dense<0.000000e+00> : vector<8xf32>
    %647 = vector.multi_reduction <add>, %646, %cst_251 [0] : vector<8x8xf32> to vector<8xf32>
    %648 = vector.shape_cast %647 : vector<8xf32> to vector<1x8xf32>
    %cst_252 = arith.constant dense<0.000000e+00> : vector<8xf32>
    %649 = vector.multi_reduction <add>, %645, %cst_252 [0] : vector<8x8xf32> to vector<8xf32>
    %650 = vector.shape_cast %649 : vector<8xf32> to vector<1x8xf32>
    %cst_253 = arith.constant 5.000000e-02 : f32
    %651 = vector.broadcast %cst_253 : f32 to vector<8x8xf32>
    %652 = arith.mulf %645, %651 : vector<8x8xf32>
    %cst_254 = arith.constant 1.000000e+00 : f32
    %653 = vector.broadcast %cst_254 : f32 to vector<8x8xf32>
    %654 = arith.subf %653, %652 : vector<8x8xf32>
    %655 = arith.mulf %637, %654 : vector<8x8xf32>
    %656 = math.exp %655 : vector<8x8xf32>
    %657 = arith.mulf %656, %305 : vector<8x8xf32>
    %cst_255 = arith.constant dense<0.000000e+00> : vector<8xf32>
    %658 = vector.multi_reduction <add>, %657, %cst_255 [1] : vector<8x8xf32> to vector<8xf32>
    %659 = vector.shape_cast %658 : vector<8xf32> to vector<8x1xf32>
    %cst_256 = arith.constant 1.000000e-01 : f32
    %660 = vector.broadcast %cst_256 : f32 to vector<1x8xf32>
    %661 = arith.mulf %650, %660 : vector<1x8xf32>
    %cst_257 = arith.constant 8.000000e+00 : f32
    %662 = vector.broadcast %cst_257 : f32 to vector<1x8xf32>
    %663 = arith.subf %662, %661 : vector<1x8xf32>
    %664 = arith.mulf %648, %663 : vector<1x8xf32>
    %665 = vector.shape_cast %664 : vector<1x8xf32> to vector<1x1x8xf32>
    %cst_258 = arith.constant dense<0.000000e+00> : vector<1xf32>
    %666 = vector.multi_reduction <add>, %665, %cst_258 [1, 2] : vector<1x1x8xf32> to vector<1xf32>
    %667 = vector.shape_cast %666 : vector<1xf32> to vector<1x1x1xf32>
    %668 = vector.extract %667[0, 0, 0] : f32 from vector<1x1x1xf32>
    %669 = vector.broadcast %668 : f32 to vector<1x1xf32>
    %670 = math.log %659 : vector<8x1xf32>
    %671 = vector.shape_cast %670 : vector<8x1xf32> to vector<1x8x1xf32>
    %cst_259 = arith.constant dense<0.000000e+00> : vector<1xf32>
    %672 = vector.multi_reduction <add>, %671, %cst_259 [1, 2] : vector<1x8x1xf32> to vector<1xf32>
    %673 = vector.shape_cast %672 : vector<1xf32> to vector<1x1x1xf32>
    %674 = vector.extract %673[0, 0, 0] : f32 from vector<1x1x1xf32>
    %675 = vector.broadcast %674 : f32 to vector<1x1xf32>
    %cst_260 = arith.constant 8.000000e+00 : f32
    %676 = vector.broadcast %cst_260 : f32 to vector<1x1xf32>
    %677 = arith.divf %675, %676 : vector<1x1xf32>
    %cst_261 = arith.constant 6.400000e+01 : f32
    %678 = vector.broadcast %cst_261 : f32 to vector<1x1xf32>
    %679 = arith.divf %669, %678 : vector<1x1xf32>
    %680 = arith.subf %677, %679 : vector<1x1xf32>
    %681 = arith.addf %633, %680 : vector<1x1xf32>
    %682 = tpu.transpose %524, [1, 0] : vector<8x128xf32> -> vector<128x8xf32>
    %cst_262 = arith.constant dense<0.000000e+00> : vector<8x8xf32>
    %683 = tpu.matmul %536, %682, %cst_262 {dimension_numbers = #tpu.dot_dimension_numbers<[1], [0], [0], [1], [0, 0, 1, 1], [], []>} : vector<8x128xf32>, vector<128x8xf32>, vector<8x8xf32> -> vector<8x8xf32>
    %cst_263 = arith.constant 14.2857141 : f32
    %684 = vector.broadcast %cst_263 : f32 to vector<8x8xf32>
    %685 = arith.mulf %683, %684 : vector<8x8xf32>
    %686 = tpu.transpose %36, [1, 0] : vector<8x128xf32> -> vector<128x8xf32>
    %cst_264 = arith.constant dense<0.000000e+00> : vector<8x8xf32>
    %687 = tpu.matmul %116, %686, %cst_264 {dimension_numbers = #tpu.dot_dimension_numbers<[1], [0], [0], [1], [0, 0, 1, 1], [], []>} : vector<8x128xf32>, vector<128x8xf32>, vector<8x8xf32> -> vector<8x8xf32>
    %cst_265 = arith.constant 0.000000e+00 : f32
    %688 = vector.broadcast %cst_265 : f32 to vector<8x8xf32>
    %689 = arith.subf %688, %687 : vector<8x8xf32>
    %690 = math.exp %689 : vector<8x8xf32>
    %cst_266 = arith.constant 1.000000e+00 : f32
    %691 = vector.broadcast %cst_266 : f32 to vector<8x8xf32>
    %692 = arith.addf %691, %690 : vector<8x8xf32>
    %693 = tpu.reciprocal %692 {approx = true} : vector<8x8xf32> -> vector<8x8xf32>
    %694 = arith.mulf %685, %303 : vector<8x8xf32>
    %cst_267 = arith.constant dense<0.000000e+00> : vector<8xf32>
    %695 = vector.multi_reduction <add>, %694, %cst_267 [0] : vector<8x8xf32> to vector<8xf32>
    %696 = vector.shape_cast %695 : vector<8xf32> to vector<1x8xf32>
    %cst_268 = arith.constant dense<0.000000e+00> : vector<8xf32>
    %697 = vector.multi_reduction <add>, %693, %cst_268 [0] : vector<8x8xf32> to vector<8xf32>
    %698 = vector.shape_cast %697 : vector<8xf32> to vector<1x8xf32>
    %cst_269 = arith.constant 5.000000e-02 : f32
    %699 = vector.broadcast %cst_269 : f32 to vector<8x8xf32>
    %700 = arith.mulf %693, %699 : vector<8x8xf32>
    %cst_270 = arith.constant 1.000000e+00 : f32
    %701 = vector.broadcast %cst_270 : f32 to vector<8x8xf32>
    %702 = arith.subf %701, %700 : vector<8x8xf32>
    %703 = arith.mulf %685, %702 : vector<8x8xf32>
    %704 = math.exp %703 : vector<8x8xf32>
    %705 = arith.mulf %704, %305 : vector<8x8xf32>
    %cst_271 = arith.constant dense<0.000000e+00> : vector<8xf32>
    %706 = vector.multi_reduction <add>, %705, %cst_271 [1] : vector<8x8xf32> to vector<8xf32>
    %707 = vector.shape_cast %706 : vector<8xf32> to vector<8x1xf32>
    %cst_272 = arith.constant 1.000000e-01 : f32
    %708 = vector.broadcast %cst_272 : f32 to vector<1x8xf32>
    %709 = arith.mulf %698, %708 : vector<1x8xf32>
    %cst_273 = arith.constant 8.000000e+00 : f32
    %710 = vector.broadcast %cst_273 : f32 to vector<1x8xf32>
    %711 = arith.subf %710, %709 : vector<1x8xf32>
    %712 = arith.mulf %696, %711 : vector<1x8xf32>
    %713 = vector.shape_cast %712 : vector<1x8xf32> to vector<1x1x8xf32>
    %cst_274 = arith.constant dense<0.000000e+00> : vector<1xf32>
    %714 = vector.multi_reduction <add>, %713, %cst_274 [1, 2] : vector<1x1x8xf32> to vector<1xf32>
    %715 = vector.shape_cast %714 : vector<1xf32> to vector<1x1x1xf32>
    %716 = vector.extract %715[0, 0, 0] : f32 from vector<1x1x1xf32>
    %717 = vector.broadcast %716 : f32 to vector<1x1xf32>
    %718 = math.log %707 : vector<8x1xf32>
    %719 = vector.shape_cast %718 : vector<8x1xf32> to vector<1x8x1xf32>
    %cst_275 = arith.constant dense<0.000000e+00> : vector<1xf32>
    %720 = vector.multi_reduction <add>, %719, %cst_275 [1, 2] : vector<1x8x1xf32> to vector<1xf32>
    %721 = vector.shape_cast %720 : vector<1xf32> to vector<1x1x1xf32>
    %722 = vector.extract %721[0, 0, 0] : f32 from vector<1x1x1xf32>
    %723 = vector.broadcast %722 : f32 to vector<1x1xf32>
    %cst_276 = arith.constant 8.000000e+00 : f32
    %724 = vector.broadcast %cst_276 : f32 to vector<1x1xf32>
    %725 = arith.divf %723, %724 : vector<1x1xf32>
    %cst_277 = arith.constant 6.400000e+01 : f32
    %726 = vector.broadcast %cst_277 : f32 to vector<1x1xf32>
    %727 = arith.divf %717, %726 : vector<1x1xf32>
    %728 = arith.subf %725, %727 : vector<1x1xf32>
    %729 = arith.addf %681, %728 : vector<1x1xf32>
    %cst_278 = arith.constant 4.000000e+00 : f32
    %730 = vector.broadcast %cst_278 : f32 to vector<1x1xf32>
    %731 = arith.divf %729, %730 : vector<1x1xf32>
    %732 = arith.addf %518, %731 : vector<1x1xf32>
    %733 = vector.shape_cast %60 : vector<8x1xf32> to vector<1x8x1xf32>
    %cst_279 = arith.constant dense<0.000000e+00> : vector<1xf32>
    %734 = vector.multi_reduction <add>, %733, %cst_279 [1, 2] : vector<1x8x1xf32> to vector<1xf32>
    %735 = vector.shape_cast %734 : vector<1xf32> to vector<1x1x1xf32>
    %736 = vector.extract %735[0, 0, 0] : f32 from vector<1x1x1xf32>
    %737 = vector.broadcast %736 : f32 to vector<1x1xf32>
    %738 = vector.shape_cast %61 : vector<8x1xf32> to vector<1x8x1xf32>
    %cst_280 = arith.constant dense<0.000000e+00> : vector<1xf32>
    %739 = vector.multi_reduction <add>, %738, %cst_280 [1, 2] : vector<1x8x1xf32> to vector<1xf32>
    %740 = vector.shape_cast %739 : vector<1xf32> to vector<1x1x1xf32>
    %741 = vector.extract %740[0, 0, 0] : f32 from vector<1x1x1xf32>
    %742 = vector.broadcast %741 : f32 to vector<1x1xf32>
    %743 = arith.subf %67, %53 : vector<8x32xf32>
    %744 = arith.mulf %743, %743 : vector<8x32xf32>
    %745 = vector.shape_cast %744 : vector<8x32xf32> to vector<1x8x32xf32>
    %cst_281 = arith.constant dense<0.000000e+00> : vector<1xf32>
    %746 = vector.multi_reduction <add>, %745, %cst_281 [1, 2] : vector<1x8x32xf32> to vector<1xf32>
    %747 = vector.shape_cast %746 : vector<1xf32> to vector<1x1x1xf32>
    %748 = vector.extract %747[0, 0, 0] : f32 from vector<1x1x1xf32>
    %749 = vector.broadcast %748 : f32 to vector<1x1xf32>
    %cst_282 = arith.constant 2.560000e+02 : f32
    %750 = vector.broadcast %cst_282 : f32 to vector<1x1xf32>
    %751 = arith.divf %749, %750 : vector<1x1xf32>
    %752 = arith.divf %751, %737 : vector<1x1xf32>
    %753 = arith.subf %73, %59 : vector<8x48xf32>
    %754 = arith.mulf %753, %753 : vector<8x48xf32>
    %755 = vector.shape_cast %754 : vector<8x48xf32> to vector<1x8x48xf32>
    %cst_283 = arith.constant dense<0.000000e+00> : vector<1xf32>
    %756 = vector.multi_reduction <add>, %755, %cst_283 [1, 2] : vector<1x8x48xf32> to vector<1xf32>
    %757 = vector.shape_cast %756 : vector<1xf32> to vector<1x1x1xf32>
    %758 = vector.extract %757[0, 0, 0] : f32 from vector<1x1x1xf32>
    %759 = vector.broadcast %758 : f32 to vector<1x1xf32>
    %cst_284 = arith.constant 3.840000e+02 : f32
    %760 = vector.broadcast %cst_284 : f32 to vector<1x1xf32>
    %761 = arith.divf %759, %760 : vector<1x1xf32>
    %762 = arith.divf %761, %742 : vector<1x1xf32>
    %763 = arith.addf %752, %762 : vector<1x1xf32>
    %c0_285 = arith.constant 0 : index
    %c0_286 = arith.constant 0 : index
    %764 = vector.load %arg38[%c0_285, %c0_286] : memref<4x128xf32, #tpu.memory_space<vmem>>, vector<1x128xf32>
    %765 = vector.broadcast %764 : vector<1x128xf32> to vector<8x128xf32>
    %766 = arith.mulf %29, %765 : vector<8x128xf32>
    %cst_287 = arith.constant dense<0.000000e+00> : vector<8xf32>
    %767 = vector.multi_reduction <add>, %766, %cst_287 [1] : vector<8x128xf32> to vector<8xf32>
    %768 = vector.shape_cast %767 : vector<8xf32> to vector<8x1xf32>
    %c0_288 = arith.constant 0 : index
    %c0_289 = arith.constant 0 : index
    %769 = vector.load %arg39[%c0_288, %c0_289] : memref<4x1xf32, #tpu.memory_space<vmem>>, vector<1x1xf32>
    %770 = vector.broadcast %769 : vector<1x1xf32> to vector<8x1xf32>
    %771 = arith.addf %768, %770 : vector<8x1xf32>
    %c1 = arith.constant 1 : index
    %c0_290 = arith.constant 0 : index
    %772 = vector.load %arg38[%c1, %c0_290] : memref<4x128xf32, #tpu.memory_space<vmem>>, vector<1x128xf32>
    %773 = vector.broadcast %772 : vector<1x128xf32> to vector<8x128xf32>
    %774 = arith.mulf %95, %773 : vector<8x128xf32>
    %cst_291 = arith.constant dense<0.000000e+00> : vector<8xf32>
    %775 = vector.multi_reduction <add>, %774, %cst_291 [1] : vector<8x128xf32> to vector<8xf32>
    %776 = vector.shape_cast %775 : vector<8xf32> to vector<8x1xf32>
    %c1_292 = arith.constant 1 : index
    %c0_293 = arith.constant 0 : index
    %777 = vector.load %arg39[%c1_292, %c0_293] : memref<4x1xf32, #tpu.memory_space<vmem>>, vector<1x1xf32>
    %778 = vector.broadcast %777 : vector<1x1xf32> to vector<8x1xf32>
    %779 = arith.addf %776, %778 : vector<8x1xf32>
    %c2 = arith.constant 2 : index
    %c0_294 = arith.constant 0 : index
    %780 = vector.load %arg38[%c2, %c0_294] : memref<4x128xf32, #tpu.memory_space<vmem>>, vector<1x128xf32>
    %781 = vector.broadcast %780 : vector<1x128xf32> to vector<8x128xf32>
    %782 = arith.mulf %117, %781 : vector<8x128xf32>
    %cst_295 = arith.constant dense<0.000000e+00> : vector<8xf32>
    %783 = vector.multi_reduction <add>, %782, %cst_295 [1] : vector<8x128xf32> to vector<8xf32>
    %784 = vector.shape_cast %783 : vector<8xf32> to vector<8x1xf32>
    %c2_296 = arith.constant 2 : index
    %c0_297 = arith.constant 0 : index
    %785 = vector.load %arg39[%c2_296, %c0_297] : memref<4x1xf32, #tpu.memory_space<vmem>>, vector<1x1xf32>
    %786 = vector.broadcast %785 : vector<1x1xf32> to vector<8x1xf32>
    %787 = arith.addf %784, %786 : vector<8x1xf32>
    %c3 = arith.constant 3 : index
    %c0_298 = arith.constant 0 : index
    %788 = vector.load %arg38[%c3, %c0_298] : memref<4x128xf32, #tpu.memory_space<vmem>>, vector<1x128xf32>
    %789 = vector.broadcast %788 : vector<1x128xf32> to vector<8x128xf32>
    %790 = arith.mulf %37, %789 : vector<8x128xf32>
    %cst_299 = arith.constant dense<0.000000e+00> : vector<8xf32>
    %791 = vector.multi_reduction <add>, %790, %cst_299 [1] : vector<8x128xf32> to vector<8xf32>
    %792 = vector.shape_cast %791 : vector<8xf32> to vector<8x1xf32>
    %c3_300 = arith.constant 3 : index
    %c0_301 = arith.constant 0 : index
    %793 = vector.load %arg39[%c3_300, %c0_301] : memref<4x1xf32, #tpu.memory_space<vmem>>, vector<1x1xf32>
    %794 = vector.broadcast %793 : vector<1x1xf32> to vector<8x1xf32>
    %795 = arith.addf %792, %794 : vector<8x1xf32>
    %796 = arith.maximumf %771, %779 : vector<8x1xf32>
    %797 = arith.maximumf %787, %795 : vector<8x1xf32>
    %798 = arith.maximumf %796, %797 : vector<8x1xf32>
    %799 = arith.subf %771, %798 : vector<8x1xf32>
    %800 = math.exp %799 : vector<8x1xf32>
    %801 = arith.subf %779, %798 : vector<8x1xf32>
    %802 = math.exp %801 : vector<8x1xf32>
    %803 = arith.subf %787, %798 : vector<8x1xf32>
    %804 = math.exp %803 : vector<8x1xf32>
    %805 = arith.subf %795, %798 : vector<8x1xf32>
    %806 = math.exp %805 : vector<8x1xf32>
    %807 = arith.addf %800, %802 : vector<8x1xf32>
    %808 = arith.addf %807, %804 : vector<8x1xf32>
    %809 = arith.addf %808, %806 : vector<8x1xf32>
    %810 = tpu.reciprocal %809 {approx = true} : vector<8x1xf32> -> vector<8x1xf32>
    %811 = arith.mulf %800, %810 : vector<8x1xf32>
    %812 = arith.mulf %802, %810 : vector<8x1xf32>
    %813 = arith.mulf %804, %810 : vector<8x1xf32>
    %814 = arith.mulf %806, %810 : vector<8x1xf32>
    %815 = vector.broadcast %811 : vector<8x1xf32> to vector<8x128xf32>
    %816 = arith.mulf %815, %29 : vector<8x128xf32>
    %817 = vector.broadcast %812 : vector<8x1xf32> to vector<8x128xf32>
    %818 = arith.mulf %817, %95 : vector<8x128xf32>
    %819 = vector.broadcast %813 : vector<8x1xf32> to vector<8x128xf32>
    %820 = arith.mulf %819, %117 : vector<8x128xf32>
    %821 = vector.broadcast %814 : vector<8x1xf32> to vector<8x128xf32>
    %822 = arith.mulf %821, %37 : vector<8x128xf32>
    %823 = tpu.concatenate %816, %818, %820, %822 in 1 : vector<8x128xf32>, vector<8x128xf32>, vector<8x128xf32>, vector<8x128xf32> -> vector<8x512xf32>
    %c0_302 = arith.constant 0 : index
    %c0_303 = arith.constant 0 : index
    %824 = vector.load %arg37[%c0_302, %c0_303] : memref<4x128xf32, #tpu.memory_space<vmem>>, vector<1x128xf32>
    %825 = vector.broadcast %811 : vector<8x1xf32> to vector<8x128xf32>
    %826 = vector.broadcast %824 : vector<1x128xf32> to vector<8x128xf32>
    %827 = arith.mulf %825, %826 : vector<8x128xf32>
    %c1_304 = arith.constant 1 : index
    %c0_305 = arith.constant 0 : index
    %828 = vector.load %arg37[%c1_304, %c0_305] : memref<4x128xf32, #tpu.memory_space<vmem>>, vector<1x128xf32>
    %829 = vector.broadcast %812 : vector<8x1xf32> to vector<8x128xf32>
    %830 = vector.broadcast %828 : vector<1x128xf32> to vector<8x128xf32>
    %831 = arith.mulf %829, %830 : vector<8x128xf32>
    %832 = arith.addf %827, %831 : vector<8x128xf32>
    %c2_306 = arith.constant 2 : index
    %c0_307 = arith.constant 0 : index
    %833 = vector.load %arg37[%c2_306, %c0_307] : memref<4x128xf32, #tpu.memory_space<vmem>>, vector<1x128xf32>
    %834 = vector.broadcast %813 : vector<8x1xf32> to vector<8x128xf32>
    %835 = vector.broadcast %833 : vector<1x128xf32> to vector<8x128xf32>
    %836 = arith.mulf %834, %835 : vector<8x128xf32>
    %837 = arith.addf %832, %836 : vector<8x128xf32>
    %c3_308 = arith.constant 3 : index
    %c0_309 = arith.constant 0 : index
    %838 = vector.load %arg37[%c3_308, %c0_309] : memref<4x128xf32, #tpu.memory_space<vmem>>, vector<1x128xf32>
    %839 = vector.broadcast %814 : vector<8x1xf32> to vector<8x128xf32>
    %840 = vector.broadcast %838 : vector<1x128xf32> to vector<8x128xf32>
    %841 = arith.mulf %839, %840 : vector<8x128xf32>
    %842 = arith.addf %837, %841 : vector<8x128xf32>
    %c0_310 = arith.constant 0 : index
    %c0_311 = arith.constant 0 : index
    %843 = vector.load %arg36[%c0_310, %c0_311] : memref<512x128xbf16, #tpu.memory_space<vmem>>, vector<512x128xbf16>
    %844 = arith.truncf %823 : vector<8x512xf32> to vector<8x512xbf16>
    %cst_312 = arith.constant dense<0.000000e+00> : vector<8x128xf32>
    %845 = tpu.matmul %844, %843, %cst_312 {dimension_numbers = #tpu.dot_dimension_numbers<[1], [0], [0], [1], [0, 0, 1, 1], [], []>} : vector<8x512xbf16>, vector<512x128xbf16>, vector<8x128xf32> -> vector<8x128xf32>
    %846 = arith.addf %845, %842 : vector<8x128xf32>
    %847 = vector.shape_cast %811 : vector<8x1xf32> to vector<1x8x1xf32>
    %cst_313 = arith.constant dense<0.000000e+00> : vector<1xf32>
    %848 = vector.multi_reduction <add>, %847, %cst_313 [1, 2] : vector<1x8x1xf32> to vector<1xf32>
    %849 = vector.shape_cast %848 : vector<1xf32> to vector<1x1x1xf32>
    %850 = vector.extract %849[0, 0, 0] : f32 from vector<1x1x1xf32>
    %851 = vector.broadcast %850 : f32 to vector<1x1xf32>
    %852 = vector.shape_cast %812 : vector<8x1xf32> to vector<1x8x1xf32>
    %cst_314 = arith.constant dense<0.000000e+00> : vector<1xf32>
    %853 = vector.multi_reduction <add>, %852, %cst_314 [1, 2] : vector<1x8x1xf32> to vector<1xf32>
    %854 = vector.shape_cast %853 : vector<1xf32> to vector<1x1x1xf32>
    %855 = vector.extract %854[0, 0, 0] : f32 from vector<1x1x1xf32>
    %856 = vector.broadcast %855 : f32 to vector<1x1xf32>
    %857 = vector.shape_cast %813 : vector<8x1xf32> to vector<1x8x1xf32>
    %cst_315 = arith.constant dense<0.000000e+00> : vector<1xf32>
    %858 = vector.multi_reduction <add>, %857, %cst_315 [1, 2] : vector<1x8x1xf32> to vector<1xf32>
    %859 = vector.shape_cast %858 : vector<1xf32> to vector<1x1x1xf32>
    %860 = vector.extract %859[0, 0, 0] : f32 from vector<1x1x1xf32>
    %861 = vector.broadcast %860 : f32 to vector<1x1xf32>
    %862 = vector.shape_cast %814 : vector<8x1xf32> to vector<1x8x1xf32>
    %cst_316 = arith.constant dense<0.000000e+00> : vector<1xf32>
    %863 = vector.multi_reduction <add>, %862, %cst_316 [1, 2] : vector<1x8x1xf32> to vector<1xf32>
    %864 = vector.shape_cast %863 : vector<1xf32> to vector<1x1x1xf32>
    %865 = vector.extract %864[0, 0, 0] : f32 from vector<1x1x1xf32>
    %866 = vector.broadcast %865 : f32 to vector<1x1xf32>
    %867 = arith.addf %851, %856 : vector<1x1xf32>
    %868 = arith.addf %867, %861 : vector<1x1xf32>
    %869 = arith.addf %868, %866 : vector<1x1xf32>
    %cst_317 = arith.constant 2.500000e-01 : f32
    %870 = vector.broadcast %cst_317 : f32 to vector<1x1xf32>
    %871 = arith.mulf %869, %870 : vector<1x1xf32>
    %872 = arith.subf %851, %871 : vector<1x1xf32>
    %873 = arith.mulf %872, %872 : vector<1x1xf32>
    %874 = arith.subf %856, %871 : vector<1x1xf32>
    %875 = arith.mulf %874, %874 : vector<1x1xf32>
    %876 = arith.addf %873, %875 : vector<1x1xf32>
    %877 = arith.subf %861, %871 : vector<1x1xf32>
    %878 = arith.mulf %877, %877 : vector<1x1xf32>
    %879 = arith.addf %876, %878 : vector<1x1xf32>
    %880 = arith.subf %866, %871 : vector<1x1xf32>
    %881 = arith.mulf %880, %880 : vector<1x1xf32>
    %882 = arith.addf %879, %881 : vector<1x1xf32>
    %cst_318 = arith.constant 3.000000e+00 : f32
    %883 = vector.broadcast %cst_318 : f32 to vector<1x1xf32>
    %884 = arith.divf %882, %883 : vector<1x1xf32>
    %885 = math.sqrt %884 : vector<1x1xf32>
    %c0_319 = arith.constant 0 : index
    %c0_320 = arith.constant 0 : index
    %886 = vector.load %arg40[%c0_319, %c0_320] : memref<128x4xbf16, #tpu.memory_space<vmem>>, vector<128x4xbf16>
    %887 = arith.truncf %846 : vector<8x128xf32> to vector<8x128xbf16>
    %cst_321 = arith.constant dense<0.000000e+00> : vector<8x4xf32>
    %888 = tpu.matmul %887, %886, %cst_321 {dimension_numbers = #tpu.dot_dimension_numbers<[1], [0], [0], [1], [0, 0, 1, 1], [], []>} : vector<8x128xbf16>, vector<128x4xbf16>, vector<8x4xf32> -> vector<8x4xf32>
    %c0_322 = arith.constant 0 : index
    %c0_323 = arith.constant 0 : index
    %889 = vector.load %arg41[%c0_322, %c0_323] : memref<1x4xf32, #tpu.memory_space<vmem>>, vector<1x4xf32>
    %890 = vector.broadcast %889 : vector<1x4xf32> to vector<8x4xf32>
    %891 = arith.addf %888, %890 : vector<8x4xf32>
    %c0_324 = arith.constant 0 : index
    %c0_325 = arith.constant 0 : index
    %892 = vector.load %arg7[%c0_324, %c0_325] : memref<8x4xf32, #tpu.memory_space<vmem>>, vector<8x4xf32>
    %cst_326 = arith.constant 0.000000e+00 : f32
    %893 = vector.broadcast %cst_326 : f32 to vector<8x4xf32>
    %894 = arith.maximumf %891, %893 : vector<8x4xf32>
    %895 = arith.mulf %891, %892 : vector<8x4xf32>
    %896 = arith.subf %894, %895 : vector<8x4xf32>
    %897 = math.absf %891 : vector<8x4xf32>
    %cst_327 = arith.constant 0.000000e+00 : f32
    %898 = vector.broadcast %cst_327 : f32 to vector<8x4xf32>
    %899 = arith.subf %898, %897 : vector<8x4xf32>
    %900 = math.exp %899 : vector<8x4xf32>
    %cst_328 = arith.constant 1.000000e+00 : f32
    %901 = vector.broadcast %cst_328 : f32 to vector<8x4xf32>
    %902 = arith.addf %901, %900 : vector<8x4xf32>
    %903 = math.log %902 : vector<8x4xf32>
    %904 = arith.addf %896, %903 : vector<8x4xf32>
    %905 = vector.shape_cast %904 : vector<8x4xf32> to vector<1x8x4xf32>
    %cst_329 = arith.constant dense<0.000000e+00> : vector<1xf32>
    %906 = vector.multi_reduction <add>, %905, %cst_329 [1, 2] : vector<1x8x4xf32> to vector<1xf32>
    %907 = vector.shape_cast %906 : vector<1xf32> to vector<1x1x1xf32>
    %908 = vector.extract %907[0, 0, 0] : f32 from vector<1x1x1xf32>
    %909 = vector.broadcast %908 : f32 to vector<1x1xf32>
    %cst_330 = arith.constant 3.200000e+01 : f32
    %910 = vector.broadcast %cst_330 : f32 to vector<1x1xf32>
    %911 = arith.divf %909, %910 : vector<1x1xf32>
    %cst_331 = arith.constant 0.000000e+00 : f32
    %912 = vector.broadcast %cst_331 : f32 to vector<8x4xf32>
    %913 = arith.subf %912, %891 : vector<8x4xf32>
    %914 = math.exp %913 : vector<8x4xf32>
    %cst_332 = arith.constant 1.000000e+00 : f32
    %915 = vector.broadcast %cst_332 : f32 to vector<8x4xf32>
    %916 = arith.addf %915, %914 : vector<8x4xf32>
    %917 = tpu.reciprocal %916 {approx = true} : vector<8x4xf32> -> vector<8x4xf32>
    %c0_333 = arith.constant 0 : index
    %c0_334 = arith.constant 0 : index
    %918 = vector.load %arg42[%c0_333, %c0_334] : memref<8x4xf32, #tpu.memory_space<vmem>>, vector<8x4xf32>
    tpu.vector_store %arg42[%c0_333, %c0_334], %917 {strides = array<i32>} : memref<8x4xf32, #tpu.memory_space<vmem>>, vector<8x4xf32>,
    %cst_335 = arith.constant 2.000000e-01 : f32
    %919 = vector.broadcast %cst_335 : f32 to vector<1x1xf32>
    %920 = arith.mulf %919, %298 : vector<1x1xf32>
    %cst_336 = arith.constant 3.000000e-01 : f32
    %921 = vector.broadcast %cst_336 : f32 to vector<1x1xf32>
    %922 = arith.mulf %921, %732 : vector<1x1xf32>
    %923 = arith.addf %920, %922 : vector<1x1xf32>
    %cst_337 = arith.constant 5.000000e-01 : f32
    %924 = vector.broadcast %cst_337 : f32 to vector<1x1xf32>
    %925 = arith.mulf %924, %763 : vector<1x1xf32>
    %926 = arith.addf %923, %925 : vector<1x1xf32>
    %cst_338 = arith.constant 1.000000e-01 : f32
    %927 = vector.broadcast %cst_338 : f32 to vector<1x1xf32>
    %928 = arith.mulf %927, %885 : vector<1x1xf32>
    %929 = arith.addf %926, %928 : vector<1x1xf32>
    %930 = arith.addf %929, %911 : vector<1x1xf32>
    %931 = tpu.iota {dimensions = array<i32: 1>} : vector<1x8xi32>
    %cst_339 = arith.constant 0.000000e+00 : f32
    %932 = vector.broadcast %cst_339 : f32 to vector<1x8xf32>
    %c0_i32 = arith.constant 0 : i32
    %933 = vector.broadcast %c0_i32 : i32 to vector<1x8xi32>
    %934 = arith.cmpi eq, %931, %933 : vector<1x8xi32>
    %cst_340 = arith.constant 0.000000e+00 : f32
    %935 = vector.shape_cast %930 : vector<1x1xf32> to vector<1x1xf32>
    %936 = vector.broadcast %935 : vector<1x1xf32> to vector<1x8xf32>
    %937 = vector.broadcast %cst_340 : f32 to vector<1x8xf32>
    %938 = arith.select %934, %936, %937 : vector<1x8xi1>, vector<1x8xf32>
    %939 = arith.addf %932, %938 : vector<1x8xf32>
    %c1_i32 = arith.constant 1 : i32
    %940 = vector.broadcast %c1_i32 : i32 to vector<1x8xi32>
    %941 = arith.cmpi eq, %931, %940 : vector<1x8xi32>
    %cst_341 = arith.constant 0.000000e+00 : f32
    %942 = vector.shape_cast %298 : vector<1x1xf32> to vector<1x1xf32>
    %943 = vector.broadcast %942 : vector<1x1xf32> to vector<1x8xf32>
    %944 = vector.broadcast %cst_341 : f32 to vector<1x8xf32>
    %945 = arith.select %941, %943, %944 : vector<1x8xi1>, vector<1x8xf32>
    %946 = arith.addf %939, %945 : vector<1x8xf32>
    %c2_i32 = arith.constant 2 : i32
    %947 = vector.broadcast %c2_i32 : i32 to vector<1x8xi32>
    %948 = arith.cmpi eq, %931, %947 : vector<1x8xi32>
    %cst_342 = arith.constant 0.000000e+00 : f32
    %949 = vector.shape_cast %732 : vector<1x1xf32> to vector<1x1xf32>
    %950 = vector.broadcast %949 : vector<1x1xf32> to vector<1x8xf32>
    %951 = vector.broadcast %cst_342 : f32 to vector<1x8xf32>
    %952 = arith.select %948, %950, %951 : vector<1x8xi1>, vector<1x8xf32>
    %953 = arith.addf %946, %952 : vector<1x8xf32>
    %c3_i32 = arith.constant 3 : i32
    %954 = vector.broadcast %c3_i32 : i32 to vector<1x8xi32>
    %955 = arith.cmpi eq, %931, %954 : vector<1x8xi32>
    %cst_343 = arith.constant 0.000000e+00 : f32
    %956 = vector.shape_cast %763 : vector<1x1xf32> to vector<1x1xf32>
    %957 = vector.broadcast %956 : vector<1x1xf32> to vector<1x8xf32>
    %958 = vector.broadcast %cst_343 : f32 to vector<1x8xf32>
    %959 = arith.select %955, %957, %958 : vector<1x8xi1>, vector<1x8xf32>
    %960 = arith.addf %953, %959 : vector<1x8xf32>
    %c4_i32 = arith.constant 4 : i32
    %961 = vector.broadcast %c4_i32 : i32 to vector<1x8xi32>
    %962 = arith.cmpi eq, %931, %961 : vector<1x8xi32>
    %cst_344 = arith.constant 0.000000e+00 : f32
    %963 = vector.shape_cast %885 : vector<1x1xf32> to vector<1x1xf32>
    %964 = vector.broadcast %963 : vector<1x1xf32> to vector<1x8xf32>
    %965 = vector.broadcast %cst_344 : f32 to vector<1x8xf32>
    %966 = arith.select %962, %964, %965 : vector<1x8xi1>, vector<1x8xf32>
    %967 = arith.addf %960, %966 : vector<1x8xf32>
    %c5_i32 = arith.constant 5 : i32
    %968 = vector.broadcast %c5_i32 : i32 to vector<1x8xi32>
    %969 = arith.cmpi eq, %931, %968 : vector<1x8xi32>
    %cst_345 = arith.constant 0.000000e+00 : f32
    %970 = vector.shape_cast %911 : vector<1x1xf32> to vector<1x1xf32>
    %971 = vector.broadcast %970 : vector<1x1xf32> to vector<1x8xf32>
    %972 = vector.broadcast %cst_345 : f32 to vector<1x8xf32>
    %973 = arith.select %969, %971, %972 : vector<1x8xi1>, vector<1x8xf32>
    %974 = arith.addf %967, %973 : vector<1x8xf32>
    %c0_346 = arith.constant 0 : index
    %c0_347 = arith.constant 0 : index
    %975 = vector.load %arg43[%c0_346, %c0_347] : memref<1x8xf32, #tpu.memory_space<vmem>>, vector<1x8xf32>
    tpu.vector_store %arg43[%c0_346, %c0_347], %974 {strides = array<i32>} : memref<1x8xf32, #tpu.memory_space<vmem>>, vector<1x8xf32>,
    return
  }
  func.func @transform_0(%arg0: i32) -> (i32, i32) {
    %c0_i32 = arith.constant 0 : i32
    %c0_i32_0 = arith.constant 0 : i32
    %c0_i32_1 = arith.constant 0 : i32
    return %c0_i32, %c0_i32_0 : i32, i32
  }
  func.func @transform_1(%arg0: i32) -> (i32, i32) {
    %c0_i32 = arith.constant 0 : i32
    %c0_i32_0 = arith.constant 0 : i32
    %c0_i32_1 = arith.constant 0 : i32
    return %c0_i32, %c0_i32_0 : i32, i32
  }
  func.func @transform_2(%arg0: i32) -> (i32, i32) {
    %c0_i32 = arith.constant 0 : i32
    %c0_i32_0 = arith.constant 0 : i32
    %c0_i32_1 = arith.constant 0 : i32
    return %c0_i32, %c0_i32_0 : i32, i32
  }
  func.func @transform_3(%arg0: i32) -> (i32, i32) {
    %c0_i32 = arith.constant 0 : i32
    %c0_i32_0 = arith.constant 0 : i32
    %c0_i32_1 = arith.constant 0 : i32
    return %c0_i32, %c0_i32_0 : i32, i32
  }
  func.func @transform_4(%arg0: i32) -> (i32, i32) {
    %c0_i32 = arith.constant 0 : i32
    %c0_i32_0 = arith.constant 0 : i32
    %c0_i32_1 = arith.constant 0 : i32
    return %c0_i32, %c0_i32_0 : i32, i32
  }
  func.func @transform_5(%arg0: i32) -> (i32, i32) {
    %c0_i32 = arith.constant 0 : i32
    %c0_i32_0 = arith.constant 0 : i32
    %c0_i32_1 = arith.constant 0 : i32
    return %c0_i32, %c0_i32_0 : i32, i32
  }
  func.func @transform_6(%arg0: i32) -> (i32, i32) {
    %c0_i32 = arith.constant 0 : i32
    %c0_i32_0 = arith.constant 0 : i32
    %c0_i32_1 = arith.constant 0 : i32
    return %c0_i32, %c0_i32_0 : i32, i32
  }
  func.func @transform_7(%arg0: i32) -> (i32, i32) {
    %c0_i32 = arith.constant 0 : i32
    %c0_i32_0 = arith.constant 0 : i32
    %c0_i32_1 = arith.constant 0 : i32
    return %c0_i32, %c0_i32_0 : i32, i32
  }
  func.func @transform_8(%arg0: i32) -> (i32, i32) {
    %c0_i32 = arith.constant 0 : i32
    %c0_i32_0 = arith.constant 0 : i32
    %c0_i32_1 = arith.constant 0 : i32
    return %c0_i32, %c0_i32_0 : i32, i32
  }
  func.func @transform_9(%arg0: i32) -> (i32, i32) {
    %c0_i32 = arith.constant 0 : i32
    %c0_i32_0 = arith.constant 0 : i32
    %c0_i32_1 = arith.constant 0 : i32
    return %c0_i32, %c0_i32_0 : i32, i32
  }
  func.func @transform_10(%arg0: i32) -> (i32, i32) {
    %c0_i32 = arith.constant 0 : i32
    %c0_i32_0 = arith.constant 0 : i32
    %c0_i32_1 = arith.constant 0 : i32
    return %c0_i32, %c0_i32_0 : i32, i32
  }
  func.func @transform_11(%arg0: i32) -> (i32, i32) {
    %c0_i32 = arith.constant 0 : i32
    %c0_i32_0 = arith.constant 0 : i32
    %c0_i32_1 = arith.constant 0 : i32
    return %c0_i32, %c0_i32_0 : i32, i32
  }
  func.func @transform_12(%arg0: i32) -> (i32, i32) {
    %c0_i32 = arith.constant 0 : i32
    %c0_i32_0 = arith.constant 0 : i32
    %c0_i32_1 = arith.constant 0 : i32
    return %c0_i32, %c0_i32_0 : i32, i32
  }
  func.func @transform_13(%arg0: i32) -> (i32, i32) {
    %c0_i32 = arith.constant 0 : i32
    %c0_i32_0 = arith.constant 0 : i32
    %c0_i32_1 = arith.constant 0 : i32
    return %c0_i32, %c0_i32_0 : i32, i32
  }
  func.func @transform_14(%arg0: i32) -> (i32, i32) {
    %c0_i32 = arith.constant 0 : i32
    %c0_i32_0 = arith.constant 0 : i32
    %c0_i32_1 = arith.constant 0 : i32
    return %c0_i32, %c0_i32_0 : i32, i32
  }
  func.func @transform_15(%arg0: i32) -> (i32, i32) {
    %c0_i32 = arith.constant 0 : i32
    %c0_i32_0 = arith.constant 0 : i32
    %c0_i32_1 = arith.constant 0 : i32
    return %c0_i32, %c0_i32_0 : i32, i32
  }
  func.func @transform_16(%arg0: i32) -> (i32, i32) {
    %c0_i32 = arith.constant 0 : i32
    %c0_i32_0 = arith.constant 0 : i32
    %c0_i32_1 = arith.constant 0 : i32
    return %c0_i32, %c0_i32_0 : i32, i32
  }
  func.func @transform_17(%arg0: i32) -> (i32, i32) {
    %c0_i32 = arith.constant 0 : i32
    %c0_i32_0 = arith.constant 0 : i32
    %c0_i32_1 = arith.constant 0 : i32
    return %c0_i32, %c0_i32_0 : i32, i32
  }
  func.func @transform_18(%arg0: i32) -> (i32, i32) {
    %c0_i32 = arith.constant 0 : i32
    %c0_i32_0 = arith.constant 0 : i32
    %c0_i32_1 = arith.constant 0 : i32
    return %c0_i32, %c0_i32_0 : i32, i32
  }
  func.func @transform_19(%arg0: i32) -> (i32, i32) {
    %c0_i32 = arith.constant 0 : i32
    %c0_i32_0 = arith.constant 0 : i32
    %c0_i32_1 = arith.constant 0 : i32
    return %c0_i32, %c0_i32_0 : i32, i32
  }
  func.func @transform_20(%arg0: i32) -> (i32, i32) {
    %c0_i32 = arith.constant 0 : i32
    %c0_i32_0 = arith.constant 0 : i32
    %c0_i32_1 = arith.constant 0 : i32
    return %c0_i32, %c0_i32_0 : i32, i32
  }
  func.func @transform_21(%arg0: i32) -> (i32, i32) {
    %c0_i32 = arith.constant 0 : i32
    %c0_i32_0 = arith.constant 0 : i32
    %c0_i32_1 = arith.constant 0 : i32
    return %c0_i32, %c0_i32_0 : i32, i32
  }
  func.func @transform_22(%arg0: i32) -> (i32, i32) {
    %c0_i32 = arith.constant 0 : i32
    %c0_i32_0 = arith.constant 0 : i32
    %c0_i32_1 = arith.constant 0 : i32
    return %c0_i32, %c0_i32_0 : i32, i32
  }
  func.func @transform_23(%arg0: i32) -> (i32, i32) {
    %c0_i32 = arith.constant 0 : i32
    %c0_i32_0 = arith.constant 0 : i32
    %c0_i32_1 = arith.constant 0 : i32
    return %c0_i32, %c0_i32_0 : i32, i32
  }
  func.func @transform_24(%arg0: i32) -> (i32, i32) {
    %c0_i32 = arith.constant 0 : i32
    %c0_i32_0 = arith.constant 0 : i32
    %c0_i32_1 = arith.constant 0 : i32
    return %c0_i32, %c0_i32_0 : i32, i32
  }
  func.func @transform_25(%arg0: i32) -> (i32, i32) {
    %c0_i32 = arith.constant 0 : i32
    %c0_i32_0 = arith.constant 0 : i32
    %c0_i32_1 = arith.constant 0 : i32
    return %c0_i32, %c0_i32_0 : i32, i32
  }
  func.func @transform_26(%arg0: i32) -> (i32, i32) {
    %c0_i32 = arith.constant 0 : i32
    %c0_i32_0 = arith.constant 0 : i32
    %c0_i32_1 = arith.constant 0 : i32
    return %c0_i32, %c0_i32_0 : i32, i32
  }
  func.func @transform_27(%arg0: i32) -> (i32, i32) {
    %c0_i32 = arith.constant 0 : i32
    %c0_i32_0 = arith.constant 0 : i32
    %c0_i32_1 = arith.constant 0 : i32
    return %c0_i32, %c0_i32_0 : i32, i32
  }
  func.func @transform_28(%arg0: i32) -> (i32, i32) {
    %c0_i32 = arith.constant 0 : i32
    %c0_i32_0 = arith.constant 0 : i32
    %c0_i32_1 = arith.constant 0 : i32
    return %c0_i32, %c0_i32_0 : i32, i32
  }
  func.func @transform_29(%arg0: i32) -> (i32, i32) {
    %c0_i32 = arith.constant 0 : i32
    %c0_i32_0 = arith.constant 0 : i32
    %c0_i32_1 = arith.constant 0 : i32
    return %c0_i32, %c0_i32_0 : i32, i32
  }
  func.func @transform_30(%arg0: i32) -> (i32, i32) {
    %c0_i32 = arith.constant 0 : i32
    %c0_i32_0 = arith.constant 0 : i32
    %c0_i32_1 = arith.constant 0 : i32
    return %c0_i32, %c0_i32_0 : i32, i32
  }
  func.func @transform_31(%arg0: i32) -> (i32, i32) {
    %c0_i32 = arith.constant 0 : i32
    %c0_i32_0 = arith.constant 0 : i32
    %c0_i32_1 = arith.constant 0 : i32
    return %c0_i32, %c0_i32_0 : i32, i32
  }
  func.func @transform_32(%arg0: i32) -> (i32, i32) {
    %c0_i32 = arith.constant 0 : i32
    %c0_i32_0 = arith.constant 0 : i32
    %c0_i32_1 = arith.constant 0 : i32
    return %c0_i32, %c0_i32_0 : i32, i32
  }
  func.func @transform_33(%arg0: i32) -> (i32, i32) {
    %c0_i32 = arith.constant 0 : i32
    %c0_i32_0 = arith.constant 0 : i32
    %c0_i32_1 = arith.constant 0 : i32
    return %c0_i32, %c0_i32_0 : i32, i32
  }
  func.func @transform_34(%arg0: i32) -> (i32, i32) {
    %c0_i32 = arith.constant 0 : i32
    %c0_i32_0 = arith.constant 0 : i32
    %c0_i32_1 = arith.constant 0 : i32
    return %c0_i32, %c0_i32_0 : i32, i32
  }
  func.func @transform_35(%arg0: i32) -> (i32, i32) {
    %c0_i32 = arith.constant 0 : i32
    %c0_i32_0 = arith.constant 0 : i32
    %c0_i32_1 = arith.constant 0 : i32
    return %c0_i32, %c0_i32_0 : i32, i32
  }
  func.func @transform_36(%arg0: i32) -> (i32, i32) {
    %c0_i32 = arith.constant 0 : i32
    %c0_i32_0 = arith.constant 0 : i32
    %c0_i32_1 = arith.constant 0 : i32
    return %c0_i32, %c0_i32_0 : i32, i32
  }
  func.func @transform_37(%arg0: i32) -> (i32, i32) {
    %c0_i32 = arith.constant 0 : i32
    %c0_i32_0 = arith.constant 0 : i32
    %c0_i32_1 = arith.constant 0 : i32
    return %c0_i32, %c0_i32_0 : i32, i32
  }
  func.func @transform_38(%arg0: i32) -> (i32, i32) {
    %c0_i32 = arith.constant 0 : i32
    %c0_i32_0 = arith.constant 0 : i32
    %c0_i32_1 = arith.constant 0 : i32
    return %c0_i32, %c0_i32_0 : i32, i32
  }
  func.func @transform_39(%arg0: i32) -> (i32, i32) {
    %c0_i32 = arith.constant 0 : i32
    %c0_i32_0 = arith.constant 0 : i32
    %c0_i32_1 = arith.constant 0 : i32
    return %c0_i32, %c0_i32_0 : i32, i32
  }
  func.func @transform_40(%arg0: i32) -> (i32, i32) {
    %c0_i32 = arith.constant 0 : i32
    %c0_i32_0 = arith.constant 0 : i32
    %c0_i32_1 = arith.constant 0 : i32
    return %c0_i32, %c0_i32_0 : i32, i32
  }
  func.func @transform_41(%arg0: i32) -> (i32, i32) {
    %c0_i32 = arith.constant 0 : i32
    %c0_i32_0 = arith.constant 0 : i32
    %c0_i32_1 = arith.constant 0 : i32
    return %c0_i32, %c0_i32_0 : i32, i32
  }
  func.func @transform_42(%arg0: i32) -> (i32, i32) {
    %c0_i32 = arith.constant 0 : i32
    %c0_i32_0 = arith.constant 0 : i32
    %c0_i32_1 = arith.constant 0 : i32
    return %c0_i32, %c0_i32_0 : i32, i32
  }
}

</mosaic_0001>

<bundles_post_ra>
// kernel: tpu_custom_call.1
= control target key start
LH: loop header
LB: loop body
LE: loop exit
PB: predicated region body
PF: predicated region fallthrough
CT: control target
= control target key end

     0   :  { %s7587_s6 = smov 1   ;;  %s7588_s10 = smov 2   ;;  %s8878_s0 = inlined_call_operand.smem [shape: u32[43], index: -1, kind: input, shape index: {}] }
   0x1   :  { %s7641_s5 = sld [smem:[%s8878_s0]]   ;;  %s7589_s14 = smov 3  }
   0x2   :  { %s7646_s9 = sld [smem:[%s8878_s0 + %s7587_s6]]   ;;  %s7590_s18 = smov 4  }
   0x3   :  { %s7651_s13 = sld [smem:[%s8878_s0 + %s7588_s10]]   ;;  %s7591_s22 = smov 5  }
   0x4   :  { %s7656_s17 = sld [smem:[%s8878_s0 + %s7589_s14]]   ;;  %s7592_s26 = smov 6  }
   0x5   :  { %s7661_s21 = sld [smem:[%s8878_s0 + %s7590_s18]]   ;;  %s7593_s30 = smov 7  }
   0x6   :  { %s7666_s25 = sld [smem:[%s8878_s0 + %s7591_s22]]   ;;  %s7594_s4 = smov 8  }
   0x7   :  { %s7671_s29 = sld [smem:[%s8878_s0 + %s7592_s26]]   ;;  %s7595_s10 = smov 9  }
   0x8   :  { %s7676_s3 = sld [smem:[%s8878_s0 + %s7593_s30]]   ;;  %s7596_s15 = smov 10  }
   0x9   :  { %8891 = sst [smem:[#allocation5_spill]] %s7651_s13  ;;  %s7597_s20 = smov 11  }
   0xa   :  { %8892 = sst [smem:[#allocation6_spill]] %s7656_s17  ;;  %s7598_s26 = smov 12  }
   0xb   :  { %8893 = sst [smem:[#allocation7_spill]] %s7661_s21  ;;  %s7599_s1 = smov 13  }
   0xc   :  { %8894 = sst [smem:[#allocation8_spill]] %s7666_s25  ;;  %s7600_s7 = smov 14  }
   0xd   :  { %8895 = sst [smem:[#allocation9_spill]] %s7671_s29  ;;  %s7602_s22 = smov 16  }
   0xe   :  { %s7681_s8 = sld [smem:[%s8878_s0 + %s7594_s4]]   ;;  %s7603_s28 = smov 17  }
   0xf   :  { %s7686_s14 = sld [smem:[%s8878_s0 + %s7595_s10]]  }
  0x10   :  { %s7691_s19 = sld [smem:[%s8878_s0 + %s7596_s15]]   ;;  %s7601_s15 = smov 15  }
  0x11   :  { %s7696_s24 = sld [smem:[%s8878_s0 + %s7597_s20]]  }
  0x12   :  { %s7701_s30 = sld [smem:[%s8878_s0 + %s7598_s26]]  }
  0x13   :  { %s7706_s6 = sld [smem:[%s8878_s0 + %s7599_s1]]  }
  0x14   :  { %s7711_s12 = sld [smem:[%s8878_s0 + %s7600_s7]]   ;;  %s7604_s7 = smov 18  }
  0x15   :  { %s7716_s20 = sld [smem:[%s8878_s0 + %s7601_s15]]   ;;  %s7605_s15 = smov 19  }
  0x16   :  { %s7721_s27 = sld [smem:[%s8878_s0 + %s7602_s22]]   ;;  %s7606_s22 = smov 20  }
  0x17   :  { %s7726_s4 = sld [smem:[%s8878_s0 + %s7603_s28]]   ;;  %s7607_s28 = smov 21  }
  0x18   :  { %s7731_s29 = sld [smem:[%s8878_s0 + %s7604_s7]]   ;;  %s7608_s7 = smov 22  }
  0x19   :  { %s7736_s17 = sld [smem:[%s8878_s0 + %s7605_s15]]   ;;  %s7609_s15 = smov 23  }
  0x1a   :  { %s7741_s13 = sld [smem:[%s8878_s0 + %s7606_s22]]   ;;  %s7610_s22 = smov 24  }
  0x1c   :  { %8896 = sst [smem:[#allocation10_spill]] %s7721_s27 }
  0x1d   :  { %8897 = sst [smem:[#allocation11_spill]] %s7726_s4 }
  0x1e   :  { %8898 = sst [smem:[#allocation12_spill]] %s7731_s29 }
  0x1f   :  { %8899 = sst [smem:[#allocation13_spill]] %s7736_s17 }
  0x20   :  { %8900 = sst [smem:[#allocation14_spill]] %s7741_s13 }
  0x21   :  { %s7746_s4 = sld [smem:[%s8878_s0 + %s7607_s28]]   ;;  %s7611_s28 = smov 25  }
  0x22   :  { %s7751_s29 = sld [smem:[%s8878_s0 + %s7608_s7]]   ;;  %s7612_s7 = smov 26  }
  0x23   :  { %s7756_s17 = sld [smem:[%s8878_s0 + %s7609_s15]]   ;;  %s7613_s15 = smov 27  }
  0x24   :  { %s7761_s13 = sld [smem:[%s8878_s0 + %s7610_s22]]   ;;  %s7614_s22 = smov 28  }
  0x27   :  { %8901 = sst [smem:[#allocation15_spill]] %s7746_s4 }
  0x28   :  { %8902 = sst [smem:[#allocation16_spill]] %s7751_s29 }
  0x29   :  { %8903 = sst [smem:[#allocation17_spill]] %s7756_s17 }
  0x2a   :  { %8904 = sst [smem:[#allocation18_spill]] %s7761_s13 }
  0x2b   :  { %s7766_s4 = sld [smem:[%s8878_s0 + %s7611_s28]]   ;;  %s7615_s28 = smov 29  }
  0x2c   :  { %s7771_s29 = sld [smem:[%s8878_s0 + %s7612_s7]]   ;;  %s7616_s7 = smov 30  }
  0x2d   :  { %s7776_s17 = sld [smem:[%s8878_s0 + %s7613_s15]]   ;;  %s7617_s15 = smov 31  }
  0x2e   :  { %s7781_s13 = sld [smem:[%s8878_s0 + %s7614_s22]]   ;;  %s7618_s22 = smov 32  }
  0x31   :  { %8905 = sst [smem:[#allocation19_spill]] %s7766_s4 }
  0x32   :  { %8906 = sst [smem:[#allocation20_spill]] %s7771_s29 }
  0x33   :  { %8907 = sst [smem:[#allocation21_spill]] %s7776_s17 }
  0x34   :  { %8908 = sst [smem:[#allocation22_spill]] %s7781_s13 }
  0x35   :  { %s7786_s4 = sld [smem:[%s8878_s0 + %s7615_s28]]   ;;  %s7619_s28 = smov 33  }
  0x36   :  { %s7791_s29 = sld [smem:[%s8878_s0 + %s7616_s7]]   ;;  %s7620_s7 = smov 34  }
  0x37   :  { %s7796_s17 = sld [smem:[%s8878_s0 + %s7617_s15]]   ;;  %s7621_s15 = smov 35  }
  0x38   :  { %s7801_s13 = sld [smem:[%s8878_s0 + %s7618_s22]]   ;;  %s7622_s22 = smov 36  }
  0x39   :  { %s7806_s27 = sld [smem:[%s8878_s0 + %s7619_s28]]   ;;  %s7623_s28 = smov 37  }
  0x3a   :  { %s7816_s25 = sld [smem:[%s8878_s0 + %s7621_s15]]   ;;  %s7625_s15 = smov 39  }
  0x3b   :  { %s7826_s21 = sld [smem:[%s8878_s0 + %s7623_s28]]   ;;  %s7627_s28 = smov 41  }
  0x3c   :  { %8909 = sst [smem:[#allocation23_spill]] %s7791_s29 }
  0x3d   :  { %s7811_s29 = sld [smem:[%s8878_s0 + %s7620_s7]]   ;;  %s7624_s7 = smov 38  }
  0x3e   :  { %8910 = sst [smem:[#allocation24_spill]] %s7801_s13 }
  0x3f   :  { %8911 = sst [smem:[#allocation25_spill]] %s7806_s27 }
  0x40   :  { %8913 = sst [smem:[#allocation27_spill]] %s7816_s25 }
  0x41   :  { %s7821_s13 = sld [smem:[%s8878_s0 + %s7622_s22]]   ;;  %s7626_s22 = smov 40  }
  0x42   :  { %s7836_s25 = sld [smem:[%s8878_s0 + %s7625_s15]]  }
  0x43   :  { %8912 = sst [smem:[#allocation26_spill]] %s7811_s29 }
  0x44   :  { %s7831_s29 = sld [smem:[%s8878_s0 + %s7624_s7]]   ;;  %s7628_s7 = smov 42  }
  0x45   :  { %s7846_s27 = sld [smem:[%s8878_s0 + %s7627_s28]]  }
  0x47   :  { %8914 = sst [smem:[#allocation28_spill]] %s7821_s13 }
  0x48   :  { %s7841_s13 = sld [smem:[%s8878_s0 + %s7626_s22]]  }
  0x4a   :  { %8915 = sst [smem:[#allocation29_spill]] %s7831_s29 }
  0x4b   :  { %s7851_s29 = sld [smem:[%s8878_s0 + %s7628_s7]]  }
  0x4c   :  { %v7174_v0 = vld [vmem:[%s7676_s3] sm:$0xff]   ;;  %v7629_v1 = vmov 0.0   ;;  %v7175_v2 = vld [vmem:[%s7676_s3 + $0x8] sm:$0xff]   ;;  %vm7630_vm0 = vmmov 0   ;;  %v7631_v7 = vmov 0   ;;  %vm200_vm1 = vcmask 261120  }
  0x4d   :  { %6866 = vmatprep.subr.bf16.mxu0 %v7629_v1  ;;  %6870 = vmatprep.mubr.msk.bf16.mxu0 %vm7630_vm0, %v7629_v1  ;;  %v175_v3 = vld [vmem:[%s7641_s5] sm:$0xff]  ;;  %v247_v15 = vld [vmem:[%s7686_s14 + $0x10] sm:$0xff]  ;;  %v246_v34 = vld [vmem:[%s7686_s14 + $0x8] sm:$0xff]  ;;  %vm714_vm2 = vcmask 523264  }
  0x4e   :  { %6867 = vmatpush3.bf16.msra.mxu0 %v7174_v0  ;;  %v245_v4 = vld [vmem:[%s7686_s14] sm:$0xff]  ;;  %832 = vmatprep.mubr.bf16.mxu1 %v7631_v7  ;;  %v180_v10 = vpack.c.bf16 %v175_v3, %v175_v3  ;;  %v255_v16 = vld [vmem:[%s7686_s14 + $0x50] sm:$0xff]  ;;  %v254_v35 = vld [vmem:[%s7686_s14 + $0x48] sm:$0xff] }
  0x4f   :  { %v253_v5 = vld [vmem:[%s7686_s14 + $0x40] sm:$0xff]  ;;  %6868 = vmatprep.subr.bf16.mxu0 %v7629_v1  ;;  %7172 = vset.pattern.permute.xlu0 %v7631_v7  ;;  %v263_v17 = vld [vmem:[%s7686_s14 + $0x90] sm:$0xff]  ;;  %v6212_v18 = vcombine.high %v247_v15, %v255_v16  ;;  %v6211_v19 = vcombine.low %v247_v15, %v255_v16  ;;  %v6210_v42 = vcombine.high %v246_v34, %v254_v35  ;;  %v262_v43 = vld [vmem:[%s7686_s14 + $0x88] sm:$0xff] }
  0x50   :  { %v6208_v6 = vcombine.high %v245_v4, %v253_v5  ;;  %v261_v8 = vld [vmem:[%s7686_s14 + $0x80] sm:$0xff]  ;;  %7173 = vset.pattern.permute.xlu1 %v7631_v7  ;;  %v6207_v11 = vcombine.low %v245_v4, %v253_v5  ;;  %v271_v20 = vld [vmem:[%s7686_s14 + $0xd0] sm:$0xff]  ;;  %v270_v44 = vld [vmem:[%s7686_s14 + $0xc8] sm:$0xff]  ;;  %v6209_v48 = vcombine.low %v246_v34, %v254_v35 }
  0x51   :  { %v269_v9 = vld [vmem:[%s7686_s14 + $0xc0] sm:$0xff]  ;;  %v6228_v22 = vcombine.high %v263_v17, %v271_v20  ;;  %v279_v23 = vld [vmem:[%s7686_s14 + $0x110] sm:$0xff]  ;;  %800 = vmatprep.subr.bf16.mxu1 %v6212_v18  ;;  %v6227_v28 = vcombine.low %v263_v17, %v271_v20  ;;  %v6226_v51 = vcombine.high %v262_v43, %v270_v44  ;;  %v278_v52 = vld [vmem:[%s7686_s14 + $0x108] sm:$0xff]  ;;  %v6225_v57 = vcombine.low %v262_v43, %v270_v44 }
  0x52   :  { %6869 = vmatpush3.bf16.msra.mxu0 %v7175_v2  ;;  %v6224_v12 = vcombine.high %v261_v8, %v269_v9  ;;  %v277_v13 = vld [vmem:[%s7686_s14 + $0x100] sm:$0xff]  ;;  %v6223_v21 = vcombine.low %v261_v8, %v269_v9  ;;  %v287_v24 = vld [vmem:[%s7686_s14 + $0x150] sm:$0xff]  ;;  %801 = vmatpush1.bf16.msra.mxu1 %v6211_v19  ;;  %v286_v53 = vld [vmem:[%s7686_s14 + $0x148] sm:$0xff] }
  0x53   :  { %718 = vmatprep.subr.bf16.mxu0 %v6208_v6  ;;  %v285_v14 = vld [vmem:[%s7686_s14 + $0x140] sm:$0xff]  ;;  %802 = vmatprep.subr.bf16.mxu1 %v6228_v22  ;;  %v6244_v29 = vcombine.high %v279_v23, %v287_v24  ;;  %v295_v31 = vld [vmem:[%s7686_s14 + $0x190] sm:$0xff]  ;;  %v6243_v36 = vcombine.low %v279_v23, %v287_v24  ;;  %v294_v58 = vld [vmem:[%s7686_s14 + $0x188] sm:$0xff]  ;;  %v6242_v60 = vcombine.high %v278_v52, %v286_v53 }
  0x54   :  { %v6240_v25 = vcombine.high %v277_v13, %v285_v14  ;;  %v293_v26 = vld [vmem:[%s7686_s14 + $0x180] sm:$0xff]  ;;  %v6239_v30 = vcombine.low %v277_v13, %v285_v14  ;;  %v303_v32 = vld [vmem:[%s7686_s14 + $0x1d0] sm:$0xff]  ;;  %v302_v61 = vld [vmem:[%s7686_s14 + $0x1c8] sm:$0xff]  ;;  %v6241_v3 = vcombine.low %v278_v52, %v286_v53 }
  0x55   :  { %6871 = vmatmul.mubr.msk.bf16.vlgmr.msra.gmra.mrb[0].mxu0 %vm200_vm1, %v180_v10  ;;  %v301_v27 = vld [vmem:[%s7686_s14 + $0x1c0] sm:$0xff]  ;;  %v6260_v37 = vcombine.high %v295_v31, %v303_v32  ;;  %v6259_v45 = vcombine.low %v295_v31, %v303_v32  ;;  %v248_v4 = vld [vmem:[%s7686_s14 + $0x18] sm:$0xff]  ;;  %v6258_v6 = vcombine.high %v294_v58, %v302_v61  ;;  %v251_v9 = vld [vmem:[%s7686_s14 + $0x30] sm:$0xff] }
  0x56   :  { %719 = vmatpush1.bf16.msra.mxu0 %v6207_v11  ;;  %750 = vmatprep.mubr.bf16.mxu0 %v7631_v7  ;;  %v6256_v33 = vcombine.high %v293_v26, %v301_v27  ;;  %v6255_v38 = vcombine.low %v293_v26, %v301_v27  ;;  %v244_v39 = vld [vmem:[%s7646_s9] sm:$0xff]  ;;  %v256_v5 = vld [vmem:[%s7686_s14 + $0x58] sm:$0xff]  ;;  %v259_v10 = vld [vmem:[%s7686_s14 + $0x70] sm:$0xff] }
  0x57   :  { %720 = vmatprep.subr.bf16.mxu0 %v6224_v12  ;;  %803 = vmatpush1.bf16.msra.mxu1 %v6227_v28  ;;  %v249_v40 = vld [vmem:[%s7686_s14 + $0x20] sm:$0xff]  ;;  %v7888_v46 = vpack.c.bf16 %v244_v39, %v244_v39  ;;  %v6257_v12 = vcombine.low %v294_v58, %v302_v61  ;;  %v264_v13 = vld [vmem:[%s7686_s14 + $0x98] sm:$0xff]  ;;  %v6214_v15 = vcombine.high %v248_v4, %v256_v5  ;;  %v267_v17 = vld [vmem:[%s7686_s14 + $0xb0] sm:$0xff] }
  0x58   :  { %804 = vmatprep.subr.bf16.mxu1 %v6244_v29  ;;  %v257_v41 = vld [vmem:[%s7686_s14 + $0x60] sm:$0xff]  ;;  %v272_v14 = vld [vmem:[%s7686_s14 + $0xd8] sm:$0xff]  ;;  %v275_v18 = vld [vmem:[%s7686_s14 + $0xf0] sm:$0xff]  ;;  %v6220_v19 = vcombine.high %v251_v9, %v259_v10  ;;  %v6213_v20 = vcombine.low %v248_v4, %v256_v5  ;;  %v6219_v24 = vcombine.low %v251_v9, %v259_v10 }
  0x59   :  { %v6216_v47 = vcombine.high %v249_v40, %v257_v41  ;;  %v265_v49 = vld [vmem:[%s7686_s14 + $0xa0] sm:$0xff]  ;;  %v6215_v54 = vcombine.low %v249_v40, %v257_v41  ;;  %v288_v22 = vld [vmem:[%s7686_s14 + $0x158] sm:$0xff]  ;;  %v6230_v23 = vcombine.high %v264_v13, %v272_v14  ;;  %v291_v26 = vld [vmem:[%s7686_s14 + $0x170] sm:$0xff]  ;;  %v6236_v27 = vcombine.high %v267_v17, %v275_v18 }
  0x5a   :  { %721 = vmatpush1.bf16.msra.mxu0 %v6223_v21  ;;  %v273_v50 = vld [vmem:[%s7686_s14 + $0xe0] sm:$0xff]  ;;  %v280_v21 = vld [vmem:[%s7686_s14 + $0x118] sm:$0xff]  ;;  %v6229_v28 = vcombine.low %v264_v13, %v272_v14  ;;  %v6235_v32 = vcombine.low %v267_v17, %v275_v18  ;;  %v307_v34 = vld [vmem:[%s7686_s14 + $0x1f0] sm:$0xff] }
  0x5b   :  { %722 = vmatprep.subr.bf16.mxu0 %v6240_v25  ;;  %805 = vmatpush1.bf16.msra.mxu1 %v6243_v36  ;;  %v6232_v55 = vcombine.high %v265_v49, %v273_v50  ;;  %v281_v56 = vld [vmem:[%s7686_s14 + $0x120] sm:$0xff]  ;;  %v6231_v62 = vcombine.low %v265_v49, %v273_v50  ;;  %v283_v25 = vld [vmem:[%s7686_s14 + $0x130] sm:$0xff]  ;;  %v296_v29 = vld [vmem:[%s7686_s14 + $0x198] sm:$0xff]  ;;  %v6246_v31 = vcombine.high %v280_v21, %v288_v22 }
  0x5c   :  { %806 = vmatprep.subr.bf16.mxu1 %v6260_v37  ;;  %v289_v59 = vld [vmem:[%s7686_s14 + $0x160] sm:$0xff]  ;;  %v6252_v35 = vcombine.high %v283_v25, %v291_v26  ;;  %v6245_v36 = vcombine.low %v280_v21, %v288_v22  ;;  %v250_v37 = vld [vmem:[%s7686_s14 + $0x28] sm:$0xff]  ;;  %v6251_v40 = vcombine.low %v283_v25, %v291_v26  ;;  %v252_v61 = vld [vmem:[%s7686_s14 + $0x38] sm:$0xff] }
  0x5d   :  { %v297_v63 = vld [vmem:[%s7686_s14 + $0x1a0] sm:$0xff]  ;;  %v6248_v2 = vcombine.high %v281_v56, %v289_v59  ;;  %v6247_v8 = vcombine.low %v281_v56, %v289_v59  ;;  %v266_v43 = vld [vmem:[%s7686_s14 + $0xa8] sm:$0xff]  ;;  %v7180_v17 = vld [vmem:[%s7696_s24 + $0x50] sm:$0xff]  }
  0x5e   :  { %723 = vmatpush1.bf16.msra.mxu0 %v6239_v30  ;;  %v305_v0 = vld [vmem:[%s7686_s14 + $0x1e0] sm:$0xff]  ;;  %v304_v30 = vld [vmem:[%s7686_s14 + $0x1d8] sm:$0xff]  ;;  %v274_v44 = vld [vmem:[%s7686_s14 + $0xe8] sm:$0xff] }
  0x5f   :  { %724 = vmatprep.subr.bf16.mxu0 %v6256_v33  ;;  %807 = vmatpush1.bf16.msra.mxu1 %v6259_v45  ;;  %v6264_v11 = vcombine.high %v297_v63, %v305_v0  ;;  %v6263_v16 = vcombine.low %v297_v63, %v305_v0  ;;  %v299_v33 = vld [vmem:[%s7686_s14 + $0x1b0] sm:$0xff]  ;;  %v6262_v39 = vcombine.high %v296_v29, %v304_v30  ;;  %v282_v50 = vld [vmem:[%s7686_s14 + $0x128] sm:$0xff]  ;;  %v7177_v52 = vld [vmem:[%s7696_s24] sm:$0xff]  }
  0x60   :  { %882 = vmatprep.subr.bf16.mxu1 %v6216_v47  ;;  %v6268_v41 = vcombine.high %v299_v33, %v307_v34  ;;  %v7176_v47 = vld [vmem:[%s7696_s24 + $0x40] sm:$0xff]   ;;  %v6234_v53 = vcombine.high %v266_v43, %v274_v44  ;;  %v298_v56 = vld [vmem:[%s7686_s14 + $0x1a8] sm:$0xff]  ;;  %v7181_v18 = vld [vmem:[%s7696_s24 + $0x10] sm:$0xff]  }
  0x61   :  { %v7179_v58 = vld [vmem:[%s7696_s24 + $0x8] sm:$0xff]   ;;  %v7184_v21 = vld [vmem:[%s7696_s24 + $0x60] sm:$0xff]  }
  0x62   :  { %725 = vmatpush1.bf16.msra.mxu0 %v6255_v38  ;;  %6273 = vmatmul.mubr.msk.bf16.vlgmr.msra.gmra.mrb[0].mxu1 %vm714_vm2, %v7888_v46  ;;  %v258_v38 = vld [vmem:[%s7686_s14 + $0x68] sm:$0xff]  ;;  %v7185_v22 = vld [vmem:[%s7696_s24 + $0xc0] sm:$0xff]  }
  0x63   :  { %759 = vmatprep.subr.bf16.mxu0 %v6210_v42  ;;  %883 = vmatpush1.bf16.msra.mxu1 %v6215_v54  ;;  %v6261_v42 = vcombine.low %v296_v29, %v304_v30  ;;  %v6218_v45 = vcombine.high %v250_v37, %v258_v38  ;;  %v6217_v49 = vcombine.low %v250_v37, %v258_v38  ;;  %v7178_v54 = vld [vmem:[%s7696_s24 + $0x48] sm:$0xff]   ;;  %v7193_v29 = vld [vmem:[%s7696_s24 + $0xd0] sm:$0xff]   ;;  %v7201_v37 = vld [vmem:[%s7696_s24 + $0x140] sm:$0xff]  }
  0x64   :  { %914 = vmatprep.mubr.bf16.mxu1 %v7631_v7  ;;  %884 = vmatprep.subr.bf16.mxu1 %v6232_v55  ;;  %v6233_v55 = vcombine.low %v266_v43, %v274_v44  ;;  %v7189_v25 = vld [vmem:[%s7696_s24 + $0xc8] sm:$0xff]   ;;  %v7194_v30 = vld [vmem:[%s7696_s24 + $0x30] sm:$0xff]   ;;  %v7202_v38 = vld [vmem:[%s7696_s24 + $0xa0] sm:$0xff]  }
  0x65   :  { %6271 = vmatmul.mubr.msk.bf16.vlgmr.msra.gmra.mrb[4].mxu0 %vm714_vm2, %v7888_v46  ;;  %v7191_v26 = vld [vmem:[%s7696_s24 + $0x88] sm:$0xff]   ;;  %v7212_v43 = vld [vmem:[%s7696_s24 + $0xf8] sm:$0xff]  }
  0x66   :  { %760 = vmatpush1.bf16.msra.mxu0 %v6209_v48  ;;  %791 = vmatprep.mubr.bf16.mxu0 %v7631_v7  ;;  %v6267_v48 = vcombine.low %v299_v33, %v307_v34  ;;  %v7197_v33 = vld [vmem:[%s7696_s24 + $0xd8] sm:$0xff]  }
  0x67   :  { %761 = vmatprep.subr.bf16.mxu0 %v6226_v51  ;;  %885 = vmatpush1.bf16.msra.mxu1 %v6231_v62  ;;  %v290_v51 = vld [vmem:[%s7686_s14 + $0x168] sm:$0xff]  ;;  %v260_v62 = vld [vmem:[%s7686_s14 + $0x78] sm:$0xff] }
  0x68   :  { %886 = vmatprep.subr.bf16.mxu1 %v6248_v2  ;;  %v6250_v59 = vcombine.high %v282_v50, %v290_v51  ;;  %v268_v2 = vld [vmem:[%s7686_s14 + $0xb8] sm:$0xff]  ;;  %v6222_v4 = vcombine.high %v252_v61, %v260_v62  ;;  %v6221_v5 = vcombine.low %v252_v61, %v260_v62 }
  0x69   :  { %v7198_v34 = vld [vmem:[%s7696_s24 + $0x38] sm:$0xff]  }
  0x6a   :  { %762 = vmatpush1.bf16.msra.mxu0 %v6225_v57  ;;  %v306_v57 = vld [vmem:[%s7686_s14 + $0x1e8] sm:$0xff]  ;;  %v7214_v44 = vld [vmem:[%s7696_s24 + $0xb8] sm:$0xff]  }
  0x6b   :  { %763 = vmatprep.subr.bf16.mxu0 %v6242_v60  ;;  %887 = vmatpush1.bf16.msra.mxu1 %v6247_v8  ;;  %v6249_v60 = vcombine.low %v282_v50, %v290_v51  ;;  %v6266_v63 = vcombine.high %v298_v56, %v306_v57  ;;  %v6265_v0 = vcombine.low %v298_v56, %v306_v57  ;;  %v292_v8 = vld [vmem:[%s7686_s14 + $0x178] sm:$0xff]  ;;  %v7993_v50 = vld [vmem:[%s7691_s19 + $0x8] sm:$0xff] }
  0x6c   :  { %888 = vmatprep.subr.bf16.mxu1 %v6264_v11  ;;  %v300_v11 = vld [vmem:[%s7686_s14 + $0x1b8] sm:$0xff] }
  0x6e   :  { %764 = vmatpush1.bf16.msra.mxu0 %v6241_v3  ;;  %v276_v3 = vld [vmem:[%s7686_s14 + $0xf8] sm:$0xff] }
  0x6f   :  { %765 = vmatprep.subr.bf16.mxu0 %v6258_v6  ;;  %889 = vmatpush1.bf16.msra.mxu1 %v6263_v16  ;;  %v284_v6 = vld [vmem:[%s7686_s14 + $0x138] sm:$0xff]  ;;  %v6238_v9 = vcombine.high %v268_v2, %v276_v3  ;;  %v6237_v10 = vcombine.low %v268_v2, %v276_v3 }
  0x70   :  { %964 = vmatprep.subr.bf16.mxu1 %v6220_v19  ;;  %v6254_v13 = vcombine.high %v284_v6, %v292_v8  ;;  %v6253_v14 = vcombine.low %v284_v6, %v292_v8  ;;  %v7182_v19 = vld [vmem:[%s7696_s24 + $0x58] sm:$0xff]  }
  0x72   :  { %766 = vmatpush1.bf16.msra.mxu0 %v6257_v12  ;;  %6275 = vmatmul.mubr.msk.bf16.vlgmr.msra.gmra.mrb[4].mxu1 %vm714_vm2, %v7888_v46  ;;  %v308_v12 = vld [vmem:[%s7686_s14 + $0x1f8] sm:$0xff] }
  0x73   :  { %841 = vmatprep.subr.bf16.mxu0 %v6214_v15  ;;  %965 = vmatpush1.bf16.msra.mxu1 %v6219_v24  ;;  %v6270_v15 = vcombine.high %v300_v11, %v308_v12  ;;  %v6269_v16 = vcombine.low %v300_v11, %v308_v12  ;;  %v7186_v24 = vld [vmem:[%s7696_s24 + $0x20] sm:$0xff]  }
  0x74   :  { %996 = vmatprep.mubr.bf16.mxu1 %v7631_v7  ;;  %966 = vmatprep.subr.bf16.mxu1 %v6236_v27  ;;  %v7190_v27 = vld [vmem:[%s7696_s24 + $0x28] sm:$0xff]  }
  0x75   :  { %6272 = vmatmul.mubr.msk.bf16.vlgmr.msra.gmra.mrb[8].mxu0 %vm714_vm2, %v7888_v46 }
  0x76   :  { %842 = vmatpush1.bf16.msra.mxu0 %v6213_v20  ;;  %873 = vmatprep.mubr.bf16.mxu0 %v7631_v7  ;;  %v7183_v20 = vld [vmem:[%s7696_s24 + $0x18] sm:$0xff]  }
  0x77   :  { %843 = vmatprep.subr.bf16.mxu0 %v6230_v23  ;;  %967 = vmatpush1.bf16.msra.mxu1 %v6235_v32  ;;  %v7187_v23 = vld [vmem:[%s7696_s24 + $0x80] sm:$0xff]   ;;  %v7196_v32 = vld [vmem:[%s7696_s24 + $0x78] sm:$0xff]  }
  0x78   :  { %968 = vmatprep.subr.bf16.mxu1 %v6252_v35  ;;  %v7199_v35 = vld [vmem:[%s7696_s24 + $0x98] sm:$0xff]  }
  0x7a   :  { %844 = vmatpush1.bf16.msra.mxu0 %v6229_v28  ;;  %v7192_v28 = vld [vmem:[%s7696_s24 + $0x70] sm:$0xff]  }
  0x7b   :  { %845 = vmatprep.subr.bf16.mxu0 %v6246_v31  ;;  %969 = vmatpush1.bf16.msra.mxu1 %v6251_v40  ;;  %v7195_v31 = vld [vmem:[%s7696_s24 + $0x90] sm:$0xff]   ;;  %v7206_v40 = vld [vmem:[%s7696_s24 + $0xa8] sm:$0xff]  }
  0x7c   :  { %970 = vmatprep.subr.bf16.mxu1 %v6268_v41  ;;  %v7208_v41 = vld [vmem:[%s7696_s24 + $0xf0] sm:$0xff]  }
  0x7e   :  { %846 = vmatpush1.bf16.msra.mxu0 %v6245_v36  ;;  %v7200_v36 = vld [vmem:[%s7696_s24 + $0xe0] sm:$0xff]  }
  0x7f   :  { %847 = vmatprep.subr.bf16.mxu0 %v6262_v39  ;;  %971 = vmatpush1.bf16.msra.mxu1 %v6267_v48  ;;  %v7204_v39 = vld [vmem:[%s7696_s24 + $0xe8] sm:$0xff]  }
  0x80   :  { %6562 = vmatprep.subr.bf16.mxu1 %v7176_v47  ;;  %v314_v47 = vlaneseq }
  0x82   :  { %848 = vmatpush1.bf16.msra.mxu0 %v6261_v42  ;;  %6277 = vmatmul.mubr.msk.bf16.vlgmr.msra.gmra.mrb[8].mxu1 %vm714_vm2, %v7888_v46  ;;  %v7210_v42 = vld [vmem:[%s7696_s24 + $0xb0] sm:$0xff]   ;;  %v7989_v48 = vshrl.u32 %v314_v47, 7 }
  0x83   :  { %923 = vmatprep.subr.bf16.mxu0 %v6218_v45  ;;  %6563 = vmatpush3.bf16.msra.mxu1 %v7177_v52  ;;  %v7217_v45 = vld [vmem:[%s7696_s24 + $0x1c0] sm:$0xff]  }
  0x84   :  { %6564 = vmatprep.subr.bf16.mxu1 %v7178_v54 }
  0x85   :  { %6274 = vmatmul.mubr.msk.bf16.vlgmr.msra.gmra.mrb[12].mxu0 %vm714_vm2, %v7888_v46 }
  0x86   :  { %924 = vmatpush1.bf16.msra.mxu0 %v6217_v49  ;;  %955 = vmatprep.mubr.bf16.mxu0 %v7631_v7  ;;  %v340_v49 = vsub.s32 6, %v7989_v48 }
  0x87   :  { %925 = vmatprep.subr.bf16.mxu0 %v6234_v53  ;;  %6565 = vmatpush3.bf16.msra.mxu1 %v7179_v58 }
  0x88   :  { %6566 = vmatprep.subr.bf16.mxu1 %v7180_v17  ;;  %v7998_v51 = vrot.slane %v7993_v50, %v340_v49 }
  0x8a   :  { %926 = vmatpush1.bf16.msra.mxu0 %v6233_v55 }
  0x8b   :  { %927 = vmatprep.subr.bf16.mxu0 %v6250_v59  ;;  %6567 = vmatpush3.bf16.msra.mxu1 %v7181_v18 }
  0x8c   :  { %6568 = vmatprep.subr.bf16.mxu1 %v7182_v19 }
  0x8e   :  { %928 = vmatpush1.bf16.msra.mxu0 %v6249_v60 }
  0x8f   :  { %929 = vmatprep.subr.bf16.mxu0 %v6266_v63  ;;  %6569 = vmatpush3.bf16.msra.mxu1 %v7183_v20 }
  0x90   :  { %6570 = vmatprep.subr.bf16.mxu1 %v7184_v21 }
  0x92   :  { %930 = vmatpush1.bf16.msra.mxu0 %v6265_v0 }
  0x93   :  { %1005 = vmatprep.subr.bf16.mxu0 %v6222_v4  ;;  %6571 = vmatpush3.bf16.msra.mxu1 %v7186_v24 }
  0x95   :  { %6276 = vmatmul.mubr.msk.bf16.vlgmr.msra.gmra.mrb[16].mxu0 %vm714_vm2, %v7888_v46 }
  0x96   :  { %1006 = vmatpush1.bf16.msra.mxu0 %v6221_v5  ;;  %1037 = vmatprep.mubr.bf16.mxu0 %v7631_v7 }
  0x97   :  { %1007 = vmatprep.subr.bf16.mxu0 %v6238_v9 }
  0x9a   :  { %1008 = vmatpush1.bf16.msra.mxu0 %v6237_v10 }
  0x9b   :  { %1009 = vmatprep.subr.bf16.mxu0 %v6254_v13 }
  0x9e   :  { %1010 = vmatpush1.bf16.msra.mxu0 %v6253_v14 }
  0x9f   :  { %1011 = vmatprep.subr.bf16.mxu0 %v6270_v15 }
  0xa2   :  { %1012 = vmatpush1.bf16.msra.mxu0 %v6269_v16 }
  0xa3   :  { %6584 = vmatprep.subr.bf16.mxu0 %v7185_v22 }
  0xa5   :  { %6278 = vmatmul.mubr.msk.bf16.vlgmr.msra.gmra.mrb[20].mxu0 %vm714_vm2, %v7888_v46  ;;  %v7188_v46 = vld [vmem:[%s7696_s24 + $0x68] sm:$0xff]  }
  0xa6   :  { %6585 = vmatpush3.bf16.msra.mxu0 %v7187_v23  ;;  %6572 = vmatprep.subr.bf16.mxu1 %v7188_v46 }
  0xa7   :  { %6586 = vmatprep.subr.bf16.mxu0 %v7189_v25  ;;  %6573 = vmatpush3.bf16.msra.mxu1 %v7190_v27 }
  0xa8   :  { %6574 = vmatprep.subr.bf16.mxu1 %v7192_v28 }
  0xaa   :  { %6587 = vmatpush3.bf16.msra.mxu0 %v7191_v26 }
  0xab   :  { %6588 = vmatprep.subr.bf16.mxu0 %v7193_v29  ;;  %6575 = vmatpush3.bf16.msra.mxu1 %v7194_v30 }
  0xac   :  { %6576 = vmatprep.subr.bf16.mxu1 %v7196_v32 }
  0xae   :  { %6589 = vmatpush3.bf16.msra.mxu0 %v7195_v31 }
  0xaf   :  { %6590 = vmatprep.subr.bf16.mxu0 %v7197_v33  ;;  %6577 = vmatpush3.bf16.msra.mxu1 %v7198_v34 }
  0xb0   :  { %6606 = vmatprep.subr.bf16.mxu1 %v7201_v37 }
  0xb2   :  { %6591 = vmatpush3.bf16.msra.mxu0 %v7199_v35 }
  0xb3   :  { %6592 = vmatprep.subr.bf16.mxu0 %v7200_v36 }
  0xb6   :  { %6593 = vmatpush3.bf16.msra.mxu0 %v7202_v38 }
  0xb7   :  { %6594 = vmatprep.subr.bf16.mxu0 %v7204_v39 }
  0xba   :  { %6595 = vmatpush3.bf16.msra.mxu0 %v7206_v40 }
  0xbb   :  { %6596 = vmatprep.subr.bf16.mxu0 %v7208_v41 }
  0xbe   :  { %6597 = vmatpush3.bf16.msra.mxu0 %v7210_v42 }
  0xbf   :  { %6598 = vmatprep.subr.bf16.mxu0 %v7212_v43 }
  0xc2   :  { %6599 = vmatpush3.bf16.msra.mxu0 %v7214_v44 }
  0xc3   :  { %6628 = vmatprep.subr.bf16.mxu0 %v7217_v45 }
 0x128   :  { %v8000_v52 = vpop.f32.mrb[0].mxu0 }
 0x129   :  { %v6872_v53 = vpop.f32.mrb[1].mxu0 }
 0x12a   :  { %v241_v54 = vpop.f32.mrb[2].mxu0 }
 0x12b   :  { %91 = vsyncpa [#allocation3], 0  ;;  %v6873_v55 = vpop.f32.mrb[3].mxu0  ;;  %v8003_v56 = vsub.s32 0, %v7989_v48  ;;  %v8006_v57 = vld [vmem:[%s7691_s19] sm:$0xff]  ;;  %v8009_v58 = vsub.s32 1, %v7989_v48 }
 0x12c   :  { %v336_v59 = vsub.s32 5, %v7989_v48  ;;  %v7203_v15 = vld [vmem:[%s7696_s24 + $0x100] sm:$0xff]   ;;  %v7205_v18 = vld [vmem:[%s7696_s24 + $0x148] sm:$0xff]   ;;  %v324_v20 = vsub.s32 2, %v7989_v48  ;;  %v328_v22 = vsub.s32 3, %v7989_v48  ;;  %v7209_v23 = vld [vmem:[%s7696_s24 + $0x150] sm:$0xff]  }
 0x12d   :  { %v317_v60 = vrot.slane %v8006_v57, %v8003_v56  ;;  %v321_v61 = vrot.slane %v8006_v57, %v8009_v58  ;;  %v7207_v21 = vld [vmem:[%s7696_s24 + $0x108] sm:$0xff]   ;;  %v7211_v25 = vld [vmem:[%s7696_s24 + $0x110] sm:$0xff]   ;;  %v7213_v26 = vld [vmem:[%s7696_s24 + $0x158] sm:$0xff]   ;;  %v332_v41 = vsub.s32 4, %v7989_v48  ;;  %s8916_s0 = sld [smem:[#allocation25_spill]]  ;;  %s8917_s5 = sld [smem:[#allocation7_spill]] }
 0x12e   :  { %v337_v63 = vrot.slane %v8006_v57, %v336_v59  ;;  %v325_v24 = vrot.slane %v8006_v57, %v324_v20  ;;  %v329_v46 = vrot.slane %v8006_v57, %v328_v22  ;;  %v7215_v31 = vld [vmem:[%s7696_s24 + $0x118] sm:$0xff]   ;;  %v7216_v35 = vld [vmem:[%s7696_s24 + $0x160] sm:$0xff]   ;;  %v7220_v53 = vld [vmem:[%s7696_s24 + $0x168] sm:$0xff]   ;;  %s8918_s9 = sld [smem:[#allocation8_spill]]  ;;  %s8919_s3 = sld [smem:[#allocation23_spill]]  ;;  %vm3350_vm7 = vcmask 392192  }
 0x12f   :  { %v7218_v44 = vld [vmem:[%s7696_s24 + $0x120] sm:$0xff]   ;;  %v7221_v54 = vld [vmem:[%s7696_s24 + $0x1c8] sm:$0xff]   ;;  %v333_v55 = vrot.slane %v8006_v57, %v332_v41  ;;  %s8922_s14 = sld [smem:[#allocation24_spill]]  ;;  %s8923_s19 = sld [smem:[#allocation26_spill]]  ;;  %vm3905_vm9 = vcmask 64512   ;;  %vm3682_vm10 = vcmask 7168  }
 0x130   :  { %v7219_v45 = vld [vmem:[%s7696_s24 + $0x180] sm:$0xff]   ;;  %s8930_s15 = sld [smem:[#allocation14_spill]]  ;;  %s8931_s16 = sld [smem:[#allocation19_spill]]  ;;  %vm3932_vm11 = vcmask 57344   ;;  %vm6096_vm12 = vcmask 31744  }
 0x131   :  { %s8932_s18 = sld [smem:[#allocation18_spill]]  ;;  %s8933_s22 = sld [smem:[#allocation21_spill]] }
 0x132   :  { %s8934_s23 = sld [smem:[#allocation16_spill]]  ;;  %s8935_s26 = sld [smem:[#allocation20_spill]] }
 0x133   :  { %s8936_s28 = sld [smem:[#allocation22_spill]]  ;;  %s8938_s1 = sld [smem:[#allocation29_spill]] }
 0x134   :  { %s8939_s2 = sld [smem:[#allocation28_spill]] }
 0x135   :  { %v8019_v5 = vpop.f32.mrb[0].mxu1 }
 0x136   :  { %v836_v9 = vpop.f32.mrb[1].mxu1 }
 0x137   :  { %v837_v11 = vadd.f32 %v836_v9, %v337_v63  ;;  %v838_v12 = vpop.f32.mrb[2].mxu1  ;;  %v7224_v63 = vld [vmem:[%s7696_s24 + $0x170] sm:$0xff]   ;;  %v7228_v9 = vld [vmem:[%s7696_s24 + $0x178] sm:$0xff]  }
 0x138   :  { %v752_v62 = vpop.f32.mrb[4].mxu0  ;;  %v839_v13 = vpop.f32.mrb[3].mxu1 }
 0x139   :  { %v753_v0 = vadd.f32 %v752_v62, %v317_v60  ;;  %v754_v2 = vpop.f32.mrb[5].mxu0  ;;  %v1051_v16 = vmax.f32 %v837_v11, 0.0  ;;  %v7222_v60 = vld [vmem:[%s7696_s24 + $0x128] sm:$0xff]   ;;  %v344_v62 = vsub.s32 7, %v7989_v48  ;;  %v365_v11 = vrot.slane %v7993_v50, %v332_v41 }
 0x13a   :  { %v755_v3 = vadd.f32 %v754_v2, %v321_v61  ;;  %v756_v4 = vpop.f32.mrb[6].mxu0  ;;  %v7223_v61 = vld [vmem:[%s7696_s24 + $0x188] sm:$0xff]   ;;  %v353_v2 = vrot.slane %v7993_v50, %v8009_v58  ;;  %v369_v13 = vrot.slane %v7993_v50, %v336_v59 }
 0x13b   :  { %v1046_v6 = vmax.f32 %v753_v0, 0.0  ;;  %v757_v8 = vpop.f32.mrb[7].mxu0  ;;  %v1323_v19 = vpack.c.bf16 %v1051_v16, %v1051_v16  ;;  %v7225_v0 = vld [vmem:[%s7696_s24 + $0x1d0] sm:$0xff]   ;;  %v7230_v16 = vld [vmem:[%s7696_s24 + $0x138] sm:$0xff]   ;;  %v7239_v41 = vld [vmem:[%s7696_s24 + $0x208] sm:$0xff]  }
 0x13c   :  { %v1047_v10 = vmax.f32 %v755_v3, 0.0  ;;  %v835_v3 = vadd.f32 %v8019_v5, %v333_v55  ;;  %v7226_v4 = vld [vmem:[%s7696_s24 + $0x130] sm:$0xff]   ;;  %v345_v8 = vrot.slane %v8006_v57, %v344_v62  ;;  %v7245_v55 = vld [vmem:[%s7696_s24 + $0x258] sm:$0xff]  }
 0x13d   :  { %v1318_v17 = vpack.c.bf16 %v1046_v6, %v1046_v6  ;;  %v7227_v6 = vld [vmem:[%s7696_s24 + $0x190] sm:$0xff]  }
 0x13e   :  { %v1319_v14 = vpack.c.bf16 %v1047_v10, %v1047_v10  ;;  %v7229_v10 = vld [vmem:[%s7696_s24 + $0x1d8] sm:$0xff]  }
 0x140   :  { %2141 = vmatprep.mubr.bf16.mxu1 %v1319_v14  ;;  %v1050_v14 = vmax.f32 %v835_v3, 0.0 }
 0x141   :  { %2142 = vmatmul.mubr.bf16.vlgmr.msra.gmra.mrb[12].mxu1 %v1318_v17  ;;  %v7231_v17 = vld [vmem:[%s7696_s24 + $0x198] sm:$0xff]  }
 0x142   :  { %6607 = vmatpush3.bf16.msra.mxu1 %v7203_v15  ;;  %2221 = vmatprep.mubr.bf16.mxu1 %v1323_v19 }
 0x143   :  { %6608 = vmatprep.subr.bf16.mxu1 %v7205_v18 }
 0x145   :  { %v8036_v33 = vpop.f32.mrb[4].mxu1 }
 0x146   :  { %6609 = vmatpush3.bf16.msra.mxu1 %v7207_v21  ;;  %v918_v37 = vpop.f32.mrb[5].mxu1 }
 0x147   :  { %6610 = vmatprep.subr.bf16.mxu1 %v7209_v23  ;;  %v920_v39 = vpop.f32.mrb[6].mxu1  ;;  %v919_v5 = vadd.f32 %v918_v37, %v353_v2  ;;  %v7232_v23 = vld [vmem:[%s7696_s24 + $0x1e0] sm:$0xff]   ;;  %v7237_v37 = vld [vmem:[%s7696_s24 + $0x248] sm:$0xff]   ;;  %v7247_v2 = vld [vmem:[%s7696_s24 + $0x218] sm:$0xff]  }
 0x148   :  { %v793_v27 = vpop.f32.mrb[8].mxu0  ;;  %v921_v42 = vpop.f32.mrb[7].mxu1  ;;  %v341_v39 = vrot.slane %v8006_v57, %v340_v49  ;;  %v7242_v49 = vld [vmem:[%s7696_s24 + $0x1b0] sm:$0xff]  }
 0x149   :  { %v794_v28 = vadd.f32 %v793_v27, %v325_v24  ;;  %v795_v29 = vpop.f32.mrb[9].mxu0  ;;  %v7233_v24 = vld [vmem:[%s7696_s24 + $0x240] sm:$0xff]   ;;  %v1055_v27 = vmax.f32 %v919_v5, 0.0  ;;  %v7240_v42 = vld [vmem:[%s7696_s24 + $0x1f0] sm:$0xff]   ;;  %v7252_v5 = vld [vmem:[%s7696_s24 + $0x268] sm:$0xff]  }
 0x14a   :  { %v796_v30 = vadd.f32 %v795_v29, %v329_v46  ;;  %6611 = vmatpush3.bf16.msra.mxu1 %v7211_v25  ;;  %v797_v32 = vpop.f32.mrb[10].mxu0  ;;  %v7243_v57 = vld [vmem:[%s7696_s24 + $0x210] sm:$0xff]  }
 0x14b   :  { %v1048_v34 = vmax.f32 %v794_v28, 0.0  ;;  %6612 = vmatprep.subr.bf16.mxu1 %v7213_v26  ;;  %v798_v36 = vpop.f32.mrb[11].mxu0  ;;  %v7234_v32 = vld [vmem:[%s7696_s24 + $0x1a0] sm:$0xff]  }
 0x14c   :  { %v1049_v38 = vmax.f32 %v796_v30, 0.0  ;;  %v1322_v30 = vpack.c.bf16 %v1050_v14, %v1050_v14  ;;  %v7236_v36 = vld [vmem:[%s7696_s24 + $0x1e8] sm:$0xff]  }
 0x14d   :  { %v1320_v40 = vpack.c.bf16 %v1048_v34, %v1048_v34  ;;  %v7235_v34 = vld [vmem:[%s7696_s24 + $0x200] sm:$0xff]  }
 0x14e   :  { %v1321_v43 = vpack.c.bf16 %v1049_v38, %v1049_v38  ;;  %6613 = vmatpush3.bf16.msra.mxu1 %v7215_v31  ;;  %v1327_v38 = vpack.c.bf16 %v1055_v27, %v1055_v27 }
 0x14f   :  { %6614 = vmatprep.subr.bf16.mxu1 %v7216_v35 }
 0x150   :  { %2181 = vmatprep.mubr.bf16.mxu0 %v1321_v43  ;;  %v7241_v43 = vld [vmem:[%s7696_s24 + $0x250] sm:$0xff]  }
 0x151   :  { %2182 = vmatmul.mubr.bf16.vlgmr.msra.gmra.mrb[24].mxu0 %v1320_v40  ;;  %v7238_v40 = vld [vmem:[%s7696_s24 + $0x1a8] sm:$0xff]  }
 0x152   :  { %6615 = vmatpush3.bf16.msra.mxu1 %v7218_v44  ;;  %6629 = vmatpush3.bf16.msra.mxu0 %v7219_v45  ;;  %v357_v45 = vrot.slane %v7993_v50, %v324_v20 }
 0x153   :  { %6616 = vmatprep.subr.bf16.mxu1 %v7220_v53  ;;  %6630 = vmatprep.subr.bf16.mxu0 %v7221_v54  ;;  %v361_v53 = vrot.slane %v7993_v50, %v328_v22  ;;  %v7244_v54 = vld [vmem:[%s7696_s24 + $0x1f8] sm:$0xff]  }
 0x155   :  { %v998_v21 = vpop.f32.mrb[8].mxu1 }
 0x156   :  { %6617 = vmatpush3.bf16.msra.mxu1 %v7222_v60  ;;  %6631 = vmatpush3.bf16.msra.mxu0 %v7223_v61  ;;  %v8068_v25 = vadd.f32 %v998_v21, %v365_v11  ;;  %v1000_v59 = vpop.f32.mrb[9].mxu1  ;;  %v7250_v11 = vld [vmem:[%s7696_s24 + $0x220] sm:$0xff]  }
 0x157   :  { %6618 = vmatprep.subr.bf16.mxu1 %v7224_v63  ;;  %6632 = vmatprep.subr.bf16.mxu0 %v7225_v0  ;;  %v8070_v28 = vadd.f32 %v1000_v59, %v369_v13  ;;  %v1002_v29 = vpop.f32.mrb[10].mxu1  ;;  %v7246_v0 = vld [vmem:[%s7696_s24 + $0x1b8] sm:$0xff]   ;;  %v7253_v13 = vld [vmem:[%s7696_s24 + $0x2c8] sm:$0xff]  }
 0x158   :  { %v875_v12 = vpop.f32.mrb[12].mxu0  ;;  %v1003_v31 = vpop.f32.mrb[11].mxu1  ;;  %v7261_v59 = vld [vmem:[%s7696_s24 + $0x2d8] sm:$0xff]  }
 0x159   :  { %v877_v15 = vpop.f32.mrb[13].mxu0  ;;  %v876_v44 = vadd.f32 %v875_v12, %v341_v39  ;;  %v7251_v12 = vld [vmem:[%s7696_s24 + $0x280] sm:$0xff]   ;;  %v7263_v31 = vld [vmem:[%s7696_s24 + $0x298] sm:$0xff]  }
 0x15a   :  { %6619 = vmatpush3.bf16.msra.mxu1 %v7226_v4  ;;  %6633 = vmatpush3.bf16.msra.mxu0 %v7227_v6  ;;  %v878_v18 = vadd.f32 %v877_v15, %v345_v8  ;;  %v879_v19 = vpop.f32.mrb[14].mxu0  ;;  %v7248_v4 = vld [vmem:[%s7696_s24 + $0x260] sm:$0xff]   ;;  %v349_v15 = vrot.slane %v7993_v50, %v8003_v56 }
 0x15b   :  { %6620 = vmatprep.subr.bf16.mxu1 %v7228_v9  ;;  %6634 = vmatprep.subr.bf16.mxu0 %v7229_v10  ;;  %v880_v46 = vpop.f32.mrb[15].mxu0  ;;  %v1052_v61 = vmax.f32 %v876_v44, 0.0  ;;  %v7249_v6 = vld [vmem:[%s7696_s24 + $0x2c0] sm:$0xff]   ;;  %v7257_v19 = vld [vmem:[%s7696_s24 + $0x2d0] sm:$0xff]  }
 0x15c   :  { %v1053_v26 = vmax.f32 %v878_v18, 0.0  ;;  %v7256_v18 = vld [vmem:[%s7696_s24 + $0x270] sm:$0xff]   ;;  %v917_v21 = vadd.f32 %v8036_v33, %v349_v15  ;;  %v7260_v46 = vld [vmem:[%s7696_s24 + $0x278] sm:$0xff]   ;;  %v7267_v39 = vld [vmem:[%s7696_s24 + $0x300] sm:$0xff]  }
 0x15d   :  { %v1324_v10 = vpack.c.bf16 %v1052_v61, %v1052_v61  ;;  %v7262_v33 = vld [vmem:[%s7696_s24 + $0x238] sm:$0xff]   ;;  %v7272_v44 = vld [vmem:[%s7696_s24 + $0x2f0] sm:$0xff]  }
 0x15e   :  { %6621 = vmatpush3.bf16.msra.mxu1 %v7230_v16  ;;  %6635 = vmatpush3.bf16.msra.mxu0 %v7231_v17  ;;  %v1325_v35 = vpack.c.bf16 %v1053_v26, %v1053_v26  ;;  %v7254_v16 = vld [vmem:[%s7696_s24 + $0x228] sm:$0xff]   ;;  %v1054_v27 = vmax.f32 %v917_v21, 0.0  ;;  %v7293_v15 = vld [vmem:[%s7696_s24 + $0x3d8] sm:$0xff]  }
 0x15f   :  { %6636 = vmatprep.subr.bf16.mxu0 %v7232_v23  ;;  %6650 = vmatprep.subr.bf16.mxu1 %v7233_v24  ;;  %v7255_v17 = vld [vmem:[%s7696_s24 + $0x288] sm:$0xff]   ;;  %v7258_v23 = vld [vmem:[%s7696_s24 + $0x230] sm:$0xff]  }
 0x160   :  { %2261 = vmatprep.mubr.bf16.mxu0 %v1325_v35  ;;  %v7259_v24 = vld [vmem:[%s7696_s24 + $0x290] sm:$0xff]   ;;  %v7265_v35 = vld [vmem:[%s7696_s24 + $0x340] sm:$0xff]  }
 0x161   :  { %2222 = vmatmul.mubr.bf16.vlgmr.msra.gmra.mrb[16].mxu1 %v1322_v30  ;;  %v7299_v21 = vld [vmem:[%s7706_s6 + $0x4] ss:$8 sps:$4 sm:$0xff]  }
 0x162   :  { %6637 = vmatpush3.bf16.msra.mxu0 %v7234_v32  ;;  %6651 = vmatpush3.bf16.msra.mxu1 %v7235_v34  ;;  %v7264_v34 = vld [vmem:[%s7696_s24 + $0x2e0] sm:$0xff]  }
 0x163   :  { %6638 = vmatprep.subr.bf16.mxu0 %v7236_v36  ;;  %6652 = vmatprep.subr.bf16.mxu1 %v7237_v37  ;;  %v1326_v37 = vpack.c.bf16 %v1054_v27, %v1054_v27  ;;  %v7305_v27 = vld [vmem:[%s7696_s24 + $0x3a8] sm:$0xff]  }
 0x164   :  { %2301 = vmatprep.mubr.bf16.mxu1 %v1327_v38  ;;  %v7266_v38 = vld [vmem:[%s7696_s24 + $0x2a0] sm:$0xff]  }
 0x166   :  { %6639 = vmatpush3.bf16.msra.mxu0 %v7238_v40  ;;  %6653 = vmatpush3.bf16.msra.mxu1 %v7239_v41  ;;  %v7268_v40 = vld [vmem:[%s7696_s24 + $0x2e8] sm:$0xff]  }
 0x167   :  { %6640 = vmatprep.subr.bf16.mxu0 %v7240_v42  ;;  %6654 = vmatprep.subr.bf16.mxu1 %v7241_v43  ;;  %v7269_v41 = vld [vmem:[%s7696_s24 + $0x348] sm:$0xff]  }
 0x168   :  { %v957_v60 = vpop.f32.mrb[16].mxu0  ;;  %v7271_v43 = vld [vmem:[%s7696_s24 + $0x308] sm:$0xff]  }
 0x169   :  { %v8093_v63 = vadd.f32 %v957_v60, %v357_v45  ;;  %v959_v20 = vpop.f32.mrb[17].mxu0  ;;  %v7273_v45 = vld [vmem:[%s7696_s24 + $0x350] sm:$0xff]  }
 0x16a   :  { %6641 = vmatpush3.bf16.msra.mxu0 %v7242_v49  ;;  %6655 = vmatpush3.bf16.msra.mxu1 %v7243_v57  ;;  %v960_v3 = vadd.f32 %v959_v20, %v361_v53  ;;  %v961_v22 = vpop.f32.mrb[18].mxu0  ;;  %v377_v49 = vrot.slane %v7993_v50, %v344_v62  ;;  %v7274_v57 = vld [vmem:[%s7696_s24 + $0x2b0] sm:$0xff]   ;;  %v7278_v50 = vld [vmem:[%s7696_s24 + $0x2b8] sm:$0xff]   ;;  %v7280_v20 = vld [vmem:[%s7696_s24 + $0x360] sm:$0xff]  }
 0x16b   :  { %6642 = vmatprep.subr.bf16.mxu0 %v7244_v54  ;;  %6656 = vmatprep.subr.bf16.mxu1 %v7245_v55  ;;  %v962_v8 = vpop.f32.mrb[19].mxu0  ;;  %v7275_v53 = vld [vmem:[%s7696_s24 + $0x310] sm:$0xff]   ;;  %v7276_v54 = vld [vmem:[%s7696_s24 + $0x2f8] sm:$0xff]   ;;  %v1056_v61 = vmax.f32 %v8093_v63, 0.0  ;;  %v7282_v22 = vld [vmem:[%s7696_s24 + $0x320] sm:$0xff]  }
 0x16c   :  { %v1057_v9 = vmax.f32 %v960_v3, 0.0  ;;  %v7277_v55 = vld [vmem:[%s7696_s24 + $0x358] sm:$0xff]   ;;  %v7283_v63 = vld [vmem:[%s7696_s24 + $0x380] sm:$0xff]  }
 0x16d   :  { %v7279_v62 = vld [vmem:[%s7696_s24 + $0x318] sm:$0xff]   ;;  %v1328_v3 = vpack.c.bf16 %v1056_v61, %v1056_v61 }
 0x16e   :  { %6643 = vmatpush3.bf16.msra.mxu0 %v7246_v0  ;;  %6657 = vmatpush3.bf16.msra.mxu1 %v7247_v2  ;;  %v1329_v14 = vpack.c.bf16 %v1057_v9, %v1057_v9  ;;  %v7281_v0 = vld [vmem:[%s7696_s24 + $0x3c0] sm:$0xff]   ;;  %v7286_v9 = vld [vmem:[%s7696_s24 + $0x328] sm:$0xff]   ;;  %v7339_v61 = vld [vmem:[%s7716_s20 + $0x14] ss:$8 sps:$4 sm:$0xff]  }
 0x16f   :  { %6658 = vmatprep.subr.bf16.mxu1 %v7248_v4  ;;  %6672 = vmatprep.subr.bf16.mxu0 %v7249_v6  ;;  %v7284_v4 = vld [vmem:[%s7696_s24 + $0x368] sm:$0xff]  }
 0x170   :  { %v7285_v6 = vld [vmem:[%s7696_s24 + $0x3c8] sm:$0xff]  }
 0x171   :  { %2262 = vmatmul.mubr.bf16.vlgmr.msra.gmra.mrb[28].mxu0 %v1324_v10  ;;  %v7287_v10 = vld [vmem:[%s7696_s24 + $0x388] sm:$0xff]  }
 0x172   :  { %6659 = vmatpush3.bf16.msra.mxu1 %v7250_v11  ;;  %6673 = vmatpush3.bf16.msra.mxu0 %v7251_v12  ;;  %v7288_v11 = vld [vmem:[%s7696_s24 + $0x370] sm:$0xff]  }
 0x173   :  { %6660 = vmatprep.subr.bf16.mxu1 %v7252_v5  ;;  %6674 = vmatprep.subr.bf16.mxu0 %v7253_v13  ;;  %v7289_v12 = vld [vmem:[%s7696_s24 + $0x3d0] sm:$0xff]  }
 0x174   :  { %2341 = vmatprep.mubr.bf16.mxu0 %v1329_v14  ;;  %v7290_v5 = vld [vmem:[%s7696_s24 + $0x330] sm:$0xff]   ;;  %v7292_v14 = vld [vmem:[%s7696_s24 + $0x378] sm:$0xff]  }
 0x175   :  { %v7291_v13 = vld [vmem:[%s7696_s24 + $0x390] sm:$0xff]  }
 0x176   :  { %6661 = vmatpush3.bf16.msra.mxu1 %v7254_v16  ;;  %6675 = vmatpush3.bf16.msra.mxu0 %v7255_v17  ;;  %v1058_v16 = vmax.f32 %v8068_v25, 0.0  ;;  %v7294_v17 = vld [vmem:[%s7696_s24 + $0x338] sm:$0xff]   ;;  %v7301_v25 = vld [vmem:[%s7696_s24 + $0x3e8] sm:$0xff]  }
 0x177   :  { %6662 = vmatprep.subr.bf16.mxu1 %v7256_v18  ;;  %6676 = vmatprep.subr.bf16.mxu0 %v7257_v19  ;;  %v7295_v18 = vld [vmem:[%s7696_s24 + $0x398] sm:$0xff]   ;;  %v7296_v19 = vld [vmem:[%s7696_s24 + $0x3e0] sm:$0xff]  }
 0x178   :  { %v1039_v26 = vpop.f32.mrb[20].mxu0 }
 0x179   :  { %v8115_v29 = vadd.f32 %v1039_v26, %v7998_v51  ;;  %v1041_v30 = vpop.f32.mrb[21].mxu0  ;;  %v1059_v51 = vmax.f32 %v8070_v28, 0.0  ;;  %v7270_v28 = vld [vmem:[%s7696_s24 + $0x2a8] sm:$0xff]   ;;  %v7302_v26 = vld [vmem:[%s7706_s6 + $0x10] ss:$8 sps:$4 sm:$0xff]  }
 0x17a   :  { %6663 = vmatpush3.bf16.msra.mxu1 %v7258_v23  ;;  %6677 = vmatpush3.bf16.msra.mxu0 %v7259_v24  ;;  %v1043_v32 = vpop.f32.mrb[22].mxu0  ;;  %v1042_v60 = vadd.f32 %v1041_v30, %v377_v49  ;;  %v1330_v23 = vpack.c.bf16 %v1058_v16, %v1058_v16  ;;  %v7297_v24 = vld [vmem:[%s7706_s6] ss:$8 sps:$4 sm:$0xff]   ;;  %v7306_v30 = vld [vmem:[%s7696_s24 + $0x3f0] sm:$0xff]  }
 0x17b   :  { %6664 = vmatprep.subr.bf16.mxu1 %v7260_v46  ;;  %6678 = vmatprep.subr.bf16.mxu0 %v7261_v59  ;;  %v1044_v36 = vpop.f32.mrb[23].mxu0  ;;  %v1331_v42 = vpack.c.bf16 %v1059_v51, %v1059_v51  ;;  %v7300_v46 = vld [vmem:[%s7696_s24 + $0x3a0] sm:$0xff]   ;;  %v7304_v59 = vld [vmem:[%s7706_s6 + $0x14] ss:$8 sps:$4 sm:$0xff]   ;;  %v1060_v51 = vmax.f32 %v8115_v29, 0.0 }
 0x17c   :  { %v1061_v2 = vmax.f32 %v1042_v60, 0.0  ;;  %v7310_v32 = vld [vmem:[%s7696_s24 + $0x3b0] sm:$0xff]   ;;  %v6203_v36 = vld [vmem:[%s7681_s8] ss:$0 sm:$0xff]  ;;  %s8920_s8 = sld [smem:[#allocation10_spill]] }
 0x17d   :  { %v7316_v29 = vld [vmem:[%s7786_s4] ss:$8 sps:$4 sm:$0xff]   ;;  %v7325_v49 = vld [vmem:[%s7786_s4 + $0x30] ss:$8 sps:$4 sm:$0xff]   ;;  %v7336_v60 = vld [vmem:[%s7786_s4 + $0x54] ss:$8 sps:$4 sm:$0xff]  }
 0x17e   :  { %6665 = vmatpush3.bf16.msra.mxu1 %v7262_v33  ;;  %6679 = vmatpush3.bf16.msra.mxu0 %v7263_v31  ;;  %v1333_v8 = vpack.c.bf16 %v1061_v2, %v1061_v2  ;;  %v7309_v33 = vld [vmem:[%s7706_s6 + $0x24] ss:$8 sps:$4 sm:$0xff]   ;;  %v7307_v31 = vld [vmem:[%s7706_s6 + $0x20] ss:$8 sps:$4 sm:$0xff]  }
 0x17f   :  { %6680 = vmatprep.subr.bf16.mxu0 %v7264_v34  ;;  %6694 = vmatprep.subr.bf16.mxu1 %v7265_v35  ;;  %v7311_v34 = vld [vmem:[%s7696_s24 + $0x3f8] sm:$0xff]   ;;  %v7345_v2 = vld [vmem:[%s7716_s20 + $0x24] ss:$8 sps:$4 sm:$0xff]  }
 0x180   :  { %v7314_v35 = vld [vmem:[%s7706_s6 + $0x34] ss:$8 sps:$4 sm:$0xff]  }
 0x181   :  { %2302 = vmatmul.mubr.bf16.vlgmr.msra.gmra.mrb[20].mxu1 %v1326_v37  ;;  %v7312_v37 = vld [vmem:[%s7706_s6 + $0x30] ss:$8 sps:$4 sm:$0xff]   ;;  %s8926_s6 = sld [smem:[#allocation13_spill]] }
 0x182   :  { %6681 = vmatpush3.bf16.msra.mxu0 %v7266_v38  ;;  %6695 = vmatpush3.bf16.msra.mxu1 %v7267_v39  ;;  %v7315_v38 = vld [vmem:[%s7696_s24 + $0x3b8] sm:$0xff]   ;;  %v239_v39 = vadd.f32 %v6203_v36, %v8000_v52  ;;  %v7318_v52 = vld [vmem:[%s7786_s4 + $0x4] ss:$8 sps:$4 sm:$0xff]   ;;  %s8924_s24 = sld [smem:[#allocation5_spill]] }
 0x183   :  { %6682 = vmatprep.subr.bf16.mxu0 %v7268_v40  ;;  %6696 = vmatprep.subr.bf16.mxu1 %v7269_v41  ;;  %v1332_v40 = vpack.c.bf16 %v1060_v51, %v1060_v51 }
 0x184   :  { %2381 = vmatprep.mubr.bf16.mxu1 %v1331_v42  ;;  %v2437_v41 = vpack.c.bf16 %v239_v39, %v239_v39  ;;  %v7321_v42 = vld [vmem:[%s7786_s4 + $0x14] ss:$8 sps:$4 sm:$0xff]  }
 0x186   :  { %6683 = vmatpush3.bf16.msra.mxu0 %v7270_v28  ;;  %6697 = vmatpush3.bf16.msra.mxu1 %v7271_v43  ;;  %v7319_v28 = vld [vmem:[%s7786_s4 + $0x10] ss:$8 sps:$4 sm:$0xff]   ;;  %v7324_v43 = vld [vmem:[%s7786_s4 + $0x24] ss:$8 sps:$4 sm:$0xff]  }
 0x187   :  { %6684 = vmatprep.subr.bf16.mxu0 %v7272_v44  ;;  %6698 = vmatprep.subr.bf16.mxu1 %v7273_v45  ;;  %v7322_v44 = vld [vmem:[%s7786_s4 + $0x20] ss:$8 sps:$4 sm:$0xff]   ;;  %v7327_v45 = vld [vmem:[%s7786_s4 + $0x34] ss:$8 sps:$4 sm:$0xff]  }
 0x18a   :  { %6685 = vmatpush3.bf16.msra.mxu0 %v7274_v57  ;;  %6699 = vmatpush3.bf16.msra.mxu1 %v7275_v53  ;;  %v7328_v57 = vld [vmem:[%s7786_s4 + $0x40] ss:$8 sps:$4 sm:$0xff]   ;;  %v7330_v53 = vld [vmem:[%s7786_s4 + $0x44] ss:$8 sps:$4 sm:$0xff]  }
 0x18b   :  { %6686 = vmatprep.subr.bf16.mxu0 %v7276_v54  ;;  %6700 = vmatprep.subr.bf16.mxu1 %v7277_v55  ;;  %v7331_v54 = vld [vmem:[%s7716_s20] ss:$8 sps:$4 sm:$0xff]   ;;  %v7333_v55 = vld [vmem:[%s7716_s20 + $0x4] ss:$8 sps:$4 sm:$0xff]  }
 0x18e   :  { %6687 = vmatpush3.bf16.msra.mxu0 %v7278_v50  ;;  %6701 = vmatpush3.bf16.msra.mxu1 %v7279_v62  ;;  %v7334_v50 = vld [vmem:[%s7786_s4 + $0x50] ss:$8 sps:$4 sm:$0xff]  }
 0x18f   :  { %6702 = vmatprep.subr.bf16.mxu1 %v7280_v20  ;;  %6716 = vmatprep.subr.bf16.mxu0 %v7281_v0  ;;  %v7337_v62 = vld [vmem:[%s7716_s20 + $0x10] ss:$8 sps:$4 sm:$0xff]   ;;  %v7342_v20 = vld [vmem:[%s7786_s4 + $0x64] ss:$8 sps:$4 sm:$0xff]   ;;  %v7340_v0 = vld [vmem:[%s7786_s4 + $0x60] ss:$8 sps:$4 sm:$0xff]  }
 0x191   :  { %2342 = vmatmul.mubr.bf16.vlgmr.msra.gmra.mrb[32].mxu0 %v1328_v3  ;;  %v7343_v3 = vld [vmem:[%s7716_s20 + $0x20] ss:$8 sps:$4 sm:$0xff]  }
 0x192   :  { %6703 = vmatpush3.bf16.msra.mxu1 %v7282_v22  ;;  %6717 = vmatpush3.bf16.msra.mxu0 %v7283_v63  ;;  %v7348_v22 = vld [vmem:[%s7786_s4 + $0x74] ss:$8 sps:$4 sm:$0xff]   ;;  %v7346_v63 = vld [vmem:[%s7786_s4 + $0x70] ss:$8 sps:$4 sm:$0xff]   ;;  %s8929_s4 = sld [smem:[#allocation17_spill]] }
 0x193   :  { %6704 = vmatprep.subr.bf16.mxu1 %v7284_v4  ;;  %6718 = vmatprep.subr.bf16.mxu0 %v7285_v6  ;;  %v7351_v4 = vld [vmem:[%s7716_s20 + $0x34] ss:$8 sps:$4 sm:$0xff]   ;;  %v7349_v6 = vld [vmem:[%s7716_s20 + $0x30] ss:$8 sps:$4 sm:$0xff]   ;;  %s8928_s20 = sld [smem:[#allocation12_spill]] }
 0x194   :  { %2421 = vmatprep.mubr.bf16.mxu0 %v1333_v8 }
 0x196   :  { %6705 = vmatpush3.bf16.msra.mxu1 %v7286_v9  ;;  %6719 = vmatpush3.bf16.msra.mxu0 %v7287_v10 }
 0x197   :  { %6706 = vmatprep.subr.bf16.mxu1 %v7288_v11  ;;  %6720 = vmatprep.subr.bf16.mxu0 %v7289_v12 }
 0x19a   :  { %6707 = vmatpush3.bf16.msra.mxu1 %v7290_v5  ;;  %6721 = vmatpush3.bf16.msra.mxu0 %v7291_v13  ;;  %v6279_v5 = vld [vmem:[%s7701_s30] ss:$0 sm:$0xff]  ;;  %s8925_s30 = sld [smem:[#allocation6_spill]] }
 0x19b   :  { %6708 = vmatprep.subr.bf16.mxu1 %v7292_v14  ;;  %6722 = vmatprep.subr.bf16.mxu0 %v7293_v15 }
 0x19e   :  { %6709 = vmatpush3.bf16.msra.mxu1 %v7294_v17  ;;  %6723 = vmatpush3.bf16.msra.mxu0 %v7295_v18 }
 0x19f   :  { %6724 = vmatprep.subr.bf16.mxu0 %v7296_v19  ;;  %2493 = vmatprep.subr.bf16.mxu1 %v7299_v21 }
 0x1a1   :  { %2382 = vmatmul.mubr.bf16.vlgmr.msra.gmra.mrb[24].mxu1 %v1330_v23 }
 0x1a2   :  { %6725 = vmatpush3.bf16.msra.mxu0 %v7300_v46  ;;  %2494 = vmatpush1.bf16.msra.mxu1 %v7297_v24 }
 0x1a3   :  { %6726 = vmatprep.subr.bf16.mxu0 %v7301_v25  ;;  %2495 = vmatprep.subr.bf16.mxu1 %v7304_v59 }
 0x1a4   :  { %2525 = vmatprep.mubr.bf16.mxu1 %v7631_v7 }
 0x1a6   :  { %6727 = vmatpush3.bf16.msra.mxu0 %v7305_v27  ;;  %2496 = vmatpush1.bf16.msra.mxu1 %v7302_v26 }
 0x1a7   :  { %6728 = vmatprep.subr.bf16.mxu0 %v7306_v30  ;;  %2497 = vmatprep.subr.bf16.mxu1 %v7309_v33 }
 0x1aa   :  { %6729 = vmatpush3.bf16.msra.mxu0 %v7310_v32  ;;  %2498 = vmatpush1.bf16.msra.mxu1 %v7307_v31 }
 0x1ab   :  { %6730 = vmatprep.subr.bf16.mxu0 %v7311_v34  ;;  %2499 = vmatprep.subr.bf16.mxu1 %v7314_v35 }
 0x1ae   :  { %6731 = vmatpush3.bf16.msra.mxu0 %v7315_v38  ;;  %2500 = vmatpush1.bf16.msra.mxu1 %v7312_v37 }
 0x1af   :  { %2748 = vmatprep.subr.bf16.mxu1 %v7318_v52  ;;  %2598 = vmatprep.subr.bf16.mxu0 %v7333_v55 }
 0x1b1   :  { %2422 = vmatmul.mubr.bf16.vlgmr.msra.gmra.mrb[36].mxu0 %v1332_v40  ;;  %6416 = vmatmul.mubr.msk.bf16.vlgmr.msra.gmra.mrb[28].mxu1 %vm714_vm2, %v2437_v41 }
 0x1b2   :  { %2780 = vmatprep.mubr.bf16.mxu1 %v7631_v7  ;;  %2630 = vmatprep.mubr.bf16.mxu0 %v7631_v7 }
 0x1b3   :  { %2749 = vmatpush1.bf16.msra.mxu1 %v7316_v29  ;;  %2599 = vmatpush1.bf16.msra.mxu0 %v7331_v54 }
 0x1b4   :  { %2750 = vmatprep.subr.bf16.mxu1 %v7321_v42  ;;  %2600 = vmatprep.subr.bf16.mxu0 %v7339_v61 }
 0x1b7   :  { %2751 = vmatpush1.bf16.msra.mxu1 %v7319_v28  ;;  %2601 = vmatpush1.bf16.msra.mxu0 %v7337_v62 }
 0x1b8   :  { %2752 = vmatprep.subr.bf16.mxu1 %v7324_v43  ;;  %2602 = vmatprep.subr.bf16.mxu0 %v7345_v2 }
 0x1bb   :  { %2753 = vmatpush1.bf16.msra.mxu1 %v7322_v44  ;;  %2603 = vmatpush1.bf16.msra.mxu0 %v7343_v3 }
 0x1bc   :  { %2754 = vmatprep.subr.bf16.mxu1 %v7327_v45  ;;  %2604 = vmatprep.subr.bf16.mxu0 %v7351_v4 }
 0x1bf   :  { %2755 = vmatpush1.bf16.msra.mxu1 %v7325_v49  ;;  %2605 = vmatpush1.bf16.msra.mxu0 %v7349_v6 }
 0x1c0   :  { %2756 = vmatprep.subr.bf16.mxu1 %v7330_v53  ;;  %6874 = vmatprep.subr.bf16.mxu0 %v7629_v1  ;;  %v2438_v53 = vld [vmem:[%s7711_s12] sm:$0x3]  ;;  %s8927_s12 = sld [smem:[#allocation15_spill]] }
 0x1c1   :  { %v2443_v54 = vrot.slane %v2438_v53, %v8003_v56  ;;  %v2447_v55 = vrot.slane %v2438_v53, %v8009_v58 }
 0x1c3   :  { %2757 = vmatpush1.bf16.msra.mxu1 %v7328_v57 }
 0x1c4   :  { %2758 = vmatprep.subr.bf16.mxu1 %v7336_v60 }
 0x1c7   :  { %2759 = vmatpush1.bf16.msra.mxu1 %v7334_v50 }
 0x1c8   :  { %2760 = vmatprep.subr.bf16.mxu1 %v7342_v20 }
 0x1cb   :  { %2761 = vmatpush1.bf16.msra.mxu1 %v7340_v0  ;;  %v6506_v0 = vld [vmem:[%s7826_s21] ss:$0 sm:$0xff] }
 0x1cc   :  { %2762 = vmatprep.subr.bf16.mxu1 %v7348_v22 }
 0x1cf   :  { %2763 = vmatpush1.bf16.msra.mxu1 %v7346_v63 }
 0x1d0   :  { %6894 = vmatprep.subr.bf16.mxu1 %v7629_v1 }
 0x214   :  { %v6578_v8 = vpop.f32.mrb[12].mxu1 }
 0x215   :  { %v6579_v9 = vpop.f32.mrb[13].mxu1 }
 0x216   :  { %v6580_v10 = vadd.f32 %v6579_v9, %v6578_v8  ;;  %v6581_v11 = vpop.f32.mrb[14].mxu1 }
 0x217   :  { %v6582_v12 = vpop.f32.mrb[15].mxu1 }
 0x218   :  { %v2144_v15 = vadd.f32 %v6580_v10, %v6279_v5  ;;  %v7352_v12 = vld [vmem:[%s7796_s17] sm:$0xff]  }
 0x219   :  { %v7353_v5 = vld [vmem:[%s8916_s0] sm:$0xff]  }
 0x224   :  { %v6600_v13 = vpop.f32.mrb[24].mxu0 }
 0x225   :  { %v6601_v14 = vpop.f32.mrb[25].mxu0 }
 0x226   :  { %v6602_v16 = vadd.f32 %v6601_v14, %v6600_v13  ;;  %v6603_v17 = vpop.f32.mrb[26].mxu0  ;;  %v7354_v13 = vld [vmem:[%s7796_s17 + $0x8] sm:$0xff]  }
 0x227   :  { %v6604_v18 = vpop.f32.mrb[27].mxu0  ;;  %v7355_v14 = vld [vmem:[%s8916_s0 + $0x8] sm:$0xff]   ;;  %v7358_v17 = vld [vmem:[%s7796_s17 + $0x18] sm:$0xff]  }
 0x228   :  { %v2184_v19 = vadd.f32 %v6602_v16, %v2144_v15  ;;  %v7356_v15 = vld [vmem:[%s7796_s17 + $0x10] sm:$0xff]   ;;  %v7359_v18 = vld [vmem:[%s8916_s0 + $0x18] sm:$0xff]  }
 0x229   :  { %v7357_v16 = vld [vmem:[%s8916_s0 + $0x10] sm:$0xff]  }
 0x234   :  { %v6622_v21 = vpop.f32.mrb[16].mxu1 }
 0x235   :  { %v6623_v23 = vpop.f32.mrb[17].mxu1 }
 0x236   :  { %v6624_v24 = vadd.f32 %v6623_v23, %v6622_v21  ;;  %v6625_v46 = vpop.f32.mrb[18].mxu1  ;;  %v7361_v21 = vld [vmem:[%s8916_s0 + $0x20] sm:$0xff]   ;;  %v7362_v23 = vld [vmem:[%s7796_s17 + $0x28] sm:$0xff]  }
 0x237   :  { %v6626_v25 = vpop.f32.mrb[19].mxu1  ;;  %v7364_v46 = vld [vmem:[%s7796_s17 + $0x30] sm:$0xff]  }
 0x238   :  { %v2224_v59 = vadd.f32 %v6624_v24, %v2184_v19  ;;  %v7360_v19 = vld [vmem:[%s7796_s17 + $0x20] sm:$0xff]   ;;  %v7363_v24 = vld [vmem:[%s8916_s0 + $0x28] sm:$0xff]   ;;  %v7365_v25 = vld [vmem:[%s8916_s0 + $0x30] sm:$0xff]  }
 0x244   :  { %v6644_v26 = vpop.f32.mrb[28].mxu0 }
 0x245   :  { %v6645_v27 = vpop.f32.mrb[29].mxu0 }
 0x246   :  { %v6646_v30 = vadd.f32 %v6645_v27, %v6644_v26  ;;  %v6647_v33 = vpop.f32.mrb[30].mxu0  ;;  %v7367_v26 = vld [vmem:[%s8916_s0 + $0x38] sm:$0xff]   ;;  %v3015_v27 = vld [vmem:[%s8917_s5] sm:$0xff] }
 0x247   :  { %v6648_v31 = vpop.f32.mrb[31].mxu0  ;;  %vm3017_vm3 = vcmp.gt.f32.partialorder %v3015_v27, 0.5  ;;  %v7383_v27 = vld [vmem:[%s8927_s12 + $0x4] ss:$8 sps:$4 sm:$0xff]  }
 0x248   :  { %v2264_v32 = vadd.f32 %v6646_v30, %v2224_v59  ;;  %v7366_v59 = vld [vmem:[%s7796_s17 + $0x38] sm:$0xff]   ;;  %v3016_v30 = vld [vmem:[%s8918_s9] sm:$0xff]  ;;  %v3019_v33 = vsel %vm3017_vm3, 1, %v7631_v7  ;;  %s8921_s17 = sld [smem:[#allocation11_spill]] }
 0x249   :  { %vm3025_vm4 = vcmp.gt.f32.partialorder %v3016_v30, 0.5  ;;  %3021 = vperm.xlu0 %7172, %v3019_v33   ;;  %v7386_v30 = vld [vmem:[%s8927_s12 + $0x14] ss:$8 sps:$4 sm:$0xff]   ;;  %v7384_v33 = vld [vmem:[%s8927_s12 + $0x10] ss:$8 sps:$4 sm:$0xff]  }
 0x24a   :  { %v3027_v31 = vsel %vm3025_vm4, 1, %v7631_v7 }
 0x24d   :  { %3029 = vperm.xlu0 %7172, %v3027_v31   ;;  %v7389_v31 = vld [vmem:[%s8927_s12 + $0x24] ss:$8 sps:$4 sm:$0xff]  }
 0x254   :  { %v6666_v34 = vpop.f32.mrb[20].mxu1 }
 0x255   :  { %v6667_v35 = vpop.f32.mrb[21].mxu1 }
 0x256   :  { %v6668_v36 = vadd.f32 %v6667_v35, %v6666_v34  ;;  %v6669_v51 = vpop.f32.mrb[22].mxu1  ;;  %v8260_v34 = vld [vmem:[%s8920_s8] sm:$0x3] }
 0x257   :  { %v6670_v37 = vpop.f32.mrb[23].mxu1  ;;  %v2548_v51 = vrot.slane %v8260_v34, %v8003_v56 }
 0x258   :  { %v2304_v38 = vadd.f32 %v6668_v36, %v2264_v32  ;;  %v2656_v32 = vld [vmem:[%s8919_s3] sm:$0x3] }
 0x259   :  { %v2661_v35 = vrot.slane %v2656_v32, %v8003_v56  ;;  %v2665_v36 = vrot.slane %v2656_v32, %v8009_v58  ;;  %v7387_v32 = vld [vmem:[%s8927_s12 + $0x20] ss:$8 sps:$4 sm:$0xff]  }
 0x264   :  { %v6688_v39 = vpop.f32.mrb[32].mxu0 }
 0x265   :  { %v6689_v40 = vpop.f32.mrb[33].mxu0 }
 0x266   :  { %v6690_v41 = vadd.f32 %v6689_v40, %v6688_v39  ;;  %v6691_v29 = vpop.f32.mrb[34].mxu0 }
 0x267   :  { %v6692_v52 = vpop.f32.mrb[35].mxu0 }
 0x268   :  { %v2344_v42 = vadd.f32 %v6690_v41, %v2304_v38 }
 0x274   :  { %v6710_v28 = vpop.f32.mrb[24].mxu1 }
 0x275   :  { %v6711_v43 = vpop.f32.mrb[25].mxu1 }
 0x276   :  { %v6712_v44 = vadd.f32 %v6711_v43, %v6710_v28  ;;  %v6713_v45 = vpop.f32.mrb[26].mxu1 }
 0x277   :  { %v6714_v49 = vpop.f32.mrb[27].mxu1 }
 0x278   :  { %v2384_v57 = vadd.f32 %v6712_v44, %v2344_v42  ;;  %v7368_v49 = vld [vmem:[%s8921_s17] sm:$0xff]  }
 0x284   :  { %v6732_v60 = vpop.f32.mrb[36].mxu0  ;;  %v2527_v61 = vpop.f32.mrb[28].mxu1 }
 0x285   :  { %v8210_v50 = vadd.f32 %v2527_v61, %v2443_v54  ;;  %v6733_v62 = vpop.f32.mrb[37].mxu0  ;;  %v2529_v20 = vpop.f32.mrb[29].mxu1  ;;  %v6442_v61 = vld [vmem:[%s8922_s14] ss:$0 sm:$0xff] }
 0x286   :  { %v6734_v2 = vadd.f32 %v6733_v62, %v6732_v60  ;;  %v8213_v3 = vadd.f32 %v2529_v20, %v2447_v55  ;;  %v2531_v22 = vpop.f32.mrb[30].mxu1  ;;  %v6735_v63 = vpop.f32.mrb[38].mxu0  ;;  %v7369_v55 = vld [vmem:[%s8921_s17 + $0x8] sm:$0xff]   ;;  %v6451_v20 = vld [vmem:[%s8923_s19] ss:$0 sm:$0xff] }
 0x287   :  { %v2532_v4 = vpop.f32.mrb[31].mxu1  ;;  %v6736_v6 = vpop.f32.mrb[39].mxu0 }
 0x288   :  { %v2424_v8 = vadd.f32 %v6734_v2, %v2384_v57  ;;  %v5440_v9 = vmul.f32 %v6506_v0, %v8213_v3  ;;  %v2655_v10 = vpack.c.bf16 %v8213_v3, %v8213_v3  ;;  %v3018_v2 = vld [vmem:[%s8924_s24] sm:$0xff] }
 0x289   :  { %v3026_v6 = vld [vmem:[%s8925_s30] sm:$0xff] }
 0x28a   :  { %v2542_v11 = vpack.c.bf16 %v2424_v8, %v2424_v8  ;;  %5441 = vadd.xlane.f32.xlu1 %v5440_v9  ;;  %2781 = vmatmul.mubr.bf16.vlgmr.msra.gmra.mrb[32].mxu1 %v2655_v10 }
 0x28b   :  { %6910 = vmatprep.mubr.msk.bf16.mxu1 %vm7630_vm0, %v7629_v1  ;;  %6895 = vmatpush3.bf16.msra.mxu1 %v7353_v5 }
 0x28c   :  { %6425 = vmatmul.mubr.msk.bf16.vlgmr.msra.gmra.mrb[40].mxu0 %vm714_vm2, %v2542_v11  ;;  %6896 = vmatprep.subr.bf16.mxu1 %v7629_v1 }
 0x28d   :  { %6890 = vmatprep.mubr.msk.bf16.mxu0 %vm7630_vm0, %v7629_v1  ;;  %6875 = vmatpush3.bf16.msra.mxu0 %v7352_v12 }
 0x28e   :  { %6876 = vmatprep.subr.bf16.mxu0 %v7629_v1 }
 0x28f   :  { %6897 = vmatpush3.bf16.msra.mxu1 %v7355_v14 }
 0x290   :  { %6898 = vmatprep.subr.bf16.mxu1 %v7629_v1 }
 0x291   :  { %6877 = vmatpush3.bf16.msra.mxu0 %v7354_v13  ;;  %v7370_v13 = vld [vmem:[%s8926_s6] sm:$0xff]  }
 0x292   :  { %6878 = vmatprep.subr.bf16.mxu0 %v7629_v1 }
 0x293   :  { %6899 = vmatpush3.bf16.msra.mxu1 %v7357_v16 }
 0x294   :  { %6900 = vmatprep.subr.bf16.mxu1 %v7629_v1 }
 0x295   :  { %6879 = vmatpush3.bf16.msra.mxu0 %v7356_v15 }
 0x296   :  { %6880 = vmatprep.subr.bf16.mxu0 %v7629_v1 }
 0x297   :  { %6901 = vmatpush3.bf16.msra.mxu1 %v7359_v18 }
 0x298   :  { %6902 = vmatprep.subr.bf16.mxu1 %v7629_v1 }
 0x299   :  { %6881 = vmatpush3.bf16.msra.mxu0 %v7358_v17 }
 0x29a   :  { %6882 = vmatprep.subr.bf16.mxu0 %v7629_v1 }
 0x29b   :  { %6903 = vmatpush3.bf16.msra.mxu1 %v7361_v21  ;;  %v7372_v21 = vld [vmem:[%s8926_s6 + $0x10] sm:$0xff]  }
 0x29c   :  { %6904 = vmatprep.subr.bf16.mxu1 %v7629_v1 }
 0x29d   :  { %6883 = vmatpush3.bf16.msra.mxu0 %v7360_v19  ;;  %v7371_v19 = vld [vmem:[%s8926_s6 + $0x8] sm:$0xff]  }
 0x29e   :  { %6884 = vmatprep.subr.bf16.mxu0 %v7629_v1 }
 0x29f   :  { %6905 = vmatpush3.bf16.msra.mxu1 %v7363_v24  ;;  %v7374_v24 = vld [vmem:[%s8926_s6 + $0x20] sm:$0xff]  }
 0x2a0   :  { %6906 = vmatprep.subr.bf16.mxu1 %v7629_v1 }
 0x2a1   :  { %6885 = vmatpush3.bf16.msra.mxu0 %v7362_v23  ;;  %v7373_v23 = vld [vmem:[%s8926_s6 + $0x18] sm:$0xff]  }
 0x2a2   :  { %6886 = vmatprep.subr.bf16.mxu0 %v7629_v1 }
 0x2a3   :  { %6907 = vmatpush3.bf16.msra.mxu1 %v7365_v25  ;;  %v7376_v25 = vld [vmem:[%s8926_s6 + $0x30] sm:$0xff]  }
 0x2a4   :  { %6908 = vmatprep.subr.bf16.mxu1 %v7629_v1 }
 0x2a5   :  { %6887 = vmatpush3.bf16.msra.mxu0 %v7364_v46  ;;  %v7375_v46 = vld [vmem:[%s8926_s6 + $0x28] sm:$0xff]  }
 0x2a6   :  { %6888 = vmatprep.subr.bf16.mxu0 %v7629_v1 }
 0x2a7   :  { %6909 = vmatpush3.bf16.msra.mxu1 %v7367_v26  ;;  %v7381_v26 = vld [vmem:[%s8927_s12] ss:$8 sps:$4 sm:$0xff]  }
 0x2a8   :  { %3277 = vmatprep.subr.bf16.mxu1 %v7383_v27  ;;  %v2552_v27 = vrot.slane %v8260_v34, %v8009_v58 }
 0x2a9   :  { %6889 = vmatpush3.bf16.msra.mxu0 %v7366_v59  ;;  %v7377_v59 = vld [vmem:[%s8926_s6 + $0x38] sm:$0xff]  }
 0x2aa   :  { %6914 = vmatprep.subr.bf16.mxu0 %v7629_v1 }
 0x2c8   :  { %v3022_v60 = vpop.permute.xlu0 %3021 }
 0x2c9   :  { %vm3023_vm5 = vcmp.eq.s32.totalorder %v3022_v60, 1 }
 0x2cc   :  { %v3030_v62 = vpop.permute.xlu0 %3029 }
 0x2cd   :  { %vm3031_vm6 = vcmp.eq.s32.totalorder %v3030_v62, 1 }
 0x35d   :  { %v2782_v37 = vpop.f32.mrb[32].mxu1 }
 0x35e   :  { %v2783_v38 = vadd.f32 %v2782_v37, %v2661_v35  ;;  %v2784_v39 = vpop.f32.mrb[33].mxu1  ;;  %v6460_v35 = vld [vmem:[%s8928_s20] ss:$0 sm:$0xff] }
 0x35f   :  { %v2785_v40 = vadd.f32 %v2784_v39, %v2665_v36  ;;  %v2632_v41 = vpop.f32.mrb[40].mxu0  ;;  %v2786_v29 = vpop.f32.mrb[34].mxu1 }
 0x360   :  { %v2789_v52 = vmax.f32 %v2783_v38, 0.0  ;;  %v8266_v42 = vadd.f32 %v2632_v41, %v2548_v51  ;;  %v8268_v28 = vpop.f32.mrb[41].mxu0  ;;  %v2787_v43 = vpop.f32.mrb[35].mxu1  ;;  %v7378_v41 = vld [vmem:[%s8929_s4] sm:$0xff]  }
 0x361   :  { %v2790_v44 = vmax.f32 %v2785_v40, 0.0  ;;  %v2636_v45 = vpop.f32.mrb[42].mxu0  ;;  %v7380_v43 = vld [vmem:[%s8929_s4 + $0x10] sm:$0xff]  }
 0x362   :  { %v2807_v57 = vpack.c.bf16 %v2789_v52, %v2789_v52  ;;  %v2637_v53 = vpop.f32.mrb[43].mxu0  ;;  %v7379_v52 = vld [vmem:[%s8929_s4 + $0x8] sm:$0xff]   ;;  %v7392_v45 = vld [vmem:[%s8927_s12 + $0x34] ss:$8 sps:$4 sm:$0xff]  }
 0x363   :  { %v2919_v54 = vpack.c.bf16 %v2790_v44, %v2790_v44 }
 0x364   :  { %6891 = vmatmul.mubr.bf16.vlgmr.msra.gmra.mrb[44].mxu0 %v2807_v57  ;;  %v6464_v57 = vld [vmem:[%s8930_s15] ss:$0 sm:$0xff] }
 0x365   :  { %6911 = vmatmul.mubr.bf16.vlgmr.msra.gmra.mrb[36].mxu1 %v2919_v54  ;;  %6915 = vmatpush3.bf16.msra.mxu0 %v7368_v49  ;;  %v7390_v49 = vld [vmem:[%s8927_s12 + $0x30] ss:$8 sps:$4 sm:$0xff]  }
 0x366   :  { %6916 = vmatprep.subr.bf16.mxu0 %v7629_v1  ;;  %6918 = vmatprep.mubr.msk.bf16.mxu0 %vm7630_vm0, %v7629_v1 }
 0x367   :  { %3309 = vmatprep.mubr.bf16.mxu1 %v7631_v7  ;;  %3278 = vmatpush1.bf16.msra.mxu1 %v7381_v26 }
 0x368   :  { %3279 = vmatprep.subr.bf16.mxu1 %v7386_v30 }
 0x369   :  { %6917 = vmatpush3.bf16.msra.mxu0 %v7369_v55 }
 0x36a   :  { %6922 = vmatprep.subr.bf16.mxu0 %v7629_v1 }
 0x36b   :  { %3280 = vmatpush1.bf16.msra.mxu1 %v7384_v33 }
 0x36c   :  { %3281 = vmatprep.subr.bf16.mxu1 %v7389_v31  ;;  %v6508_v31 = vld [vmem:[%s7826_s21 + $0x1] ss:$0 sm:$0xff] }
 0x36f   :  { %3282 = vmatpush1.bf16.msra.mxu1 %v7387_v32 }
 0x370   :  { %3283 = vmatprep.subr.bf16.mxu1 %v7392_v45 }
 0x373   :  { %3284 = vmatpush1.bf16.msra.mxu1 %v7390_v49  ;;  %v8376_v49 = vpop.xlane.xlu1 %5441 }
 0x374   :  { %6952 = vmatprep.subr.bf16.mxu1 %v7629_v1 }
 0x437   :  { %v2897_v0 = vpop.f32.mrb[44].mxu0 }
 0x438   :  { %v2898_v22 = vadd.f32 %v6442_v61, %v2897_v0  ;;  %v6892_v63 = vpop.f32.mrb[45].mxu0  ;;  %v3009_v4 = vpop.f32.mrb[36].mxu1  ;;  %v7393_v61 = vld [vmem:[%s8931_s16] sm:$0xff]   ;;  %v7395_v0 = vld [vmem:[%s8931_s16 + $0x10] sm:$0xff]  }
 0x439   :  { %v3010_v8 = vadd.f32 %v6451_v20, %v3009_v4  ;;  %v2900_v9 = vpop.f32.mrb[46].mxu0  ;;  %v6912_v10 = vpop.f32.mrb[37].mxu1  ;;  %v7396_v4 = vld [vmem:[%s8931_s16 + $0x18] sm:$0xff]  }
 0x43a   :  { %v3024_v11 = vsel %vm3023_vm5, %v3018_v2, %v2898_v22  ;;  %v6893_v12 = vpop.f32.mrb[47].mxu0  ;;  %v3012_v5 = vpop.f32.mrb[38].mxu1  ;;  %v7398_v9 = vld [vmem:[%s8931_s16 + $0x28] sm:$0xff]   ;;  %v6482_v10 = vld [vmem:[%s8932_s18] ss:$0 sm:$0xff] }
 0x43b   :  { %v3037_v14 = vpack.c.bf16 %v3024_v11, %v3024_v11  ;;  %v8282_v15 = vsub.f32 %v3024_v11, %v2898_v22  ;;  %v3032_v16 = vsel %vm3031_vm6, %v3026_v6, %v3010_v8  ;;  %v6913_v17 = vpop.f32.mrb[39].mxu1  ;;  %v7399_v11 = vld [vmem:[%s8931_s16 + $0x30] sm:$0xff]   ;;  %v7400_v5 = vld [vmem:[%s8931_s16 + $0x38] sm:$0xff]  }
 0x43c   :  { %v8284_v18 = vsub.f32 %v3032_v16, %v3010_v8  ;;  %v3324_v44 = vpack.c.bf16 %v3032_v16, %v3032_v16  ;;  %v7397_v8 = vld [vmem:[%s8931_s16 + $0x20] sm:$0xff]  }
 0x43d   :  { %6919 = vmatmul.mubr.msk.bf16.vlgmr.msra.gmra.mrb[48].mxu0 %vm200_vm1, %v3037_v14  ;;  %v7401_v16 = vld [vmem:[%s8933_s22] ss:$8 sps:$4 sm:$0xff]   ;;  %v7403_v17 = vld [vmem:[%s8933_s22 + $0x4] ss:$8 sps:$4 sm:$0xff]  }
 0x43e   :  { %6923 = vmatpush3.bf16.msra.mxu0 %v7370_v13  ;;  %6938 = vmatprep.mubr.msk.bf16.mxu0 %vm7630_vm0, %v7629_v1 }
 0x43f   :  { %6924 = vmatprep.subr.bf16.mxu0 %v7629_v1 }
 0x442   :  { %6925 = vmatpush3.bf16.msra.mxu0 %v7371_v19  ;;  %v7406_v19 = vld [vmem:[%s8933_s22 + $0x14] ss:$8 sps:$4 sm:$0xff]  }
 0x443   :  { %6926 = vmatprep.subr.bf16.mxu0 %v7629_v1 }
 0x446   :  { %6927 = vmatpush3.bf16.msra.mxu0 %v7372_v21  ;;  %v7404_v21 = vld [vmem:[%s8933_s22 + $0x10] ss:$8 sps:$4 sm:$0xff]  }
 0x447   :  { %6928 = vmatprep.subr.bf16.mxu0 %v7629_v1 }
 0x44a   :  { %6929 = vmatpush3.bf16.msra.mxu0 %v7373_v23  ;;  %v7409_v23 = vld [vmem:[%s8933_s22 + $0x24] ss:$8 sps:$4 sm:$0xff]  }
 0x44b   :  { %6930 = vmatprep.subr.bf16.mxu0 %v7629_v1 }
 0x44e   :  { %6931 = vmatpush3.bf16.msra.mxu0 %v7374_v24  ;;  %v7407_v24 = vld [vmem:[%s8933_s22 + $0x20] ss:$8 sps:$4 sm:$0xff]  }
 0x44f   :  { %6932 = vmatprep.subr.bf16.mxu0 %v7629_v1 }
 0x452   :  { %6933 = vmatpush3.bf16.msra.mxu0 %v7375_v46  ;;  %v7412_v46 = vld [vmem:[%s8933_s22 + $0x34] ss:$8 sps:$4 sm:$0xff]  }
 0x453   :  { %6934 = vmatprep.subr.bf16.mxu0 %v7629_v1 }
 0x456   :  { %6935 = vmatpush3.bf16.msra.mxu0 %v7376_v25  ;;  %v7410_v25 = vld [vmem:[%s8933_s22 + $0x30] ss:$8 sps:$4 sm:$0xff]  }
 0x457   :  { %6936 = vmatprep.subr.bf16.mxu0 %v7629_v1 }
 0x45a   :  { %6937 = vmatpush3.bf16.msra.mxu0 %v7377_v59  ;;  %v3222_v59 = vld [vmem:[%s8934_s23] sm:$0x3] }
 0x45b   :  { %6942 = vmatprep.subr.bf16.mxu0 %v7629_v1  ;;  %v3231_v26 = vrot.slane %v3222_v59, %v8009_v58 }
 0x510   :  { %v3094_v36 = vpop.f32.mrb[48].mxu0 }
 0x511   :  { %v3095_v51 = vadd.f32 %v6460_v35, %v3094_v36  ;;  %v6920_v37 = vpop.f32.mrb[49].mxu0 }
 0x512   :  { %v3097_v38 = vpop.f32.mrb[50].mxu0 }
 0x513   :  { %v3100_v39 = vmax.f32 %v3095_v51, 0.0  ;;  %v6921_v40 = vpop.f32.mrb[51].mxu0  ;;  %v8363_v51 = vadd.f32 %v8268_v28, %v2552_v27  ;;  %v6512_v38 = vld [vmem:[%s7826_s21 + $0x3] ss:$0 sm:$0xff]  ;;  %v6509_v27 = vld [vmem:[%s8938_s1 + $0x1] ss:$0 sm:$0xff] }
 0x514   :  { %v3743_v40 = vmul.f32 %v8213_v3, %v8213_v3 }
 0x515   :  { %v3117_v29 = vpack.c.bf16 %v3100_v39, %v3100_v39  ;;  %v5482_v39 = vmul.f32 %v6512_v38, %v8363_v51 }
 0x517   :  { %6939 = vmatmul.mubr.bf16.vlgmr.msra.gmra.mrb[52].mxu0 %v3117_v29 }
 0x518   :  { %6943 = vmatpush3.bf16.msra.mxu0 %v7378_v41  ;;  %6948 = vmatprep.mubr.msk.bf16.mxu0 %vm7630_vm0, %v7629_v1  ;;  %v6487_v41 = vld [vmem:[%s8935_s26] ss:$0 sm:$0xff] }
 0x519   :  { %6944 = vmatprep.subr.bf16.mxu0 %v7629_v1 }
 0x51c   :  { %6945 = vmatpush3.bf16.msra.mxu0 %v7379_v52 }
 0x51d   :  { %6946 = vmatprep.subr.bf16.mxu0 %v7629_v1 }
 0x520   :  { %6947 = vmatpush3.bf16.msra.mxu0 %v7380_v43 }
 0x521   :  { %3571 = vmatprep.subr.bf16.mxu0 %v7403_v17 }
 0x523   :  { %6949 = vmatmul.mubr.msk.bf16.vlgmr.msra.gmra.mrb[56].mxu0 %vm3350_vm7, %v3324_v44 }
 0x524   :  { %3603 = vmatprep.mubr.bf16.mxu0 %v7631_v7  ;;  %v7394_v7 = vld [vmem:[%s8931_s16 + $0x8] sm:$0xff]   ;;  %3572 = vmatpush1.bf16.msra.mxu0 %v7401_v16 }
 0x525   :  { %3573 = vmatprep.subr.bf16.mxu0 %v7406_v19 }
 0x528   :  { %3574 = vmatpush1.bf16.msra.mxu0 %v7404_v21 }
 0x529   :  { %3575 = vmatprep.subr.bf16.mxu0 %v7409_v23 }
 0x52c   :  { %3576 = vmatpush1.bf16.msra.mxu0 %v7407_v24 }
 0x52d   :  { %3577 = vmatprep.subr.bf16.mxu0 %v7412_v46 }
 0x530   :  { %3578 = vmatpush1.bf16.msra.mxu0 %v7410_v25 }
 0x531   :  { %6972 = vmatprep.subr.mxu0 %v7629_v1 }
 0x5ea   :  { %v3207_v53 = vpop.f32.mrb[52].mxu0 }
 0x5eb   :  { %v3208_v54 = vadd.f32 %v6464_v57, %v3207_v53  ;;  %v6940_v55 = vpop.f32.mrb[53].mxu0 }
 0x5ec   :  { %v3210_v60 = vpop.f32.mrb[54].mxu0 }
 0x5ed   :  { %v3221_v62 = vpack.c.bf16 %v3208_v54, %v3208_v54  ;;  %v6941_v20 = vpop.f32.mrb[55].mxu0 }
 0x5ef   :  { %6481 = vmatmul.mubr.msk.bf16.vlgmr.msra.gmra.mrb[40].mxu1 %vm714_vm2, %v3221_v62  ;;  %v3227_v62 = vrot.slane %v3222_v59, %v8003_v56 }
 0x5f0   :  { %6953 = vmatpush3.bf16.msra.mxu1 %v7393_v61  ;;  %6968 = vmatprep.mubr.msk.bf16.mxu1 %vm7630_vm0, %v7629_v1 }
 0x5f1   :  { %6954 = vmatprep.subr.bf16.mxu1 %v7629_v1 }
 0x5f4   :  { %6955 = vmatpush3.bf16.msra.mxu1 %v7394_v7 }
 0x5f5   :  { %6956 = vmatprep.subr.bf16.mxu1 %v7629_v1 }
 0x5f6   :  { %v3388_v2 = vpop.f32.mrb[56].mxu0 }
 0x5f7   :  { %v6950_v22 = vpop.f32.mrb[57].mxu0  ;;  %v3389_v12 = vadd.f32 %v6482_v10, %v3388_v2  ;;  %v3516_v2 = vld [vmem:[%s8936_s28] sm:$0x3] }
 0x5f8   :  { %v3391_v63 = vpop.f32.mrb[58].mxu0  ;;  %6957 = vmatpush3.bf16.msra.mxu1 %v7395_v0  ;;  %v3521_v22 = vrot.slane %v3516_v2, %v8003_v56  ;;  %v4567_v56 = vmul.f32 %v8363_v51, %v8363_v51 }
 0x5f9   :  { %v6951_v6 = vpop.f32.mrb[59].mxu0  ;;  %6958 = vmatprep.subr.bf16.mxu1 %v7629_v1  ;;  %v3394_v13 = vmax.f32 %v3389_v12, 0.0  ;;  %v3525_v63 = vrot.slane %v3516_v2, %v8009_v58 }
 0x5fb   :  { %v3411_v14 = vpack.c.bf16 %v3394_v13, %v3394_v13 }
 0x5fc   :  { %6959 = vmatpush3.bf16.msra.mxu1 %v7396_v4 }
 0x5fd   :  { %6960 = vmatprep.subr.bf16.mxu1 %v7629_v1 }
 0x600   :  { %6961 = vmatpush3.bf16.msra.mxu1 %v7397_v8 }
 0x601   :  { %6962 = vmatprep.subr.bf16.mxu1 %v7629_v1 }
 0x604   :  { %6963 = vmatpush3.bf16.msra.mxu1 %v7398_v9  ;;  %v6510_v9 = vld [vmem:[%s7826_s21 + $0x2] ss:$0 sm:$0xff]  ;;  %s8937_s21 = sld [smem:[#allocation27_spill]] }
 0x605   :  { %6964 = vmatprep.subr.bf16.mxu1 %v7629_v1 }
 0x608   :  { %6965 = vmatpush3.bf16.msra.mxu1 %v7399_v11 }
 0x609   :  { %6966 = vmatprep.subr.bf16.mxu1 %v7629_v1 }
 0x60a   :  { %v7417_v58 = vld [vmem:[%s8937_s21 + $0xc0] sm:$0xff]   ;;  %v7421_v16 = vld [vmem:[%s8937_s21 + $0xc8] sm:$0xff]   ;;  %v7425_v23 = vld [vmem:[%s8937_s21 + $0xd0] sm:$0xff]  }
 0x60b   :  { %v7423_v19 = vld [vmem:[%s8937_s21 + $0x88] sm:$0xff]   ;;  %v7427_v46 = vld [vmem:[%s8937_s21 + $0x90] sm:$0xff]  }
 0x60c   :  { %6967 = vmatpush3.bf16.msra.mxu1 %v7400_v5 }
 0x60d   :  { %6982 = vmatprep.subr.mxu1 %v7629_v1 }
 0x60f   :  { %6969 = vmatmul.mubr.bf16.vlgmr.msra.gmra.mrb[44].mxu1 %v3411_v14  ;;  %v7419_v14 = vld [vmem:[%s8937_s21 + $0x80] sm:$0xff]  }
 0x610   :  { %6984 = vmatprep.mubr.msk.f32.mxu1 %vm7630_vm0, %v7629_v1 }
 0x6c2   :  { %v3311_v30 = vpop.f32.mrb[40].mxu1 }
 0x6c3   :  { %v3313_v33 = vpop.f32.mrb[41].mxu1  ;;  %v8391_v0 = vadd.f32 %v3311_v30, %v3227_v62 }
 0x6c4   :  { %v8360_v32 = vadd.f32 %v3313_v33, %v3231_v26  ;;  %v3315_v35 = vpop.f32.mrb[42].mxu1  ;;  %v7429_v26 = vld [vmem:[%s8937_s21 + $0xd8] sm:$0xff]   ;;  %v6507_v33 = vld [vmem:[%s8938_s1] ss:$0 sm:$0xff] }
 0x6c5   :  { %v3316_v36 = vpop.f32.mrb[43].mxu1  ;;  %v6513_v35 = vld [vmem:[%s8938_s1 + $0x3] ss:$0 sm:$0xff] }
 0x6c6   :  { %v5454_v37 = vmul.f32 %v6508_v31, %v8360_v32  ;;  %v3748_v34 = vmul.f32 %v8360_v32, %v8360_v32  ;;  %v7431_v31 = vld [vmem:[%s8937_s21 + $0x98] sm:$0xff]   ;;  %v6511_v36 = vld [vmem:[%s8938_s1 + $0x2] ss:$0 sm:$0xff]  ;;  %s7632_s1 = smov [#allocation2]  }
 0x6c8   :  { %5455 = vadd.xlane.f32.xlu1 %v5454_v37  ;;  %v7433_v37 = vld [vmem:[%s8937_s21 + $0xe0] sm:$0xff]  }
 0x6cc   :  { %5483 = vadd.xlane.f32.xlu1 %v5482_v39  ;;  %v8461_v39 = vand.u32 127, %v314_v47 }
 0x6ce   :  { %vm3739_vm8 = vcmp.eq.s32.totalorder %v7989_v48, %v8461_v39  ;;  %vm6127_vm15 = vcmp.eq.s32.totalorder %v8461_v39, 1  ;;  %vm6136_vm3 = vcmp.eq.s32.totalorder %v8461_v39, 4  ;;  %vm6139_vm4 = vcmp.eq.s32.totalorder %v8461_v39, 5 }
 0x6cf   :  { %v8469_v47 = vsel %vm3739_vm8, 1.0, %v7629_v1 }
 0x6d0   :  { %3749 = vadd.xlane.f32.xlu1 %v3748_v34 }
 0x6d4   :  { %3744 = vadd.xlane.f32.xlu1 %v3743_v40 }
 0x6e2   :  { %v3501_v29 = vpop.f32.mrb[44].mxu1 }
 0x6e3   :  { %v3502_v52 = vadd.f32 %v6487_v41, %v3501_v29  ;;  %v6970_v28 = vpop.f32.mrb[45].mxu1  ;;  %v5448_v41 = vadd.f32 %v6507_v33, %v8376_v49 }
 0x6e4   :  { %v3504_v43 = vpop.f32.mrb[46].mxu1  ;;  %v7435_v28 = vld [vmem:[%s8937_s21 + $0xa0] sm:$0xff]  }
 0x6e5   :  { %v3515_v44 = vpack.c.bf16 %v3502_v52, %v3502_v52  ;;  %v6971_v45 = vpop.f32.mrb[47].mxu1 }
 0x6e7   :  { %6504 = vmatmul.mubr.msk.bf16.vlgmr.msra.gmra.mrb[60].mxu0 %vm714_vm2, %v3515_v44  ;;  %vm6133_vm2 = vcmp.eq.s32.totalorder %v8461_v39, 3 }
 0x6e8   :  { %6974 = vmatprep.mubr.msk.f32.mxu0 %vm7630_vm0, %v7629_v1 }
 0x755   :  { %v8378_v57 = vpop.xlane.xlu1 %5455 }
 0x756   :  { %v5462_v38 = vadd.f32 %v6509_v27, %v8378_v57 }
 0x758   :  { %v5491_v43 = vmax.f32 %v5448_v41, %v5462_v38 }
 0x759   :  { %v8380_v53 = vpop.xlane.xlu1 %5483 }
 0x75a   :  { %v5490_v29 = vadd.f32 %v6513_v35, %v8380_v53 }
 0x75d   :  { %v3750_v54 = vpop.xlane.xlu1 %3749 }
 0x75e   :  { %7453 = vrsqrt.f32 %v3750_v54 }
 0x761   :  { %v3745_v55 = vpop.xlane.xlu1 %3744 }
 0x762   :  { %7455 = vrsqrt.f32 %v3745_v55 }
 0x768   :  { %v7454_v60 = vpop.eup %7453 }
 0x769   :  { %v8383_v61 = vmul.f32 %v7454_v60, %v8360_v32 }
 0x76b   :  { %6973 = vmatpush3.xpose.msra.mxu0 %v8383_v61 }
 0x76c   :  { %v7456_v20 = vpop.eup %7455  ;;  %6977 = vmatprep.subr.mxu0 %v7629_v1 }
 0x76d   :  { %v8389_v7 = vmul.f32 %v7456_v20, %v8213_v3 }
 0x76f   :  { %6975 = vmatmul.mubr.f32.vlgmr.msra.gmra.mrb[64].mxu0 %v8389_v7 }
 0x770   :  { %6978 = vmatpush3.xpose.msra.mxu0 %v8391_v0  ;;  %6979 = vmatprep.mubr.msk.f32.mxu0 %vm7630_vm0, %v7629_v1 }
 0x771   :  { %6987 = vmatprep.subr.mxu0 %v7629_v1 }
 0x773   :  { %6980 = vmatmul.mubr.f32.vlgmr.msra.gmra.mrb[66].mxu0 %v8210_v50 }
 0x774   :  { %6989 = vmatprep.mubr.msk.f32.mxu0 %vm7630_vm0, %v7629_v1 }
 0x7ba   :  { %v3605_v4 = vpop.f32.mrb[60].mxu0 }
 0x7bb   :  { %v8404_v6 = vadd.f32 %v3605_v4, %v3521_v22  ;;  %v3607_v8 = vpop.f32.mrb[61].mxu0 }
 0x7bc   :  { %v8407_v10 = vadd.f32 %v3607_v8, %v3525_v63  ;;  %v3609_v11 = vpop.f32.mrb[62].mxu0 }
 0x7bd   :  { %v3610_v12 = vpop.f32.mrb[63].mxu0  ;;  %6988 = vmatpush3.xpose.msra.mxu0 %v8404_v6 }
 0x7be   :  { %v5468_v5 = vmul.f32 %v6510_v9, %v8407_v10  ;;  %v3753_v13 = vmul.f32 %v8407_v10, %v8407_v10  ;;  %6997 = vmatprep.subr.mxu0 %v7629_v1 }
 0x7c0   :  { %5469 = vadd.xlane.f32.xlu0 %v5468_v5  ;;  %3754 = vadd.xlane.f32.xlu1 %v3753_v13 }
 0x7c1   :  { %6990 = vmatmul.mubr.f32.vlgmr.msra.gmra.mrb[68].mxu0 %v8210_v50 }
 0x7c2   :  { %6998 = vmatpush3.xpose.msra.mxu0 %v8210_v50  ;;  %6999 = vmatprep.mubr.msk.f32.mxu0 %vm7630_vm0, %v7629_v1 }
 0x7c3   :  { %7007 = vmatprep.subr.mxu0 %v7629_v1 }
 0x7c4   :  { %4568 = vadd.xlane.f32.xlu1 %v4567_v56 }
 0x7c5   :  { %7000 = vmatmul.mubr.f32.vlgmr.msra.gmra.mrb[70].mxu0 %v8391_v0 }
 0x7c6   :  { %7008 = vmatpush3.xpose.msra.mxu0 %v8210_v50  ;;  %7009 = vmatprep.mubr.msk.f32.mxu0 %vm7630_vm0, %v7629_v1 }
 0x7c7   :  { %7017 = vmatprep.subr.mxu0 %v7629_v1 }
 0x7c9   :  { %7010 = vmatmul.mubr.f32.vlgmr.msra.gmra.mrb[72].mxu0 %v8404_v6 }
 0x7ca   :  { %7018 = vmatpush3.xpose.msra.mxu0 %v8391_v0  ;;  %7019 = vmatprep.mubr.msk.f32.mxu0 %vm7630_vm0, %v7629_v1 }
 0x7cb   :  { %7027 = vmatprep.subr.mxu0 %v7629_v1 }
 0x7cd   :  { %7020 = vmatmul.mubr.f32.vlgmr.msra.gmra.mrb[74].mxu0 %v8266_v42 }
 0x7ce   :  { %7028 = vmatpush3.xpose.msra.mxu0 %v8404_v6  ;;  %7029 = vmatprep.mubr.msk.f32.mxu0 %vm7630_vm0, %v7629_v1 }
 0x7cf   :  { %7037 = vmatprep.subr.mxu0 %v7629_v1 }
 0x7d1   :  { %7030 = vmatmul.mubr.f32.vlgmr.msra.gmra.mrb[76].mxu0 %v8266_v42 }
 0x7d2   :  { %7038 = vmatpush3.xpose.msra.mxu0 %v8266_v42  ;;  %7039 = vmatprep.mubr.msk.f32.mxu0 %vm7630_vm0, %v7629_v1 }
 0x7d3   :  { %7047 = vmatprep.subr.mxu0 %v7629_v1 }
 0x7d5   :  { %7040 = vmatmul.mubr.f32.vlgmr.msra.gmra.mrb[78].mxu0 %v8391_v0 }
 0x7d6   :  { %7048 = vmatpush3.xpose.msra.mxu0 %v8266_v42  ;;  %7049 = vmatprep.mubr.msk.f32.mxu0 %vm7630_vm0, %v7629_v1 }
 0x7d7   :  { %6835 = vmatprep.subr.bf16.mxu0 %v7417_v58 }
 0x7d9   :  { %7050 = vmatmul.mubr.f32.vlgmr.msra.gmra.mrb[80].mxu0 %v8404_v6 }
 0x7da   :  { %6836 = vmatpush3.bf16.msra.mxu0 %v7419_v14 }
 0x7db   :  { %6837 = vmatprep.subr.bf16.mxu0 %v7421_v16 }
 0x7de   :  { %6838 = vmatpush3.bf16.msra.mxu0 %v7423_v19 }
 0x7df   :  { %6839 = vmatprep.subr.bf16.mxu0 %v7425_v23 }
 0x7e2   :  { %6840 = vmatpush3.bf16.msra.mxu0 %v7427_v46 }
 0x7e3   :  { %6841 = vmatprep.subr.bf16.mxu0 %v7429_v26 }
 0x7e6   :  { %6842 = vmatpush3.bf16.msra.mxu0 %v7431_v31 }
 0x7e7   :  { %6843 = vmatprep.subr.bf16.mxu0 %v7433_v37 }
 0x7ea   :  { %6844 = vmatpush3.bf16.msra.mxu0 %v7435_v28 }
 0x842   :  { %v3824_v17 = vpop.f32.mrb[64].mxu0 }
 0x843   :  { %v6976_v21 = vpop.f32.mrb[65].mxu0  ;;  %v3828_v57 = vmul.f32 14.285714, %v3824_v17 }
 0x845   :  { %v3904_v22 = vmul.f32 %v8469_v47, %v3828_v57 }
 0x846   :  { %v3895_v24 = vpop.f32.mrb[66].mxu0 }
 0x847   :  { %v3899_v25 = vsub.f32 0.0, %v3895_v24  ;;  %v6981_v59 = vpop.f32.mrb[67].mxu0  ;;  %v3906_v11 = vsel %vm3905_vm9, %v3904_v22, 0.0  ;;  %v7442_v22 = vld [vmem:[%s8937_s21 + $0xb0] sm:$0xff]  }
 0x848   :  { %v3907_v12 = vrot.slane %v3906_v11, 4 }
 0x849   :  { %v3900_v30 = vmul.f32 1.442695, %v3899_v25 }
 0x84a   :  { %v3908_v13 = vadd.f32 %v3907_v12, %v3906_v11  ;;  %v7430_v11 = vld [vmem:[%s8937_s21 + $0x68] sm:$0xff]  }
 0x84b   :  { %7457 = vpow2.f32 %v3900_v30  ;;  %v7432_v12 = vld [vmem:[%s8937_s21 + $0x28] sm:$0xff]  }
 0x84c   :  { %v3909_v46 = vrot.slane %v3908_v13, 2 }
 0x84d   :  { %v5470_v34 = vpop.xlane.xlu0 %5469  ;;  %v3755_v40 = vpop.xlane.xlu1 %3754 }
 0x84e   :  { %v5476_v52 = vadd.f32 %v6511_v36, %v5470_v34  ;;  %7459 = vrsqrt.f32 %v3755_v40  ;;  %v3910_v31 = vadd.f32 %v3909_v46, %v3908_v13  ;;  %v7413_v34 = vld [vmem:[%s8937_s21 + $0x40] sm:$0xff]   ;;  %v7436_v13 = vld [vmem:[%s8937_s21 + $0x30] sm:$0xff]  }
 0x850   :  { %v5492_v44 = vmax.f32 %v5476_v52, %v5490_v29  ;;  %v3911_v37 = vrot.slane %v3910_v31, 1 }
 0x851   :  { %v4569_v4 = vpop.xlane.xlu1 %4568 }
 0x852   :  { %v5493_v45 = vmax.f32 %v5491_v43, %v5492_v44  ;;  %v7415_v44 = vld [vmem:[%s8937_s21 + $0x48] sm:$0xff]  }
 0x854   :  { %v5494_v54 = vsub.f32 %v5448_v41, %v5493_v45  ;;  %v5497_v49 = vsub.f32 %v5462_v38, %v5493_v45  ;;  %v5500_v55 = vsub.f32 %v5476_v52, %v5493_v45  ;;  %v5503_v53 = vsub.f32 %v5490_v29, %v5493_v45  ;;  %v7414_v52 = vld [vmem:[%s8937_s21] sm:$0xff]  }
 0x855   :  { %v7458_v60 = vpop.eup %7457  ;;  %v3912_v41 = vadd.f32 %v3911_v37, %v3910_v31 }
 0x856   :  { %v3902_v62 = vadd.f32 1.0, %v7458_v60  ;;  %v5495_v20 = vmul.f32 1.442695, %v5494_v54  ;;  %v5498_v2 = vmul.f32 1.442695, %v5497_v49  ;;  %v7416_v49 = vld [vmem:[%s8937_s21 + $0x8] sm:$0xff]  }
 0x857   :  { %v5501_v48 = vmul.f32 1.442695, %v5500_v55  ;;  %v5504_v9 = vmul.f32 1.442695, %v5503_v53  ;;  %v7418_v55 = vld [vmem:[%s8937_s21 + $0x50] sm:$0xff]   ;;  %v7437_v53 = vld [vmem:[%s8937_s21 + $0xe8] sm:$0xff]  }
 0x858   :  { %v7460_v63 = vpop.eup %7459  ;;  %7461 = vrcp.f32 %v3902_v62  ;;  %v7439_v60 = vld [vmem:[%s8937_s21 + $0xa8] sm:$0xff]   ;;  %6845 = vmatprep.subr.bf16.mxu0 %v7437_v53  ;;  %v7420_v62 = vld [vmem:[%s8937_s21 + $0x10] sm:$0xff]  }
 0x859   :  { %7463 = vpow2.f32 %v5495_v20  ;;  %v8473_v8 = vmul.f32 %v7460_v63, %v8407_v10  ;;  %6846 = vmatpush3.bf16.msra.mxu0 %v7439_v60  ;;  %v7422_v20 = vld [vmem:[%s8937_s21 + $0x58] sm:$0xff]  }
 0x85a   :  { %7465 = vpow2.f32 %v5498_v2  ;;  %v7441_v2 = vld [vmem:[%s8937_s21 + $0xf0] sm:$0xff]   ;;  %v7424_v63 = vld [vmem:[%s8937_s21 + $0x18] sm:$0xff]  }
 0x85b   :  { %7467 = vrsqrt.f32 %v4569_v4  ;;  %6983 = vmatpush3.xpose.msra.mxu1 %v8473_v8  ;;  %6847 = vmatprep.subr.bf16.mxu0 %v7441_v2  ;;  %v7443_v4 = vld [vmem:[%s8937_s21 + $0xf8] sm:$0xff]  }
 0x85c   :  { %7469 = vpow2.f32 %v5501_v48  ;;  %6992 = vmatprep.subr.mxu1 %v7629_v1  ;;  %v7426_v48 = vld [vmem:[%s8937_s21 + $0x60] sm:$0xff]  }
 0x85d   :  { %7471 = vpow2.f32 %v5504_v9  ;;  %6848 = vmatpush3.bf16.msra.mxu0 %v7442_v22  ;;  %v7428_v9 = vld [vmem:[%s8937_s21 + $0x20] sm:$0xff]  }
 0x85e   :  { %6985 = vmatmul.mubr.f32.vlgmr.msra.gmra.mrb[48].mxu1 %v8389_v7  ;;  %6849 = vmatprep.subr.bf16.mxu0 %v7443_v4 }
 0x85f   :  { %6993 = vmatpush3.xpose.msra.mxu1 %v8389_v7  ;;  %6994 = vmatprep.mubr.msk.f32.mxu1 %vm7630_vm0, %v7629_v1 }
 0x860   :  { %7002 = vmatprep.subr.mxu1 %v7629_v1 }
 0x862   :  { %v7462_v5 = vpop.eup %7461  ;;  %6995 = vmatmul.mubr.f32.vlgmr.msra.gmra.mrb[50].mxu1 %v8383_v61 }
 0x863   :  { %v7464_v56 = vpop.eup %7463  ;;  %v3920_v58 = vmul.f32 0.05, %v7462_v5  ;;  %7003 = vmatpush3.xpose.msra.mxu1 %v8389_v7  ;;  %7004 = vmatprep.mubr.msk.f32.mxu1 %vm7630_vm0, %v7629_v1  ;;  %v3913_v14 = vsel %vm3905_vm9, %v7462_v5, 0.0  ;;  %v7434_v5 = vld [vmem:[%s8937_s21 + $0x70] sm:$0xff]  }
 0x864   :  { %v7466_v16 = vpop.eup %7465  ;;  %7012 = vmatprep.subr.mxu1 %v7629_v1  ;;  %v3914_v17 = vrot.slane %v3913_v14, 4 }
 0x865   :  { %v7468_v19 = vpop.eup %7467  ;;  %v3921_v21 = vsub.f32 1.0, %v3920_v58  ;;  %v5506_v23 = vadd.f32 %v7466_v16, %v7464_v56  ;;  %v7440_v58 = vld [vmem:[%s8937_s21 + $0x38] sm:$0xff]  }
 0x866   :  { %v7470_v24 = vpop.eup %7469  ;;  %7005 = vmatmul.mubr.f32.vlgmr.msra.gmra.mrb[52].mxu1 %v8473_v8  ;;  %v3915_v25 = vadd.f32 %v3914_v17, %v3913_v14  ;;  %v4571_v27 = vmul.f32 %v7468_v19, %v8363_v51 }
 0x867   :  { %v5507_v59 = vadd.f32 %v7470_v24, %v5506_v23  ;;  %7013 = vmatpush3.xpose.msra.mxu1 %v8383_v61  ;;  %7014 = vmatprep.mubr.msk.f32.mxu1 %vm7630_vm0, %v7629_v1  ;;  %v8493_v7 = vmul.f32 %v3921_v21, %v3828_v57  ;;  %v7472_v26 = vpop.eup %7471 }
 0x868   :  { %7022 = vmatprep.subr.mxu1 %v7629_v1  ;;  %v3916_v30 = vrot.slane %v3915_v25, 2 }
 0x869   :  { %v5508_v33 = vadd.f32 %v7472_v26, %v5507_v59 }
 0x86a   :  { %7015 = vmatmul.mubr.f32.vlgmr.msra.gmra.mrb[54].mxu1 %v4571_v27  ;;  %v3917_v35 = vadd.f32 %v3916_v30, %v3915_v25 }
 0x86b   :  { %7473 = vrcp.f32 %v5508_v33  ;;  %7023 = vmatpush3.xpose.msra.mxu1 %v8473_v8  ;;  %7024 = vmatprep.mubr.msk.f32.mxu1 %vm7630_vm0, %v7629_v1 }
 0x86c   :  { %7032 = vmatprep.subr.mxu1 %v7629_v1  ;;  %v3918_v36 = vrot.slane %v3917_v35, 1 }
 0x86e   :  { %7025 = vmatmul.mubr.f32.vlgmr.msra.gmra.mrb[56].mxu1 %v4571_v27  ;;  %v3919_v38 = vadd.f32 %v3918_v36, %v3917_v35 }
 0x86f   :  { %7033 = vmatpush3.xpose.msra.mxu1 %v4571_v27  ;;  %7034 = vmatprep.mubr.msk.f32.mxu1 %vm7630_vm0, %v7629_v1 }
 0x870   :  { %7042 = vmatprep.subr.mxu1 %v7629_v1  ;;  %v3929_v40 = vmul.f32 0.1, %v3919_v38 }
 0x872   :  { %7035 = vmatmul.mubr.f32.vlgmr.msra.gmra.mrb[58].mxu1 %v8383_v61  ;;  %v3930_v29 = vsub.f32 8.0, %v3929_v40  ;;  %v6515_v40 = vld [vmem:[%s8939_s2 + $0x1] ss:$0 sm:$0xff] }
 0x873   :  { %7043 = vmatpush3.xpose.msra.mxu1 %v4571_v27  ;;  %7044 = vmatprep.mubr.msk.f32.mxu1 %vm7630_vm0, %v7629_v1 }
 0x874   :  { %6813 = vmatprep.subr.bf16.mxu1 %v7413_v34  ;;  %v8509_v28 = vmul.f32 %v3930_v29, %v3912_v41  ;;  %v6514_v34 = vld [vmem:[%s8939_s2] ss:$0 sm:$0xff] }
 0x875   :  { %v7474_v43 = vpop.eup %7473 }
 0x876   :  { %v8512_v45 = vmul.f32 %v7474_v43, %v7464_v56  ;;  %v8514_v61 = vmul.f32 %v7474_v43, %v7466_v16  ;;  %7045 = vmatmul.mubr.f32.vlgmr.msra.gmra.mrb[60].mxu1 %v8473_v8  ;;  %v8517_v57 = vmul.f32 %v7474_v43, %v7472_v26  ;;  %v8519_v54 = vmul.f32 %v7474_v43, %v7470_v24  ;;  %v7444_v8 = vld [vmem:[%s8937_s21 + $0xb8] sm:$0xff]  }
 0x877   :  { %6814 = vmatpush3.bf16.msra.mxu1 %v7414_v52  ;;  %6850 = vmatpush3.bf16.msra.mxu0 %v7444_v8  ;;  %v7438_v56 = vld [vmem:[%s8937_s21 + $0x78] sm:$0xff]   ;;  %v6516_v8 = vld [vmem:[%s8939_s2 + $0x2] ss:$0 sm:$0xff] }
 0x878   :  { %5516 = vperm.xlu0 %7172, %v8512_v45   ;;  %5522 = vperm.xlu1 %7173, %v8514_v61  }
 0x879   :  { %6815 = vmatprep.subr.bf16.mxu1 %v7415_v44 }
 0x87b   :  { %6816 = vmatpush3.bf16.msra.mxu1 %v7416_v49 }
 0x87c   :  { %5534 = vperm.xlu1 %7173, %v8517_v57   ;;  %6817 = vmatprep.subr.bf16.mxu1 %v7418_v55 }
 0x87f   :  { %6818 = vmatpush3.bf16.msra.mxu1 %v7420_v62 }
 0x880   :  { %5528 = vperm.xlu1 %7173, %v8519_v54   ;;  %6819 = vmatprep.subr.bf16.mxu1 %v7422_v20 }
 0x883   :  { %6820 = vmatpush3.bf16.msra.mxu1 %v7424_v63 }
 0x884   :  { %6821 = vmatprep.subr.bf16.mxu1 %v7426_v48 }
 0x887   :  { %6822 = vmatpush3.bf16.msra.mxu1 %v7428_v9 }
 0x888   :  { %6823 = vmatprep.subr.bf16.mxu1 %v7430_v11 }
 0x88b   :  { %6824 = vmatpush3.bf16.msra.mxu1 %v7432_v12  ;;  %v6517_v12 = vld [vmem:[%s8939_s2 + $0x3] ss:$0 sm:$0xff]  ;;  %s6151_s2 = sshll.u32 %s7632_s1, 4  ;;  %s6152_s2 = int_to_ptr.vmem [resolvable:$true] %s6151_s2 }
 0x88c   :  { %6825 = vmatprep.subr.bf16.mxu1 %v7434_v5  ;;  %p7568_p1 = scmp.lt.s32.totalorder %s6152_s2, %s6152_s2 }
 0x88f   :  { %6826 = vmatpush3.bf16.msra.mxu1 %v7436_v13 }
 0x890   :  { %6827 = vmatprep.subr.bf16.mxu1 %v7438_v56 }
 0x893   :  { %6828 = vmatpush3.bf16.msra.mxu1 %v7440_v58 }
 0x894   :  { %v4099_v14 = vpop.f32.mrb[68].mxu0  ;;  %7052 = vmatprep.subr.bf16.mxu1 %v7629_v1 }
 0x895   :  { %v6991_v16 = vpop.f32.mrb[69].mxu0  ;;  %v4103_v31 = vsub.f32 0.0, %v4099_v14 }
 0x897   :  { %3617 = vadd.xlane.f32.xlu0 %v8213_v3  ;;  %v4104_v36 = vmul.f32 1.442695, %v4103_v31 }
 0x898   :  { %v4300_v17 = vpop.f32.mrb[70].mxu0 }
 0x899   :  { %v7001_v19 = vpop.f32.mrb[71].mxu0  ;;  %v4304_v35 = vsub.f32 0.0, %v4300_v17  ;;  %7475 = vpow2.f32 %v4104_v36 }
 0x89b   :  { %3640 = vadd.xlane.f32.xlu0 %v8360_v32  ;;  %v4305_v37 = vmul.f32 1.442695, %v4304_v35 }
 0x89c   :  { %v4501_v21 = vpop.f32.mrb[72].mxu0 }
 0x89d   :  { %v7011_v23 = vpop.f32.mrb[73].mxu0  ;;  %v4505_v38 = vsub.f32 0.0, %v4501_v21  ;;  %7477 = vpow2.f32 %v4305_v37 }
 0x89f   :  { %3700 = vadd.xlane.f32.xlu0 %v8363_v51  ;;  %v4506_v41 = vmul.f32 1.442695, %v4505_v38 }
 0x8a0   :  { %v4709_v24 = vpop.f32.mrb[74].mxu0 }
 0x8a1   :  { %v7021_v46 = vpop.f32.mrb[75].mxu0  ;;  %v4713_v29 = vsub.f32 0.0, %v4709_v24  ;;  %7479 = vpow2.f32 %v4506_v41 }
 0x8a3   :  { %3662 = vadd.xlane.f32.xlu0 %v8407_v10  ;;  %v4714_v2 = vmul.f32 1.442695, %v4713_v29  ;;  %v7476_v48 = vpop.eup %7475 }
 0x8a4   :  { %3612 = vadd.xlane.f32.xlu1 %v8210_v50  ;;  %v4910_v25 = vpop.f32.mrb[76].mxu0  ;;  %v4106_v13 = vadd.f32 1.0, %v7476_v48 }
 0x8a5   :  { %v7031_v59 = vpop.f32.mrb[77].mxu0  ;;  %v4914_v4 = vsub.f32 0.0, %v4910_v25  ;;  %7481 = vpow2.f32 %v4714_v2 }
 0x8a6   :  { %7483 = vrcp.f32 %v4106_v13 }
 0x8a7   :  { %v7478_v11 = vpop.eup %7477  ;;  %v4915_v14 = vmul.f32 1.442695, %v4914_v4 }
 0x8a8   :  { %3636 = vadd.xlane.f32.xlu1 %v8391_v0  ;;  %v5111_v26 = vpop.f32.mrb[78].mxu0  ;;  %v4307_v16 = vadd.f32 1.0, %v7478_v11 }
 0x8a9   :  { %v7041_v27 = vpop.f32.mrb[79].mxu0  ;;  %v5115_v24 = vsub.f32 0.0, %v5111_v26  ;;  %7485 = vpow2.f32 %v4915_v14 }
 0x8aa   :  { %7487 = vrcp.f32 %v4307_v16 }
 0x8ab   :  { %v7480_v23 = vpop.eup %7479  ;;  %v5116_v27 = vmul.f32 1.442695, %v5115_v24 }
 0x8ac   :  { %3696 = vadd.xlane.f32.xlu1 %v8266_v42  ;;  %v5312_v30 = vpop.f32.mrb[80].mxu0  ;;  %v4508_v25 = vadd.f32 1.0, %v7480_v23 }
 0x8ad   :  { %v7051_v33 = vpop.f32.mrb[81].mxu0  ;;  %v5316_v59 = vsub.f32 0.0, %v5312_v30  ;;  %v3923_v30 = vmul.f32 1.442695, %v8493_v7 }
 0x8ae   :  { %7489 = vrcp.f32 %v4508_v25 }
 0x8af   :  { %v7482_v33 = vpop.eup %7481  ;;  %v5317_v31 = vmul.f32 1.442695, %v5316_v59  ;;  %7491 = vpow2.f32 %v5116_v27 }
 0x8b0   :  { %3658 = vadd.xlane.f32.xlu1 %v8404_v6  ;;  %v4716_v35 = vadd.f32 1.0, %v7482_v33  ;;  %v7484_v36 = vpop.eup %7483 }
 0x8b1   :  { %7493 = vpow2.f32 %v5317_v31  ;;  %v4116_v26 = vsel %vm3905_vm9, %v7484_v36, 0.0 }
 0x8b2   :  { %7495 = vrcp.f32 %v4716_v35  ;;  %v4117_v41 = vrot.slane %v4116_v26, 4 }
 0x8b3   :  { %v7486_v37 = vpop.eup %7485 }
 0x8b4   :  { %v7488_v38 = vpop.eup %7487 }
 0x8b8   :  { %v7490_v29 = vpop.eup %7489 }
 0x8f7   :  { %v5517_v52 = vpop.permute.xlu0 %5516  ;;  %v5523_v43 = vpop.permute.xlu1 %5522 }
 0x8f8   :  { %v5519_v44 = vmul.f32 %v5517_v52, %v8213_v3  ;;  %v5543_v49 = vmul.f32 %v6514_v34, %v5517_v52  ;;  %v5525_v55 = vmul.f32 %v5523_v43, %v8360_v32  ;;  %v5549_v53 = vmul.f32 %v6515_v40, %v5523_v43  ;;  %v7492_v52 = vpop.eup %7491 }
 0x8f9   :  { %v4917_v34 = vadd.f32 1.0, %v7486_v37  ;;  %v4317_v40 = vsel %vm3905_vm9, %v7488_v38, 0.0 }
 0x8fa   :  { %v5629_v60 = vpack.c.bf16 %v5519_v44, %v5519_v44  ;;  %v5550_v62 = vadd.f32 %v5549_v53, %v5543_v49  ;;  %v5630_v20 = vpack.c.bf16 %v5525_v55, %v5525_v55  ;;  %v4318_v43 = vrot.slane %v4317_v40, 4  ;;  %v7494_v55 = vpop.eup %7493 }
 0x8fb   :  { %v5535_v22 = vpop.permute.xlu1 %5534  ;;  %7497 = vrcp.f32 %v4917_v34  ;;  %v4118_v44 = vadd.f32 %v4117_v41, %v4116_v26  ;;  %v4518_v49 = vsel %vm3905_vm9, %v7490_v29, 0.0  ;;  %v5118_v53 = vadd.f32 1.0, %v7492_v52 }
 0x8fc   :  { %v5537_v63 = vmul.f32 %v5535_v22, %v8363_v51  ;;  %5857 = vmatprep.mubr.bf16.mxu1 %v5630_v20  ;;  %v5563_v17 = vmul.f32 %v6517_v12, %v5535_v22  ;;  %7499 = vpow2.f32 %v3923_v30  ;;  %v4519_v20 = vrot.slane %v4518_v49, 4 }
 0x8fd   :  { %5858 = vmatmul.mubr.bf16.vlgmr.msra.gmra.mrb[64].mxu1 %v5629_v60  ;;  %v7496_v60 = vpop.eup %7495  ;;  %v4119_v2 = vrot.slane %v4118_v44, 2  ;;  %7501 = vrcp.f32 %v5118_v53  ;;  %v5319_v22 = vadd.f32 1.0, %v7494_v55  ;;  %v8571_v12 = vsub.f32 1.0, %v8469_v47 }
 0x8fe   :  { %v5632_v9 = vpack.c.bf16 %v5537_v63, %v5537_v63  ;;  %7068 = vmatprep.mubr.msk.bf16.mxu1 %vm7630_vm0, %v7629_v1  ;;  %v4726_v63 = vsel %vm3905_vm9, %v7496_v60, 0.0  ;;  %v4520_v4 = vadd.f32 %v4519_v20, %v4518_v49  ;;  %v4123_v26 = vmul.f32 0.05, %v7484_v36 }
 0x8ff   :  { %v5529_v5 = vpop.permute.xlu1 %5528  ;;  %v4727_v7 = vrot.slane %v4726_v63, 4  ;;  %7503 = vrcp.f32 %v5319_v22  ;;  %v8580_v34 = vmul.f32 0.05, %v7488_v38  ;;  %v8589_v55 = vmul.f32 0.05, %v7490_v29 }
 0x900   :  { %v5531_v56 = vmul.f32 %v5529_v5, %v8407_v10  ;;  %v5556_v58 = vmul.f32 %v6516_v8, %v5529_v5  ;;  %5897 = vmatprep.mubr.bf16.mxu0 %v5632_v9  ;;  %v4120_v8 = vadd.f32 %v4119_v2, %v4118_v44  ;;  %v4521_v5 = vrot.slane %v4520_v4, 2 }
 0x901   :  { %v4728_v14 = vadd.f32 %v4727_v7, %v4726_v63  ;;  %v8591_v53 = vmul.f32 0.05, %v7496_v60  ;;  %v4325_v22 = vsub.f32 1.0, %v8580_v34  ;;  %vm6124_vm0 = vcmp.eq.s32.totalorder %v8461_v39, 0 }
 0x902   :  { %v5557_v19 = vadd.f32 %v5556_v58, %v5550_v62  ;;  %v5631_v21 = vpack.c.bf16 %v5531_v56, %v5531_v56  ;;  %v4319_v62 = vadd.f32 %v4318_v43, %v4317_v40  ;;  %v4121_v58 = vrot.slane %v4120_v8, 1 }
 0x903   :  { %v4522_v25 = vadd.f32 %v4521_v5, %v4520_v4  ;;  %v4729_v31 = vrot.slane %v4728_v14, 2  ;;  %v4526_v5 = vsub.f32 1.0, %v8589_v55 }
 0x904   :  { %5898 = vmatmul.mubr.bf16.vlgmr.msra.gmra.mrb[84].mxu0 %v5631_v21  ;;  %v8563_v46 = vadd.f32 %v5563_v17, %v5557_v19  ;;  %v4320_v48 = vrot.slane %v4319_v62, 2  ;;  %v4122_v33 = vadd.f32 %v4121_v58, %v4120_v8 }
 0x905   :  { %v7498_v9 = vpop.eup %7497  ;;  %v4523_v43 = vrot.slane %v4522_v25, 1  ;;  %v4730_v38 = vadd.f32 %v4729_v31, %v4728_v14 }
 0x906   :  { %v4321_v11 = vadd.f32 %v4320_v48, %v4319_v62  ;;  %v7500_v13 = vpop.eup %7499  ;;  %v4927_v16 = vsel %vm3905_vm9, %v7498_v9, 0.0  ;;  %v8593_v36 = vmul.f32 0.1, %v4122_v33  ;;  %v8598_v63 = vmul.f32 0.05, %v7498_v9 }
 0x907   :  { %v7502_v21 = vpop.eup %7501  ;;  %v3925_v24 = vmul.f32 %v7500_v13, %v8571_v12  ;;  %v4928_v59 = vrot.slane %v4927_v16, 4  ;;  %v4524_v8 = vadd.f32 %v4523_v43, %v4522_v25  ;;  %v4734_v13 = vsub.f32 1.0, %v8591_v53 }
 0x908   :  { %v4322_v19 = vrot.slane %v4321_v11, 1  ;;  %v5128_v41 = vsel %vm3905_vm9, %v7502_v21, 0.0  ;;  %v8606_v4 = vmul.f32 0.05, %v7502_v21  ;;  %v4133_v9 = vsub.f32 8.0, %v8593_v36 }
 0x909   :  { %v7504_v52 = vpop.eup %7503  ;;  %v8587_v30 = vsel %vm3905_vm9, %v3925_v24, 0.0  ;;  %v4929_v44 = vadd.f32 %v4928_v59, %v4927_v16  ;;  %v5129_v2 = vrot.slane %v5128_v41, 4  ;;  %v4935_v59 = vsub.f32 1.0, %v8598_v63 }
 0x90a   :  { %v4323_v40 = vadd.f32 %v4322_v19, %v4321_v11  ;;  %v5329_v29 = vsel %vm3905_vm9, %v7504_v52, 0.0  ;;  %v5136_v31 = vsub.f32 1.0, %v8606_v4 }
 0x90b   :  { %v4930_v7 = vrot.slane %v4929_v44, 2  ;;  %v5330_v19 = vrot.slane %v5329_v29, 4 }
 0x90c   :  { %v8600_v48 = vmul.f32 0.1, %v4323_v40 }
 0x924   :  { %v3618_v56 = vpop.xlane.xlu0 %3617 }
 0x925   :  { %v3619_v17 = vmul.f32 0.0078125, %v3618_v56  ;;  %v4731_v56 = vrot.slane %v4730_v38, 1 }
 0x927   :  { %v8575_v23 = vsub.f32 %v8213_v3, %v3619_v17  ;;  %v5130_v17 = vadd.f32 %v5129_v2, %v5128_v41  ;;  %v8625_v41 = vmul.f32 0.05, %v7504_v52  ;;  %v4732_v55 = vadd.f32 %v4731_v56, %v4730_v38 }
 0x928   :  { %v3641_v27 = vpop.xlane.xlu0 %3640 }
 0x929   :  { %v3642_v35 = vmul.f32 0.0078125, %v3641_v27  ;;  %v3627_v37 = vmul.f32 %v8575_v23, %v8575_v23  ;;  %v4334_v27 = vsub.f32 8.0, %v8600_v48 }
 0x92b   :  { %v8584_v3 = vsub.f32 %v8360_v32, %v3642_v35  ;;  %3628 = vadd.xlane.f32.xlu0 %v3627_v37  ;;  %v4124_v32 = vsub.f32 1.0, %v4123_v26  ;;  %v8619_v35 = vmul.f32 0.1, %v4524_v8  ;;  %v4931_v37 = vadd.f32 %v4930_v7, %v4929_v44 }
 0x92c   :  { %v3701_v49 = vpop.xlane.xlu0 %3700 }
 0x92d   :  { %v3702_v62 = vmul.f32 0.0078125, %v3701_v49  ;;  %v3650_v20 = vmul.f32 %v8584_v3, %v8584_v3 }
 0x92f   :  { %v8604_v60 = vsub.f32 %v8363_v51, %v3702_v62  ;;  %3651 = vadd.xlane.f32.xlu0 %v3650_v20  ;;  %v5131_v62 = vrot.slane %v5130_v17, 2  ;;  %v5331_v20 = vadd.f32 %v5330_v19, %v5329_v29  ;;  %v5337_v19 = vsub.f32 1.0, %v8625_v41 }
 0x930   :  { %v3663_v11 = vpop.xlane.xlu0 %3662 }
 0x931   :  { %v3664_v58 = vmul.f32 0.0078125, %v3663_v11  ;;  %v3613_v14 = vpop.xlane.xlu1 %3612  ;;  %v3710_v16 = vmul.f32 %v8604_v60, %v8604_v60  ;;  %v4028_v51 = vpop.f32.mrb[48].mxu1 }
 0x932   :  { %v3615_v21 = vmul.f32 0.0078125, %v3613_v14  ;;  %v4032_v24 = vmul.f32 14.285714, %v4028_v51  ;;  %v6986_v25 = vpop.f32.mrb[49].mxu1 }
 0x933   :  { %v8616_v33 = vsub.f32 %v8407_v10, %v3664_v58  ;;  %3711 = vadd.xlane.f32.xlu0 %v3710_v16  ;;  %v4932_v58 = vrot.slane %v4931_v37, 1 }
 0x934   :  { %v8622_v26 = vsub.f32 %v8210_v50, %v3615_v21  ;;  %v4108_v34 = vmul.f32 %v8469_v47, %v4032_v24  ;;  %v4125_v40 = vmul.f32 %v4124_v32, %v4032_v24  ;;  %v4535_v32 = vsub.f32 8.0, %v8619_v35 }
 0x935   :  { %v3637_v43 = vpop.xlane.xlu1 %3636  ;;  %v3672_v49 = vmul.f32 %v8616_v33, %v8616_v33  ;;  %v4229_v10 = vpop.f32.mrb[50].mxu1  ;;  %v8636_v21 = vmul.f32 0.1, %v4732_v55  ;;  %v8638_v24 = vadd.f32 %v5131_v62, %v5130_v17 }
 0x936   :  { %v4109_v2 = vsel %vm3905_vm9, %v4108_v34, 0.0  ;;  %v4126_v8 = vmul.f32 1.442695, %v4125_v40  ;;  %v3638_v44 = vmul.f32 0.0078125, %v3637_v43  ;;  %v4233_v7 = vmul.f32 14.285714, %v4229_v10 }
 0x937   :  { %v4110_v50 = vrot.slane %v4109_v2, 4  ;;  %3673 = vadd.xlane.f32.xlu0 %v3672_v49  ;;  %v6996_v11 = vpop.f32.mrb[51].mxu1  ;;  %v3624_v52 = vmul.f32 %v8622_v26, %v8622_v26  ;;  %v5332_v43 = vrot.slane %v5331_v20, 2 }
 0x938   :  { %7505 = vpow2.f32 %v4126_v8  ;;  %v3639_v14 = vsub.f32 %v8391_v0, %v3638_v44  ;;  %v4309_v38 = vmul.f32 %v8469_v47, %v4233_v7  ;;  %v4326_v29 = vmul.f32 %v4325_v22, %v4233_v7 }
 0x939   :  { %v4111_v56 = vadd.f32 %v4110_v50, %v4109_v2  ;;  %3625 = vadd.xlane.f32.xlu1 %v3624_v52  ;;  %v3697_v16 = vpop.xlane.xlu1 %3696  ;;  %v4430_v51 = vpop.f32.mrb[52].mxu1  ;;  %v8646_v7 = vadd.f32 %v4932_v58, %v4931_v37  ;;  %v8652_v58 = vadd.f32 %v5332_v43, %v5331_v20 }
 0x93a   :  { %v4310_v25 = vsel %vm3905_vm9, %v4309_v38, 0.0  ;;  %v3698_v34 = vmul.f32 0.0078125, %v3697_v16  ;;  %v4434_v40 = vmul.f32 14.285714, %v4430_v51  ;;  %v7006_v10 = vpop.f32.mrb[53].mxu1  ;;  %v3644_v22 = vmul.f32 %v8584_v3, %v3639_v14 }
 0x93b   :  { %v4112_v49 = vrot.slane %v4111_v56, 2  ;;  %v4311_v0 = vrot.slane %v4310_v25, 4  ;;  %v3647_v2 = vmul.f32 %v3639_v14, %v3639_v14  ;;  %v4327_v62 = vmul.f32 1.442695, %v4326_v29 }
 0x93c   :  { %v8643_v8 = vsub.f32 %v8266_v42, %v3698_v34  ;;  %v4510_v44 = vmul.f32 %v8469_v47, %v4434_v40  ;;  %v4527_v55 = vmul.f32 %v4526_v5, %v4434_v40  ;;  %3645 = vadd.xlane.f32.xlu0 %v3644_v22  ;;  %v5133_v38 = vrot.slane %v8638_v24, 1  ;;  %v7445_v40 = vld [vmem:[%s7836_s25] sm:$0xff]  }
 0x93d   :  { %v4312_v17 = vadd.f32 %v4311_v0, %v4310_v25  ;;  %3648 = vadd.xlane.f32.xlu1 %v3647_v2  ;;  %v3659_v50 = vpop.xlane.xlu1 %3658  ;;  %v4638_v11 = vpop.f32.mrb[54].mxu1  ;;  %v4113_v52 = vadd.f32 %v4112_v49, %v4111_v56  ;;  %7053 = vmatpush3.bf16.msra.mxu1 %v7445_v40  ;;  %v4943_v41 = vmul.f32 0.1, %v8646_v7 }
 0x93e   :  { %v4511_v3 = vsel %vm3905_vm9, %v4510_v44, 0.0  ;;  %v4528_v14 = vmul.f32 1.442695, %v4527_v55  ;;  %v3660_v42 = vmul.f32 0.0078125, %v3659_v50  ;;  %v4642_v16 = vmul.f32 14.285714, %v4638_v11  ;;  %7054 = vmatprep.subr.bf16.mxu1 %v7629_v1 }
 0x93f   :  { %v4313_v51 = vrot.slane %v4312_v17, 2  ;;  %v4512_v34 = vrot.slane %v4511_v3, 4  ;;  %v7016_v5 = vpop.f32.mrb[55].mxu1  ;;  %v3707_v37 = vmul.f32 %v8643_v8, %v8643_v8  ;;  %v4114_v10 = vrot.slane %v4113_v52, 1 }
 0x940   :  { %7507 = vpow2.f32 %v4528_v14  ;;  %v3661_v29 = vsub.f32 %v8404_v6, %v3660_v42  ;;  %v4718_v56 = vmul.f32 %v8469_v47, %v4642_v16  ;;  %v4735_v25 = vmul.f32 %v4734_v13, %v4642_v16  ;;  %v7446_v14 = vld [vmem:[%s7836_s25 + $0x8] sm:$0xff]  }
 0x941   :  { %7509 = vpow2.f32 %v4327_v62  ;;  %v4513_v49 = vadd.f32 %v4512_v34, %v4511_v3  ;;  %3708 = vadd.xlane.f32.xlu1 %v3707_v37  ;;  %v4839_v0 = vpop.f32.mrb[56].mxu1  ;;  %v4314_v22 = vadd.f32 %v4313_v51, %v4312_v17  ;;  %v3621_v3 = vmul.f32 %v8575_v23, %v8622_v26  ;;  %7055 = vmatpush3.bf16.msra.mxu1 %v7446_v14 }
 0x942   :  { %v7506_v2 = vpop.eup %7505  ;;  %v4719_v20 = vsel %vm3905_vm9, %v4718_v56, 0.0  ;;  %v4736_v43 = vmul.f32 1.442695, %v4735_v25  ;;  %v4843_v44 = vmul.f32 14.285714, %v4839_v0  ;;  %v7026_v55 = vpop.f32.mrb[57].mxu1  ;;  %v3669_v6 = vmul.f32 %v3661_v29, %v3661_v29  ;;  %7056 = vmatprep.subr.bf16.mxu1 %v7629_v1 }
 0x943   :  { %v4514_v50 = vrot.slane %v4513_v49, 2  ;;  %v4720_v11 = vrot.slane %v4719_v20, 4  ;;  %v3666_v53 = vmul.f32 %v8616_v33, %v3661_v29  ;;  %v4128_v13 = vmul.f32 %v7506_v2, %v8571_v12 }
 0x944   :  { %v4919_v62 = vmul.f32 %v8469_v47, %v4843_v44  ;;  %v4936_v17 = vmul.f32 %v4935_v59, %v4843_v44  ;;  %v4115_v42 = vadd.f32 %v4114_v10, %v4113_v52  ;;  %v4315_v34 = vrot.slane %v4314_v22, 1 }
 0x945   :  { %v4721_v16 = vadd.f32 %v4720_v11, %v4719_v20  ;;  %3670 = vadd.xlane.f32.xlu1 %v3669_v6  ;;  %3667 = vadd.xlane.f32.xlu0 %v3666_v53  ;;  %v5040_v51 = vpop.f32.mrb[58].mxu1  ;;  %v4129_v33 = vsel %vm3905_vm9, %v4128_v13, 0.0  ;;  %v4515_v5 = vadd.f32 %v4514_v50, %v4513_v49  ;;  %7511 = vpow2.f32 %v4736_v43  ;;  %v7447_v49 = vld [vmem:[%s7836_s25 + $0x10] sm:$0xff]   ;;  %v7448_v53 = vld [vmem:[%s7836_s25 + $0x18] sm:$0xff]  }
 0x946   :  { %v4920_v37 = vsel %vm3905_vm9, %v4919_v62, 0.0  ;;  %v4937_v29 = vmul.f32 1.442695, %v4936_v17  ;;  %v5044_v56 = vmul.f32 14.285714, %v5040_v51  ;;  %v7036_v63 = vpop.f32.mrb[59].mxu1  ;;  %v8673_v23 = vmul.f32 %v4133_v9, %v4115_v42  ;;  %7057 = vmatpush3.bf16.msra.mxu1 %v7447_v49 }
 0x947   :  { %v4722_v59 = vrot.slane %v4721_v16, 2  ;;  %v4921_v26 = vrot.slane %v4920_v37, 4  ;;  %v4316_v52 = vadd.f32 %v4315_v34, %v4314_v22  ;;  %v5134_v0 = vadd.f32 %v5133_v38, %v8638_v24  ;;  %7058 = vmatprep.subr.bf16.mxu1 %v7629_v1  ;;  %v7449_v34 = vld [vmem:[%s7836_s25 + $0x20] sm:$0xff]  }
 0x948   :  { %7513 = vpow2.f32 %v4937_v29  ;;  %v5120_v25 = vmul.f32 %v8469_v47, %v5044_v56  ;;  %v5137_v40 = vmul.f32 %v5136_v31, %v5044_v56  ;;  %v4516_v2 = vrot.slane %v4515_v5, 1 }
 0x949   :  { %v4922_v10 = vadd.f32 %v4921_v26, %v4920_v37  ;;  %3622 = vadd.xlane.f32.xlu1 %v3621_v3  ;;  %4130 = vadd.xlane.f32.xlu0 %v4129_v33  ;;  %v5241_v36 = vpop.f32.mrb[60].mxu1  ;;  %v8683_v9 = vmul.f32 %v4334_v27, %v4316_v52  ;;  %v5334_v22 = vrot.slane %v8652_v58, 1  ;;  %v4723_v24 = vadd.f32 %v4722_v59, %v4721_v16 }
 0x94a   :  { %v7508_v20 = vpop.eup %7507  ;;  %v5121_v43 = vsel %vm3905_vm9, %v5120_v25, 0.0  ;;  %v5138_v4 = vmul.f32 1.442695, %v5137_v40  ;;  %v5245_v31 = vmul.f32 14.285714, %v5241_v36  ;;  %v7046_v44 = vpop.f32.mrb[61].mxu1  ;;  %v3704_v48 = vmul.f32 %v8604_v60, %v8643_v8  ;;  %7059 = vmatpush3.bf16.msra.mxu1 %v7448_v53 }
 0x94b   :  { %v7510_v38 = vpop.eup %7509  ;;  %v4923_v55 = vrot.slane %v4922_v10, 2  ;;  %v5122_v6 = vrot.slane %v5121_v43, 4  ;;  %v4530_v27 = vmul.f32 %v7508_v20, %v8571_v12  ;;  %v4517_v13 = vadd.f32 %v4516_v2, %v4515_v5  ;;  %7060 = vmatprep.subr.bf16.mxu1 %v7629_v1 }
 0x94c   :  { %7515 = vpow2.f32 %v5138_v4  ;;  %v5321_v50 = vmul.f32 %v8469_v47, %v5245_v31  ;;  %v5338_v11 = vmul.f32 %v5337_v19, %v5245_v31  ;;  %v4724_v3 = vrot.slane %v4723_v24, 1 }
 0x94d   :  { %v5123_v62 = vadd.f32 %v5122_v6, %v5121_v43  ;;  %3705 = vadd.xlane.f32.xlu1 %v3704_v48  ;;  %v4531_v17 = vsel %vm3905_vm9, %v4530_v27, 0.0  ;;  %v4924_v14 = vadd.f32 %v4923_v55, %v4922_v10  ;;  %v8699_v47 = vmul.f32 %v4535_v32, %v4517_v13 }
 0x94e   :  { %v5322_v60 = vsel %vm3905_vm9, %v5321_v50, 0.0  ;;  %v5339_v8 = vmul.f32 1.442695, %v5338_v11  ;;  %4532 = vadd.xlane.f32.xlu0 %v4531_v17  ;;  %v4725_v16 = vadd.f32 %v4724_v3, %v4723_v24  ;;  %v4743_v51 = vsub.f32 8.0, %v8636_v21  ;;  %7061 = vmatpush3.bf16.msra.mxu1 %v7449_v34  ;;  %v7451_v24 = vld [vmem:[%s7836_s25 + $0x30] sm:$0xff]   ;;  %v7452_v11 = vld [vmem:[%s7836_s25 + $0x38] sm:$0xff]  }
 0x94f   :  { %v5124_v19 = vrot.slane %v5123_v62, 2  ;;  %v5323_v42 = vrot.slane %v5322_v60, 4  ;;  %v4329_v33 = vmul.f32 %v7510_v38, %v8571_v12  ;;  %v4925_v5 = vrot.slane %v4924_v14, 1  ;;  %v7512_v29 = vpop.eup %7511  ;;  %7062 = vmatprep.subr.bf16.mxu1 %v7629_v1 }
 0x950   :  { %7517 = vpow2.f32 %v5339_v8  ;;  %v5144_v37 = vmul.f32 0.1, %v5134_v0  ;;  %v8707_v32 = vmul.f32 %v4743_v51, %v4725_v16  ;;  %v5335_v56 = vadd.f32 %v5334_v22, %v8652_v58 }
 0x951   :  { %v5324_v35 = vadd.f32 %v5323_v42, %v5322_v60  ;;  %3927 = vadd.xlane.f32.xlu1 %v8587_v30  ;;  %v5125_v7 = vadd.f32 %v5124_v19, %v5123_v62  ;;  %v4926_v59 = vadd.f32 %v4925_v5, %v4924_v14  ;;  %v4944_v21 = vsub.f32 8.0, %v4943_v41  ;;  %v7450_v30 = vld [vmem:[%s7836_s25 + $0x28] sm:$0xff]  }
 0x952   :  { %v7514_v63 = vpop.eup %7513  ;;  %v4330_v40 = vsel %vm3905_vm9, %v4329_v33, 0.0  ;;  %v4738_v49 = vmul.f32 %v7512_v29, %v8571_v12  ;;  %v5145_v10 = vsub.f32 8.0, %v5144_v37  ;;  %v5345_v22 = vmul.f32 0.1, %v5335_v56  ;;  %7063 = vmatpush3.bf16.msra.mxu1 %v7450_v30 }
 0x953   :  { %v5325_v26 = vrot.slane %v5324_v35, 2  ;;  %v4939_v52 = vmul.f32 %v7514_v63, %v8571_v12  ;;  %v5126_v25 = vrot.slane %v5125_v7, 1  ;;  %v8715_v0 = vmul.f32 %v4944_v21, %v4926_v59  ;;  %7064 = vmatprep.subr.bf16.mxu1 %v7629_v1 }
 0x954   :  { %v4739_v44 = vsel %vm3905_vm9, %v4738_v49, 0.0  ;;  %v5346_v55 = vsub.f32 8.0, %v5345_v22 }
 0x955   :  { %4331 = vadd.xlane.f32.xlu1 %v4330_v40  ;;  %v4940_v58 = vsel %vm3905_vm9, %v4939_v52, 0.0  ;;  %v5127_v36 = vadd.f32 %v5126_v25, %v5125_v7  ;;  %v5326_v2 = vadd.f32 %v5325_v26, %v5324_v35 }
 0x956   :  { %v7516_v20 = vpop.eup %7515  ;;  %4941 = vadd.xlane.f32.xlu0 %v4940_v58  ;;  %7065 = vmatpush3.bf16.msra.mxu1 %v7451_v24 }
 0x957   :  { %v5140_v43 = vmul.f32 %v7516_v20, %v8571_v12  ;;  %v8720_v4 = vmul.f32 %v5145_v10, %v5127_v36  ;;  %v5327_v31 = vrot.slane %v5326_v2, 1  ;;  %7066 = vmatprep.subr.bf16.mxu1 %v7629_v1 }
 0x959   :  { %4740 = vadd.xlane.f32.xlu1 %v4739_v44  ;;  %v5328_v38 = vadd.f32 %v5327_v31, %v5326_v2  ;;  %v5141_v48 = vsel %vm3905_vm9, %v5140_v43, 0.0 }
 0x95a   :  { %v7518_v6 = vpop.eup %7517  ;;  %7067 = vmatpush3.bf16.msra.mxu1 %v7452_v11 }
 0x95b   :  { %v5341_v27 = vmul.f32 %v7518_v6, %v8571_v12  ;;  %v8727_v50 = vmul.f32 %v5346_v55, %v5328_v38 }
 0x95d   :  { %5142 = vadd.xlane.f32.xlu1 %v5141_v48  ;;  %v5342_v53 = vsel %vm3905_vm9, %v5341_v27, 0.0 }
 0x95e   :  { %5343 = vadd.xlane.f32.xlu0 %v5342_v53 }
 0x9b8   :  { %v3629_v13 = vpop.xlane.xlu0 %3628 }
 0x9bc   :  { %v3652_v62 = vpop.xlane.xlu0 %3651 }
 0x9c0   :  { %v3712_v8 = vpop.xlane.xlu0 %3711 }
 0x9c4   :  { %v3674_v42 = vpop.xlane.xlu0 %3673 }
 0x9c6   :  { %v3626_v17 = vpop.xlane.xlu1 %3625 }
 0x9c7   :  { %v3630_v14 = vmul.f32 %v3629_v13, %v3626_v17 }
 0x9c9   :  { %v3646_v59 = vpop.xlane.xlu0 %3645 }
 0x9ca   :  { %v3649_v3 = vpop.xlane.xlu1 %3648 }
 0x9cb   :  { %v3653_v60 = vmul.f32 %v3652_v62, %v3649_v3 }
 0x9cd   :  { %7519 = vrsqrt.f32 %v3653_v60 }
 0x9ce   :  { %v3709_v41 = vpop.xlane.xlu1 %3708  ;;  %7521 = vrsqrt.f32 %v3630_v14 }
 0x9cf   :  { %v3713_v12 = vmul.f32 %v3712_v8, %v3709_v41  ;;  %v3933_v8 = vsel %vm3932_vm11, %v8509_v28, 0.0  ;;  %v4336_v28 = vsel %vm3932_vm11, %v8683_v9, 0.0  ;;  %v4745_v9 = vsel %vm3932_vm11, %v8707_v32, 0.0 }
 0x9d0   :  { %v6829_v1 = vpop.f32.mrb[64].mxu1  ;;  %v5147_v32 = vsel %vm3932_vm11, %v8720_v4, 0.0 }
 0x9d1   :  { %7523 = vrsqrt.f32 %v3713_v12  ;;  %v6830_v19 = vpop.f32.mrb[65].mxu1 }
 0x9d2   :  { %v6831_v16 = vadd.f32 %v6830_v19, %v6829_v1  ;;  %v3671_v51 = vpop.xlane.xlu1 %3670  ;;  %v6832_v34 = vpop.f32.mrb[66].mxu1  ;;  %v7561_v1 = vld [vmem:[%s8918_s9] sm:$0xff] }
 0x9d3   :  { %v3675_v33 = vmul.f32 %v3674_v42, %v3671_v51  ;;  %v6833_v37 = vpop.f32.mrb[67].mxu1  ;;  %v3668_v43 = vpop.xlane.xlu0 %3667  ;;  %v5389_v19 = vsel %vm3682_vm10, %v7561_v1, 0.0  ;;  %v4135_v42 = vsel %vm3932_vm11, %v8673_v23, 0.0  ;;  %v5418_v51 = vmul.f32 %v8284_v18, %v8284_v18 }
 0x9d4   :  { %v5860_v5 = vadd.f32 %v6831_v16, %v8563_v46  ;;  %v4537_v23 = vsel %vm3932_vm11, %v8699_v47, 0.0  ;;  %v5916_v18 = vsel %vm3682_vm10, %v8514_v61, 0.0  ;;  %v4946_v47 = vsel %vm3932_vm11, %v8715_v0, 0.0 }
 0x9d5   :  { %7525 = vrsqrt.f32 %v3675_v33  ;;  %v5419_v34 = vsel %vm3350_vm7, %v5418_v51, 0.0 }
 0x9d6   :  { %v3623_v29 = vpop.xlane.xlu1 %3622 }
 0x9d7   :  { %v7520_v35 = vpop.eup %7519  ;;  %v6851_v7 = vpop.f32.mrb[84].mxu0 }
 0x9d8   :  { %v6852_v56 = vpop.f32.mrb[85].mxu0  ;;  %v7522_v63 = vpop.eup %7521  ;;  %v3655_v52 = vmul.f32 %v7520_v35, %v3646_v59 }
 0x9d9   :  { %v6853_v21 = vadd.f32 %v6852_v56, %v6851_v7  ;;  %v6854_v26 = vpop.f32.mrb[86].mxu0  ;;  %v3632_v25 = vmul.f32 %v7522_v63, %v3623_v29  ;;  %v4131_v3 = vpop.xlane.xlu0 %4130 }
 0x9da   :  { %v3706_v40 = vpop.xlane.xlu1 %3705  ;;  %v6855_v49 = vpop.f32.mrb[87].mxu0  ;;  %v3656_v2 = vmul.f32 0.33333334, %v3655_v52 }
 0x9db   :  { %v7524_v30 = vpop.eup %7523  ;;  %v5900_v10 = vadd.f32 %v6853_v21, %v5860_v5  ;;  %v3634_v46 = vmul.f32 0.33333334, %v3632_v25 }
 0x9dc   :  { %v3715_v58 = vmul.f32 %v7524_v30, %v3706_v40  ;;  %v7562_v30 = vld [vmem:[%s8917_s5] sm:$0xff] }
 0x9dd   :  { %v5988_v36 = vpack.c.bf16 %v5900_v10, %v5900_v10  ;;  %v3657_v24 = vadd.f32 %v3656_v2, %v3634_v46  ;;  %v4533_v16 = vpop.xlane.xlu0 %4532  ;;  %v5378_v0 = vsel %vm3682_vm10, %v7562_v30, 0.0  ;;  %v5401_v10 = vmul.f32 %v8282_v15, %v8282_v15 }
 0x9de   :  { %v3716_v22 = vmul.f32 0.33333334, %v3715_v58  ;;  %v3928_v48 = vpop.xlane.xlu1 %3927 }
 0x9df   :  { %v7526_v20 = vpop.eup %7525  ;;  %7069 = vmatmul.mubr.bf16.vlgmr.msra.gmra.mrb[68].mxu1 %v5988_v36  ;;  %7527 = vlog2.f32 %v3928_v48  ;;  %v5402_v4 = vsel %vm200_vm1, %v5401_v10, 0.0  ;;  %vm6130_vm1 = vcmp.eq.s32.totalorder %v8461_v39, 2 }
 0x9e0   :  { %v3677_v31 = vmul.f32 %v7526_v20, %v3668_v43  ;;  %v3718_v38 = vadd.f32 %v3716_v22, %v3656_v2  ;;  %v5905_v43 = vsel %vm3682_vm10, %v8512_v45, 0.0 }
 0x9e2   :  { %v3678_v44 = vmul.f32 0.33333334, %v3677_v31  ;;  %v4332_v41 = vpop.xlane.xlu1 %4331 }
 0x9e3   :  { %v4942_v37 = vpop.xlane.xlu0 %4941 }
 0x9e4   :  { %v3679_v55 = vadd.f32 %v3678_v44, %v3657_v24  ;;  %v3719_v6 = vadd.f32 %v3718_v38, %v3678_v44  ;;  %v5348_v44 = vsel %vm3932_vm11, %v8727_v50, 0.0  ;;  %v5927_v38 = vsel %vm3682_vm10, %v8519_v54, 0.0 }
 0x9e6   :  { %v3680_v27 = vmul.f32 1.442695, %v3679_v55  ;;  %v3720_v11 = vmul.f32 1.442695, %v3719_v6  ;;  %v4741_v33 = vpop.xlane.xlu1 %4740  ;;  %v5938_v55 = vsel %vm3682_vm10, %v8517_v57, 0.0 }
 0x9e8   :  { %7529 = vpow2.f32 %v3680_v27 }
 0x9e9   :  { %7531 = vpow2.f32 %v3720_v11  ;;  %v7528_v53 = vpop.eup %7527 }
 0x9ea   :  { %v3945_v60 = vmul.f32 0.6931472, %v7528_v53  ;;  %7533 = vlog2.f32 %v4131_v3  ;;  %v5143_v7 = vpop.xlane.xlu1 %5142 }
 0x9eb   :  { %7535 = vlog2.f32 %v4332_v41  ;;  %v5344_v61 = vpop.xlane.xlu0 %5343 }
 0x9ec   :  { %v3946_v12 = vsel %vm3682_vm10, %v3945_v60, 0.0  ;;  %7537 = vlog2.f32 %v4533_v16 }
 0x9ed   :  { %7539 = vlog2.f32 %v4741_v33 }
 0x9ee   :  { %7541 = vlog2.f32 %v4942_v37 }
 0x9ef   :  { %7543 = vlog2.f32 %v5143_v7 }
 0x9f0   :  { %7545 = vlog2.f32 %v5344_v61 }
 0x9f2   :  { %v7530_v13 = vpop.eup %7529 }
 0x9f3   :  { %v7532_v62 = vpop.eup %7531  ;;  %v3683_v17 = vsel %vm3682_vm10, %v7530_v13, 0.0 }
 0x9f4   :  { %3684 = vadd.xlane.f32.xlu1 %v3683_v17  ;;  %v3722_v14 = vsel %vm3682_vm10, %v7532_v62, 0.0  ;;  %v7534_v5 = vpop.eup %7533 }
 0x9f5   :  { %3723 = vadd.xlane.f32.xlu0 %v3722_v14  ;;  %v4147_v29 = vmul.f32 0.6931472, %v7534_v5  ;;  %v7536_v35 = vpop.eup %7535 }
 0x9f6   :  { %v4348_v63 = vmul.f32 0.6931472, %v7536_v35  ;;  %v7538_v59 = vpop.eup %7537 }
 0x9f7   :  { %v4148_v56 = vsel %vm3682_vm10, %v4147_v29, 0.0  ;;  %v4549_v26 = vmul.f32 0.6931472, %v7538_v59  ;;  %v7540_v52 = vpop.eup %7539 }
 0x9f8   :  { %3934 = vadd.xlane.f32.xlu1 %v3933_v8  ;;  %v4349_v21 = vsel %vm3682_vm10, %v4348_v63, 0.0  ;;  %v4757_v40 = vmul.f32 0.6931472, %v7540_v52  ;;  %v7542_v49 = vpop.eup %7541 }
 0x9f9   :  { %3947 = vadd.xlane.f32.xlu0 %v3946_v12  ;;  %v4550_v25 = vsel %vm3682_vm10, %v4549_v26, 0.0  ;;  %v4958_v36 = vmul.f32 0.6931472, %v7542_v49  ;;  %v7544_v2 = vpop.eup %7543 }
 0x9fa   :  { %v4758_v58 = vsel %vm3682_vm10, %v4757_v40, 0.0  ;;  %v5159_v22 = vmul.f32 0.6931472, %v7544_v2  ;;  %v7546_v20 = vpop.eup %7545 }
 0x9fb   :  { %v4959_v46 = vsel %vm3682_vm10, %v4958_v36, 0.0  ;;  %v5360_v31 = vmul.f32 0.6931472, %v7546_v20 }
 0x9fc   :  { %4136 = vadd.xlane.f32.xlu1 %v4135_v42  ;;  %v5160_v15 = vsel %vm3682_vm10, %v5159_v22, 0.0 }
 0x9fd   :  { %5390 = vadd.xlane.f32.xlu0 %v5389_v19  ;;  %v5361_v24 = vsel %vm3682_vm10, %v5360_v31, 0.0 }
 0xa00   :  { %4337 = vadd.xlane.f32.xlu1 %v4336_v28 }
 0xa01   :  { %5420 = vadd.xlane.f32.xlu0 %v5419_v34 }
 0xa04   :  { %4538 = vadd.xlane.f32.xlu1 %v4537_v23 }
 0xa05   :  { %5917 = vadd.xlane.f32.xlu0 %v5916_v18 }
 0xa08   :  { %4746 = vadd.xlane.f32.xlu1 %v4745_v9 }
 0xa09   :  { %4149 = vadd.xlane.f32.xlu0 %v4148_v56 }
 0xa0c   :  { %4947 = vadd.xlane.f32.xlu1 %v4946_v47 }
 0xa0d   :  { %4350 = vadd.xlane.f32.xlu0 %v4349_v21 }
 0xa10   :  { %5148 = vadd.xlane.f32.xlu1 %v5147_v32 }
 0xa11   :  { %4551 = vadd.xlane.f32.xlu0 %v4550_v25 }
 0xa14   :  { %5379 = vadd.xlane.f32.xlu1 %v5378_v0 }
 0xa15   :  { %4759 = vadd.xlane.f32.xlu0 %v4758_v58 }
 0xa18   :  { %5403 = vadd.xlane.f32.xlu1 %v5402_v4 }
 0xa19   :  { %4960 = vadd.xlane.f32.xlu0 %v4959_v46 }
 0xa1c   :  { %5906 = vadd.xlane.f32.xlu1 %v5905_v43 }
 0xa1d   :  { %5161 = vadd.xlane.f32.xlu0 %v5160_v15 }
 0xa20   :  { %5349 = vadd.xlane.f32.xlu1 %v5348_v44 }
 0xa21   :  { %5362 = vadd.xlane.f32.xlu0 %v5361_v24 }
 0xa24   :  { %5928 = vadd.xlane.f32.xlu1 %v5927_v38 }
 0xa25   :  { %5939 = vadd.xlane.f32.xlu0 %v5938_v55 }
 0xa81   :  { %v3685_v45 = vpop.xlane.xlu1 %3684 }
 0xa82   :  { %v3686_v6 = vrot.slane %v3685_v45, 4  ;;  %v3724_v48 = vpop.xlane.xlu0 %3723 }
 0xa83   :  { %v3725_v27 = vrot.slane %v3724_v48, 4 }
 0xa84   :  { %v3687_v11 = vadd.f32 %v3686_v6, %v3685_v45 }
 0xa85   :  { %v3726_v53 = vadd.f32 %v3725_v27, %v3724_v48  ;;  %v3935_v13 = vpop.xlane.xlu1 %3934 }
 0xa86   :  { %v3688_v50 = vrot.slane %v3687_v11, 2  ;;  %v3936_v62 = vrot.slane %v3935_v13, 4  ;;  %v3948_v17 = vpop.xlane.xlu0 %3947 }
 0xa87   :  { %v3727_v3 = vrot.slane %v3726_v53, 2  ;;  %v3949_v14 = vrot.slane %v3948_v17, 4 }
 0xa88   :  { %v3937_v60 = vadd.f32 %v3936_v62, %v3935_v13  ;;  %v3689_v8 = vadd.f32 %v3688_v50, %v3687_v11 }
 0xa89   :  { %v3950_v54 = vadd.f32 %v3949_v14, %v3948_v17  ;;  %v4137_v41 = vpop.xlane.xlu1 %4136  ;;  %v3728_v12 = vadd.f32 %v3727_v3, %v3726_v53 }
 0xa8a   :  { %v3938_v57 = vrot.slane %v3937_v60, 2  ;;  %v4138_v1 = vrot.slane %v4137_v41, 4  ;;  %v8776_v19 = vpop.xlane.xlu0 %5390  ;;  %v3690_v42 = vrot.slane %v3689_v8, 1 }
 0xa8b   :  { %v3951_v16 = vrot.slane %v3950_v54, 2  ;;  %v3729_v51 = vrot.slane %v3728_v12, 1  ;;  %v5392_v11 = vrot.slane %v8776_v19, 4 }
 0xa8c   :  { %v4139_v28 = vadd.f32 %v4138_v1, %v4137_v41  ;;  %v3691_v33 = vadd.f32 %v3690_v42, %v3689_v8  ;;  %v3939_v34 = vadd.f32 %v3938_v57, %v3937_v60 }
 0xa8d   :  { %v4338_v5 = vpop.xlane.xlu1 %4337  ;;  %v3730_v23 = vadd.f32 %v3729_v51, %v3728_v12  ;;  %v3952_v37 = vadd.f32 %v3951_v16, %v3950_v54  ;;  %v5393_v1 = vadd.f32 %v5392_v11, %v8776_v19 }
 0xa8e   :  { %v4140_v18 = vrot.slane %v4139_v28, 2  ;;  %v4339_v29 = vrot.slane %v4338_v5, 4  ;;  %v8778_v35 = vpop.xlane.xlu0 %5420  ;;  %7072 = vpush %v3691_v33  ;;  %v3940_v9 = vrot.slane %v3939_v34, 1 }
 0xa8f   :  { %7074 = vpush %v3730_v23  ;;  %v3953_v7 = vrot.slane %v3952_v37, 1 }
 0xa90   :  { %v3941_v56 = vadd.f32 %v3940_v9, %v3939_v34  ;;  %v4141_v63 = vadd.f32 %v4140_v18, %v4139_v28  ;;  %v4340_v59 = vadd.f32 %v4339_v29, %v4338_v5  ;;  %v5422_v28 = vrot.slane %v8778_v35, 4 }
 0xa91   :  { %v4539_v47 = vpop.xlane.xlu1 %4538  ;;  %v3954_v61 = vadd.f32 %v3953_v7, %v3952_v37 }
 0xa92   :  { %v4540_v21 = vrot.slane %v4539_v47, 4  ;;  %v8780_v26 = vpop.xlane.xlu0 %5917  ;;  %7076 = vpush %v3941_v56  ;;  %v4142_v52 = vrot.slane %v4141_v63, 1  ;;  %v4341_v25 = vrot.slane %v4340_v59, 2 }
 0xa93   :  { %7078 = vpush %v3954_v61  ;;  %v5423_v61 = vadd.f32 %v5422_v28, %v8778_v35 }
 0xa94   :  { %v4143_v32 = vadd.f32 %v4142_v52, %v4141_v63  ;;  %v4541_v49 = vadd.f32 %v4540_v21, %v4539_v47  ;;  %v4342_v2 = vadd.f32 %v4341_v25, %v4340_v59  ;;  %v5394_v63 = vrot.slane %v5393_v1, 2 }
 0xa95   :  { %v4747_v40 = vpop.xlane.xlu1 %4746  ;;  %v5424_v35 = vrot.slane %v5423_v61, 2 }
 0xa96   :  { %v4748_v30 = vrot.slane %v4747_v40, 4  ;;  %v4150_v0 = vpop.xlane.xlu0 %4149  ;;  %7080 = vpush %v4143_v32  ;;  %v4542_v4 = vrot.slane %v4541_v49, 2  ;;  %v4343_v38 = vrot.slane %v4342_v2, 1  ;;  %v5919_v32 = vrot.slane %v8780_v26, 4 }
 0xa97   :  { %v4151_v10 = vrot.slane %v4150_v0, 4 }
 0xa98   :  { %v4749_v46 = vadd.f32 %v4748_v30, %v4747_v40  ;;  %v4543_v27 = vadd.f32 %v4542_v4, %v4541_v49  ;;  %v4344_v14 = vadd.f32 %v4343_v38, %v4342_v2 }
 0xa99   :  { %v4152_v58 = vadd.f32 %v4151_v10, %v4150_v0  ;;  %v4948_v36 = vpop.xlane.xlu1 %4947 }
 0xa9a   :  { %v4949_v22 = vrot.slane %v4948_v36, 4  ;;  %v4351_v20 = vpop.xlane.xlu0 %4350  ;;  %v4750_v55 = vrot.slane %v4749_v46, 2  ;;  %v4544_v12 = vrot.slane %v4543_v27, 1 }
 0xa9b   :  { %v4153_v43 = vrot.slane %v4152_v58, 2  ;;  %v4352_v15 = vrot.slane %v4351_v20, 4 }
 0xa9c   :  { %v4950_v45 = vadd.f32 %v4949_v22, %v4948_v36  ;;  %v4751_v57 = vadd.f32 %v4750_v55, %v4749_v46  ;;  %v4545_v9 = vadd.f32 %v4544_v12, %v4543_v27 }
 0xa9d   :  { %v4353_v31 = vadd.f32 %v4352_v15, %v4351_v20  ;;  %v5149_v44 = vpop.xlane.xlu1 %5148  ;;  %v4154_v24 = vadd.f32 %v4153_v43, %v4152_v58  ;;  %v8787_v20 = vadd.f32 %v5394_v63, %v5393_v1 }
 0xa9e   :  { %v5150_v6 = vrot.slane %v5149_v44, 4  ;;  %v4552_v48 = vpop.xlane.xlu0 %4551  ;;  %v4951_v8 = vrot.slane %v4950_v45, 2  ;;  %v4752_v7 = vrot.slane %v4751_v57, 1 }
 0xa9f   :  { %v4354_v53 = vrot.slane %v4353_v31, 2  ;;  %v4553_v13 = vrot.slane %v4552_v48, 4  ;;  %v4155_v50 = vrot.slane %v4154_v24, 1 }
 0xaa0   :  { %v5151_v54 = vadd.f32 %v5150_v6, %v5149_v44  ;;  %v4952_v56 = vadd.f32 %v4951_v8, %v4950_v45  ;;  %v4753_v58 = vadd.f32 %v4752_v7, %v4751_v57 }
 0xaa1   :  { %v4554_v62 = vadd.f32 %v4553_v13, %v4552_v48  ;;  %v5380_v17 = vpop.xlane.xlu1 %5379  ;;  %v4156_v3 = vadd.f32 %v4155_v50, %v4154_v24  ;;  %v4355_v60 = vadd.f32 %v4354_v53, %v4353_v31  ;;  %v5920_v31 = vadd.f32 %v5919_v32, %v8780_v26  ;;  %v6550_v26 = vld [vmem:[%s7841_s13] ss:$0 sm:$0xff]  ;;  %s8940_s13 = sld [smem:[#allocation9_spill]] }
 0xaa2   :  { %v4760_v41 = vpop.xlane.xlu0 %4759  ;;  %v5381_v33 = vrot.slane %v5380_v17, 4  ;;  %v5152_v18 = vrot.slane %v5151_v54, 2  ;;  %v4953_v36 = vrot.slane %v4952_v56, 1 }
 0xaa3   :  { %v4555_v42 = vrot.slane %v4554_v62, 2  ;;  %v4761_v16 = vrot.slane %v4760_v41, 4  ;;  %7082 = vpush %v4156_v3  ;;  %v4356_v51 = vrot.slane %v4355_v60, 1  ;;  %v5921_v8 = vrot.slane %v5920_v31, 2 }
 0xaa4   :  { %7084 = vpush %v4344_v14  ;;  %v5382_v21 = vadd.f32 %v5381_v33, %v5380_v17  ;;  %v5153_v2 = vadd.f32 %v5152_v18, %v5151_v54  ;;  %v4954_v27 = vadd.f32 %v4953_v36, %v4952_v56 }
 0xaa5   :  { %v4762_v34 = vadd.f32 %v4761_v16, %v4760_v41  ;;  %v5404_v5 = vpop.xlane.xlu1 %5403  ;;  %v4357_v23 = vadd.f32 %v4356_v51, %v4355_v60  ;;  %v4556_v37 = vadd.f32 %v4555_v42, %v4554_v62  ;;  %v5396_v62 = vrot.slane %v8787_v20, 1 }
 0xaa6   :  { %v4961_v29 = vpop.xlane.xlu0 %4960  ;;  %v5405_v52 = vrot.slane %v5404_v5, 4  ;;  %v5383_v43 = vrot.slane %v5382_v21, 2  ;;  %v5154_v11 = vrot.slane %v5153_v2, 1  ;;  %v5425_v60 = vadd.f32 %v5424_v35, %v5423_v61 }
 0xaa7   :  { %v4763_v59 = vrot.slane %v4762_v34, 2  ;;  %v4962_v19 = vrot.slane %v4961_v29, 4  ;;  %7086 = vpush %v4357_v23  ;;  %v4557_v47 = vrot.slane %v4556_v37, 1 }
 0xaa8   :  { %7088 = vpush %v4545_v9  ;;  %v5406_v15 = vadd.f32 %v5405_v52, %v5404_v5  ;;  %v5384_v14 = vadd.f32 %v5383_v43, %v5382_v21  ;;  %v5155_v28 = vadd.f32 %v5154_v11, %v5153_v2 }
 0xaa9   :  { %v4963_v25 = vadd.f32 %v4962_v19, %v4961_v29  ;;  %v5907_v40 = vpop.xlane.xlu1 %5906  ;;  %v4558_v49 = vadd.f32 %v4557_v47, %v4556_v37  ;;  %v4764_v30 = vadd.f32 %v4763_v59, %v4762_v34 }
 0xaaa   :  { %v5908_v0 = vrot.slane %v5907_v40, 4  ;;  %v5162_v10 = vpop.xlane.xlu0 %5161  ;;  %v5407_v17 = vrot.slane %v5406_v15, 2  ;;  %v5385_v56 = vrot.slane %v5384_v14, 1 }
 0xaab   :  { %v4964_v4 = vrot.slane %v4963_v25, 2  ;;  %v5163_v46 = vrot.slane %v5162_v10, 4  ;;  %7090 = vpush %v4558_v49  ;;  %v4765_v22 = vrot.slane %v4764_v30, 1 }
 0xaac   :  { %7092 = vpush %v4753_v58  ;;  %v5909_v45 = vadd.f32 %v5908_v0, %v5907_v40  ;;  %v5408_v63 = vadd.f32 %v5407_v17, %v5406_v15  ;;  %v5922_v40 = vadd.f32 %v5921_v8, %v5920_v31  ;;  %v5386_v2 = vadd.f32 %v5385_v56, %v5384_v14  ;;  %v6084_v17 = vld [vmem:[%s8940_s13] sm:$0xff]  ;;  %s7563_s13 = scalar_lea.vmem %s6152_s2, 16 }
 0xaad   :  { %v5164_v44 = vadd.f32 %v5163_v46, %v5162_v10  ;;  %v5350_v24 = vpop.xlane.xlu1 %5349  ;;  %v4766_v38 = vadd.f32 %v4765_v22, %v4764_v30  ;;  %v4965_v55 = vadd.f32 %v4964_v4, %v4963_v25  ;;  %v5397_v15 = vadd.f32 %v5396_v62, %v8787_v20  ;;  %p7564_p0 = scmp.ne.s32.totalorder %s6152_s2, %s7563_s13 }
 0xaae   :  { %v5363_v6 = vpop.xlane.xlu0 %5362  ;;  %v5351_v48 = vrot.slane %v5350_v24, 4  ;;  %v5910_v1 = vrot.slane %v5909_v45, 2  ;;  %v5409_v35 = vrot.slane %v5408_v63, 1 }
 0xaaf   :  { %v5165_v53 = vrot.slane %v5164_v44, 2  ;;  %v5364_v13 = vrot.slane %v5363_v6, 4  ;;  %7094 = vpush %v4766_v38  ;;  %v4966_v50 = vrot.slane %v4965_v55, 1  ;;  %v5923_v38 = vrot.slane %v5922_v40, 1 }
 0xab0   :  { %v5352_v3 = vadd.f32 %v5351_v48, %v5350_v24  ;;  %7096 = vpush %v4954_v27  ;;  %v5911_v10 = vadd.f32 %v5910_v1, %v5909_v45  ;;  %v5410_v45 = vadd.f32 %v5409_v35, %v5408_v63 }
 0xab1   :  { %v5365_v54 = vadd.f32 %v5364_v13, %v5363_v6  ;;  %v5929_v41 = vpop.xlane.xlu1 %5928  ;;  %v4967_v12 = vadd.f32 %v4966_v50, %v4965_v55  ;;  %v5166_v57 = vadd.f32 %v5165_v53, %v5164_v44  ;;  %v5426_v44 = vrot.slane %v5425_v60, 1 }
 0xab2   :  { %v5353_v42 = vrot.slane %v5352_v3, 2  ;;  %v5940_v16 = vpop.xlane.xlu0 %5939  ;;  %v5930_v51 = vrot.slane %v5929_v41, 4  ;;  %v6078_v33 = vpop.f32.mrb[68].mxu1  ;;  %v5912_v31 = vrot.slane %v5911_v10, 1  ;;  %v5924_v11 = vadd.f32 %v5923_v38, %v5922_v40 }
 0xab3   :  { %v5366_v34 = vrot.slane %v5365_v54, 2  ;;  %v5941_v5 = vrot.slane %v5940_v16, 4  ;;  %7098 = vpush %v4967_v12  ;;  %v8792_v23 = vadd.f32 %v6550_v26, %v6078_v33  ;;  %v7070_v37 = vpop.f32.mrb[69].mxu1  ;;  %v5167_v18 = vrot.slane %v5166_v57, 1 }
 0xab4   :  { %v5931_v29 = vadd.f32 %v5930_v51, %v5929_v41  ;;  %7100 = vpush %v5155_v28  ;;  %v6081_v9 = vpop.f32.mrb[70].mxu1  ;;  %v5354_v7 = vadd.f32 %v5353_v42, %v5352_v3  ;;  %v5427_v6 = vadd.f32 %v5426_v44, %v5425_v60  ;;  %v5913_v48 = vadd.f32 %v5912_v31, %v5911_v10 }
 0xab5   :  { %v5942_v59 = vadd.f32 %v5941_v5, %v5940_v16  ;;  %v6088_v19 = vand.u32 2147483647, %v8792_v23  ;;  %v6110_v47 = vsub.f32 0.0, %v8792_v23  ;;  %v5168_v61 = vadd.f32 %v5167_v18, %v5166_v57  ;;  %v7071_v21 = vpop.f32.mrb[71].mxu1 }
 0xab6   :  { %v5932_v52 = vrot.slane %v5931_v29, 2  ;;  %v5355_v32 = vrot.slane %v5354_v7, 1  ;;  %v5367_v25 = vadd.f32 %v5366_v34, %v5365_v54  ;;  %v6085_v26 = vmax.f32 %v8792_v23, 0.0 }
 0xab7   :  { %v5943_v49 = vrot.slane %v5942_v59, 2  ;;  %v6089_v30 = vsub.f32 0.0, %v6088_v19  ;;  %v6111_v0 = vmul.f32 1.442695, %v6110_v47  ;;  %7102 = vpush %v5168_v61  ;;  %v6086_v14 = vmul.f32 %v6084_v17, %v8792_v23 }
 0xab8   :  { %v5356_v58 = vadd.f32 %v5355_v32, %v5354_v7  ;;  %v5368_v36 = vrot.slane %v5367_v25, 1  ;;  %v5933_v4 = vadd.f32 %v5932_v52, %v5931_v29 }
 0xab9   :  { %v5944_v46 = vadd.f32 %v5943_v49, %v5942_v59  ;;  %v6090_v22 = vmul.f32 1.442695, %v6089_v30  ;;  %7547 = vpow2.f32 %v6111_v0  ;;  %v6087_v8 = vsub.f32 %v6085_v26, %v6086_v14 }
 0xaba   :  { %7104 = vpush %v5356_v58  ;;  %v5369_v43 = vadd.f32 %v5368_v36, %v5367_v25  ;;  %v5934_v24 = vrot.slane %v5933_v4, 1 }
 0xabb   :  { %7549 = vpow2.f32 %v6090_v22  ;;  %v5945_v55 = vrot.slane %v5944_v46, 1 }
 0xabc   :  { %7106 = vpush %v5369_v43  ;;  %v5935_v27 = vadd.f32 %v5934_v24, %v5933_v4 }
 0xabd   :  { %7108 = vpush %v5386_v2  ;;  %v5946_v53 = vadd.f32 %v5945_v55, %v5944_v46 }
 0xabe   :  { %7110 = vpush %v5397_v15 }
 0xabf   :  { %7112 = vpush %v5410_v45  ;;  %s8801_s25 = spop %7072 }
 0xac0   :  { %7114 = vpush %v5427_v6  ;;  %s8803_s7 = spop %7074 }
 0xac1   :  { %7116 = vpush %v5913_v48 }
 0xac2   :  { %7118 = vpush %v5924_v11 }
 0xac3   :  { %v7548_v20 = vpop.eup %7547  ;;  %7120 = vpush %v5935_v27  ;;  %s8805_s10 = spop %7076 }
 0xac4   :  { %v6113_v13 = vadd.f32 1.0, %v7548_v20  ;;  %7122 = vpush %v5946_v53  ;;  %s8807_s11 = spop %7078  ;;  %v3943_v25 = vstv %s8805_s10 }
 0xac5   :  { %v7550_v50 = vpop.eup %7549  ;;  %v3956_v40 = vstv %s8807_s11  ;;  %v3959_v10 = vmul.f32 0.015625, %v3943_v25 }
 0xac6   :  { %7551 = vrcp.f32 %v6113_v13  ;;  %v6092_v62 = vadd.f32 1.0, %v7550_v50  ;;  %v3957_v2 = vmul.f32 0.125, %v3956_v40 }
 0xac7   :  { %s8809_s0 = spop %7080 }
 0xac8   :  { %7553 = vlog2.f32 %v6092_v62  ;;  %v4145_v49 = vstv %s8809_s0 }
 0xac9   :  { %v4160_v4 = vmul.f32 0.015625, %v4145_v49 }
 0xad0   :  { %v7552_v3 = vpop.eup %7551 }
 0xad1   :  { %6115 = vst.msk [vmem:[%s7846_s27] sm:$0xff] %vm6096_vm12, %v7552_v3 }
 0xad2   :  { %v7554_v60 = vpop.eup %7553 }
 0xad3   :  { %v6094_v54 = vmul.f32 0.6931472, %v7554_v60 }
 0xad4   :  { %s8811_s5 = spop %7082 }
 0xad5   :  { %v6095_v41 = vadd.f32 %v6094_v54, %v6087_v8  ;;  %s8813_s9 = spop %7084  ;;  %v4158_v30 = vstv %s8811_s5 }
 0xad6   :  { %v4159_v46 = vmul.f32 0.125, %v4158_v30  ;;  %v4346_v22 = vstv %s8813_s9 }
 0xad7   :  { %v6097_v12 = vsel %vm6096_vm12, %v6095_v41, 0.0  ;;  %v4361_v60 = vmul.f32 0.015625, %v4346_v22 }
 0xad8   :  { %6098 = vadd.xlane.f32.xlu1 %v6097_v12  ;;  %s8815_s27 = spop %7086  ;;  %v4161_v54 = vsub.f32 %v4159_v46, %v4160_v4 }
 0xad9   :  { %s8817_s3 = spop %7088  ;;  %v4359_v35 = vstv %s8815_s27 }
 0xada   :  { %v4360_v11 = vmul.f32 0.125, %v4359_v35  ;;  %v4547_v8 = vstv %s8817_s3 }
 0xadc   :  { %s8819_s8 = spop %7090 }
 0xadd   :  { %s8821_s17 = spop %7092  ;;  %v4560_v50 = vstv %s8819_s8 }
 0xade   :  { %v4755_v31 = vstv %s8821_s17  ;;  %v4561_v41 = vmul.f32 0.125, %v4560_v50 }
 0xadf   :  { %v4770_v62 = vmul.f32 0.015625, %v4755_v31 }
 0xae0   :  { %s8823_s14 = spop %7094 }
 0xae1   :  { %s8825_s19 = spop %7096  ;;  %v4768_v43 = vstv %s8823_s14 }
 0xae2   :  { %v4956_v15 = vstv %s8825_s19  ;;  %v4769_v53 = vmul.f32 0.125, %v4768_v43 }
 0xae3   :  { %v4971_v20 = vmul.f32 0.015625, %v4956_v15 }
 0xae4   :  { %s8827_s24 = spop %7098  ;;  %v4771_v12 = vsub.f32 %v4769_v53, %v4770_v62 }
 0xae5   :  { %s8829_s30 = spop %7100  ;;  %v4969_v58 = vstv %s8827_s24 }
 0xae6   :  { %v4970_v24 = vmul.f32 0.125, %v4969_v58  ;;  %v5157_v38 = vstv %s8829_s30 }
 0xae7   :  { %v5172_v17 = vmul.f32 0.015625, %v5157_v38 }
 0xae8   :  { %s8831_s6 = spop %7102  ;;  %v4972_v3 = vsub.f32 %v4970_v24, %v4971_v20 }
 0xae9   :  { %v5170_v44 = vstv %s8831_s6 }
 0xaea   :  { %v5171_v13 = vmul.f32 0.125, %v5170_v44 }
 0xaeb   :  { %s8833_s12 = spop %7104 }
 0xaec   :  { %v5358_v45 = vstv %s8833_s12 }
 0xaed   :  { %s8835_s20 = spop %7106  ;;  %v5373_v26 = vmul.f32 0.015625, %v5358_v45 }
 0xaee   :  { %s8837_s4 = spop %7108  ;;  %v5371_v6 = vstv %s8835_s20 }
 0xaef   :  { %s8839_s15 = spop %7110  ;;  %v5388_v55 = vstv %s8837_s4  ;;  %v5372_v14 = vmul.f32 0.125, %v5371_v6 }
 0xaf0   :  { %s8841_s16 = spop %7112  ;;  %v5399_v48 = vstv %s8839_s15  ;;  %7555 = vrcp.f32 %v5388_v55 }
 0xaf1   :  { %s8843_s18 = spop %7114  ;;  %7557 = vrcp.f32 %v5399_v48 }
 0xaf2   :  { %s7117_s22 = spop %7116 }
 0xaf3   :  { %s7119_s23 = spop %7118  ;;  %v5915_v57 = vstv %s7117_s22 }
 0xaf4   :  { %s7121_s26 = spop %7120  ;;  %v5926_v1 = vstv %s7119_s23 }
 0xaf5   :  { %v5937_v42 = vstv %s7121_s26  ;;  %v5949_v16 = vadd.f32 %v5926_v1, %v5915_v57  ;;  %s7123_s28 = spop %7122 }
 0xaf6   :  { %v5948_v5 = vstv %s7123_s28 }
 0xaf7   :  { %v5950_v28 = vadd.f32 %v5949_v16, %v5937_v42  ;;  %v4562_v16 = vmul.f32 0.015625, %v4547_v8 }
 0xaf9   :  { %v5951_v23 = vadd.f32 %v5950_v28, %v5948_v5  ;;  %v5374_v28 = vsub.f32 %v5372_v14, %v5373_v26 }
 0xafb   :  { %v5952_v29 = vmul.f32 0.25, %v5951_v23 }
 0xafd   :  { %v5953_v56 = vsub.f32 %v5915_v57, %v5952_v29  ;;  %v5955_v63 = vsub.f32 %v5926_v1, %v5952_v29  ;;  %v5958_v47 = vsub.f32 %v5937_v42, %v5952_v29  ;;  %v5961_v52 = vsub.f32 %v5948_v5, %v5952_v29 }
 0xafe   :  { %v5173_v57 = vsub.f32 %v5171_v13, %v5172_v17  ;;  %v3960_v1 = vsub.f32 %v3957_v2, %v3959_v10  ;;  %v4362_v42 = vsub.f32 %v4360_v11, %v4361_v60  ;;  %v5412_v29 = vstv %s8841_s16 }
 0xaff   :  { %v5954_v59 = vmul.f32 %v5953_v56, %v5953_v56  ;;  %v5956_v19 = vmul.f32 %v5955_v63, %v5955_v63  ;;  %v5959_v21 = vmul.f32 %v5958_v47, %v5958_v47  ;;  %v5962_v0 = vmul.f32 %v5961_v52, %v5961_v52 }
 0xb00   :  { %v3693_v56 = vstv %s8801_s25  ;;  %v3732_v63 = vstv %s8803_s7  ;;  %s7567_s25 = scalar_lea.vmem %s6152_s2, 32 }
 0xb01   :  { %v5957_v61 = vadd.f32 %v5956_v19, %v5954_v59  ;;  %v3695_v52 = vmul.f32 0.125, %v3693_v56  ;;  %p7569_p2 = scmp.lt.s32.totalorder %s7567_s25, %s7563_s13 }
 0xb03   :  { %v5960_v32 = vadd.f32 %v5959_v21, %v5957_v61  ;;  %v5414_v61 = vmul.f32 0.00390625, %v5412_v29  ;;  %p7570_p3 = por %p7569_p2, %p7568_p1 }
 0xb05   :  { %v5963_v36 = vadd.f32 %v5962_v0, %v5960_v32  ;;  %v3733_v32 = vmul.f32 0.125, %v3732_v63  ;;  %p7571_p4 = pnand %p7570_p3, %p7564_p0 }
 0xb07   :  { %v5964_v27 = vmul.f32 0.33333334, %v5963_v36  ;;  %v3734_v10 = vadd.f32 %v3733_v32, %v3695_v52 }
 0xb09   :  { %7559 = vrsqrt.f32 %v5964_v27  ;;  %vm5967_vm13 = vcmp.eq.f32.partialorder %v5964_v27, inf  ;;  %v5970_v2 = vand.u32 2147483648, %v5964_v27  ;;  %vm5969_vm14 = vcmp.eq.f32.partialorder %v5964_v27, 0.0 }
 0xb0a   :  { %v6116_v22 = vmul.f32 0.2, %v3734_v10  ;;  %v6128_v45 = vsel %vm6127_vm15, %v3734_v10, 0.0 }
 0xb65   :  { %v6099_v51 = vpop.xlane.xlu1 %6098 }
 0xb66   :  { %v6100_v33 = vrot.slane %v6099_v51, 4 }
 0xb68   :  { %v6101_v34 = vadd.f32 %v6100_v33, %v6099_v51  ;;  %v4973_v51 = vadd.f32 %v4972_v3, %v4771_v12  ;;  %v4162_v33 = vadd.f32 %v4161_v54, %v3960_v1 }
 0xb6a   :  { %v6102_v37 = vrot.slane %v6101_v34, 2  ;;  %v5174_v5 = vadd.f32 %v5173_v57, %v4973_v51  ;;  %v4363_v23 = vadd.f32 %v4362_v42, %v4162_v33 }
 0xb6c   :  { %v6103_v18 = vadd.f32 %v6102_v37, %v6101_v34  ;;  %v4563_v34 = vsub.f32 %v4561_v41, %v4562_v16  ;;  %v5375_v37 = vadd.f32 %v5374_v28, %v5174_v5 }
 0xb6e   :  { %v6104_v9 = vrot.slane %v6103_v18, 1  ;;  %v4564_v59 = vadd.f32 %v4563_v34, %v4363_v23  ;;  %v5376_v47 = vmul.f32 0.25, %v5375_v37 }
 0xb70   :  { %v6105_v7 = vadd.f32 %v6104_v9, %v6103_v18  ;;  %v7556_v18 = vpop.eup %7555  ;;  %v5429_v9 = vstv %s8843_s18  ;;  %v4566_v25 = vmul.f32 0.25, %v4564_v59 }
 0xb71   :  { %v5431_v21 = vmul.f32 0.0026041667, %v5429_v9  ;;  %v5416_v40 = vmul.f32 %v7556_v18, %v5414_v61 }
 0xb72   :  { %7124 = vpush %v6105_v7  ;;  %v7558_v7 = vpop.eup %7557  ;;  %v5377_v0 = vadd.f32 %v5376_v47, %v4566_v25 }
 0xb73   :  { %v7560_v19 = vpop.eup %7559  ;;  %v5433_v49 = vmul.f32 %v7558_v7, %v5431_v21 }
 0xb74   :  { %v5966_v30 = vmul.f32 %v7560_v19, %v5964_v27  ;;  %v6117_v4 = vmul.f32 0.3, %v5377_v0 }
 0xb75   :  { %v5434_v58 = vadd.f32 %v5433_v49, %v5416_v40 }
 0xb76   :  { %v5968_v36 = vsel %vm5967_vm13, %v5964_v27, %v5966_v30  ;;  %v6118_v43 = vadd.f32 %v6117_v4, %v6116_v22  ;;  %v6131_v27 = vsel %vm6130_vm1, %v5377_v0, 0.0 }
 0xb77   :  { %v5971_v46 = vsel %vm5969_vm14, %v5970_v2, %v5968_v36  ;;  %v6119_v35 = vmul.f32 0.5, %v5434_v58  ;;  %v6134_v53 = vsel %vm6133_vm2, %v5434_v58, 0.0 }
 0xb78   :  { %v6121_v15 = vmul.f32 0.1, %v5971_v46  ;;  %v6137_v13 = vsel %vm6136_vm3, %v5971_v46, 0.0 }
 0xb79   :  { %v6120_v44 = vadd.f32 %v6119_v35, %v6118_v43 }
 0xb7b   :  { %v6122_v38 = vadd.f32 %v6121_v15, %v6120_v44 }
 0xba3   :  { %s7125_s21 = spop %7124 }
 0xba4   :  { %v6107_v31 = vstv %s7125_s21 }
 0xba5   :  { %v6109_v24 = vmul.f32 0.03125, %v6107_v31 }
 0xba7   :  { %v6123_v55 = vadd.f32 %v6122_v38, %v6109_v24  ;;  %v6140_v62 = vsel %vm6139_vm4, %v6109_v24, 0.0 }
 0xba9   :  { %v6125_v6 = vsel %vm6124_vm0, %v6123_v55, 0.0 }
 0xbaa   :  { %v6129_v48 = vadd.f32 %v6128_v45, %v6125_v6 }
 0xbac   :  { %v6132_v11 = vadd.f32 %v6131_v27, %v6129_v48 }
 0xbae   :  { %v6135_v20 = vadd.f32 %v6134_v53, %v6132_v11 }
 0xbb0   :  { %v6138_v50 = vadd.f32 %v6137_v13, %v6135_v20 }
 0xbb2   :  { %v6141_v17 = vadd.f32 %v6140_v62, %v6138_v50 }
 0xbb4   :  { %6142 = vst.msk [vmem:[#allocation2] sm:$0x1] %vm3932_vm11, %v6141_v17 }
 0xbb5   :  { %7574 = shalt.err (!%p7571_p4)
}
 0xbb6   :  { %s7575_s7 = scalar_lea.hbm %s7851_s29, 16 }
 0xbb7   :  { %p7576_p5 = scmp.ne.s32.totalorder %s7851_s29, %s7575_s7  ;;  %p7579_p6 = scmp.lt.u32.totalorder %s7575_s7, %s7851_s29 }
 0xbb9   :  { %p7581_p7 = pnand %p7579_p6, %p7576_p5 }
 0xbbb   :  { %7584 = shalt.err (!%p7581_p7)
}
 0xbbc   :  { %6154 = dma.vmem_to_hbm [thread:$0]  %s6152_s2, 16, %s7851_s29, [#allocation3]  }
 0xbbd   :  { %7585 = dma.done.wait [#allocation3], 16  }
 0xbbe   :  { %7586 = vsyncadd [#allocation3], 4294967280 }
 0xbbf   :  { %6160 = vsyncpa [#allocation3], 1 }

</bundles_post_ra>
